<compile_context>
chip_gen: v5e
topology: v5e:2x2
jax: 0.10.0
libtpu: 0.0.40
codegen_flags: <defaults>
</compile_context>

<pallas_src>
import jax
import jax.numpy as jnp
from jax.experimental import pallas as pl
from jax.experimental.pallas import tpu as pltpu

BN_EPS = 1e-5
LANE = 128


# ----------------------------------------------------------------------------
# small helpers
# ----------------------------------------------------------------------------
def _round_up(v, m):
    return (v + m - 1) // m * m


def _pad_last(x, target):
    pad = target - x.shape[-1]
    if pad == 0:
        return x
    cfg = [(0, 0)] * (x.ndim - 1) + [(0, pad)]
    return jnp.pad(x, cfg)


_VMEM_LIMIT_CACHE = [None]


def _vmem_limit_bytes():
    """~75% of physical VMEM, clamped to [32 MiB, 96 MiB].

    Leaves compiler-scratch headroom on v7x (64 MiB/TC -> ~48 MiB) while using the
    larger 128 MiB of v5e/v6e (-> 96 MiB)."""
    if _VMEM_LIMIT_CACHE[0] is None:
        try:
            cap = int(pltpu.get_tpu_info().vmem_capacity_bytes)
        except Exception:
            cap = 64 * 1024 * 1024
        _VMEM_LIMIT_CACHE[0] = int(min(max(cap * 3 // 4, 32 * 1024 * 1024),
                                       96 * 1024 * 1024))
    return _VMEM_LIMIT_CACHE[0]


def _choose_row_block(n, h, w, cp_in, cp_out, vmem_limit):
    """Budget-driven row-block: biggest divisor of H whose working set fits ~half the
    (generation-safe) VMEM budget, keeping >= 2 grid blocks for v7x's 2 TensorCores."""
    budget = min(vmem_limit, 64 * 1024 * 1024) // 2

    def vmem_need(th):
        m = th * w
        return (2 * (th + 2) * (w + 2) * cp_in * 2   # halo input tile, double-buffered bf16
                + 2 * m * cp_out * 2                 # bf16 y tile, double-buffered
                + 2 * 2 * cp_out * 4                 # partials tile
                + 2 * 9 * cp_in * cp_out * 2         # pinned weights (double-buffered)
                + m * 9 * cp_in * 2                  # in-kernel im2col slab
                + 2 * m * cp_out * 4)                # f32 matmul result + headroom

    divs = [d for d in range(1, h + 1) if h % d == 0]
    good = [d for d in divs if vmem_need(d) <= budget and d * w <= 4096]
    if not good:
        good = [1]
    if n == 1:  # keep >= 2 parallel grid blocks when possible (v7x megacore)
        multi = [d for d in good if h // d >= 2]
        if multi:
            good = multi
    return max(good)


def _halo_row_blocks(x, th):
    """x: (N, H, W, C) -> (N, HB, th+2, W+2, C) halo row blocks of the zero-padded image.

    Materializing the 1-row halo costs only (th+2)/th extra HBM (vs 9x for im2col) and
    keeps every Pallas block non-overlapping, so BlockSpec auto-pipelining applies.
    Any elementwise preprocessing (e.g. the previous layer's BN affine + ReLU) is fused
    into this pass by XLA, so it costs no extra HBM round-trip."""
    n, h, w, c = x.shape
    assert h % th == 0
    hb = h // th
    xp = jnp.pad(x, ((0, 0), (1, 1), (1, 1), (0, 0)))
    blocks = [xp[:, i * th:i * th + th + 2] for i in range(hb)]
    return jnp.stack(blocks, axis=1)                  # (N, HB, th+2, W+2, C)


def _weights_flat(w_oihw, cp_in, cp_out):
    """PyTorch (Cout, Cin, 3, 3) -> (9*Cp_in, Cp_out) bf16, tap-major rows (matches the
    in-kernel im2col slab column order)."""
    cout, cin = w_oihw.shape[0], w_oihw.shape[1]
    wk = jnp.transpose(w_oihw, (2, 3, 1, 0)).reshape(9, cin, cout)
    wk = jnp.pad(wk, ((0, 0), (0, cp_in - cin), (0, cp_out - cout)))
    return wk.reshape(9 * cp_in, cp_out).astype(jnp.bfloat16)


# ----------------------------------------------------------------------------
# Kernel A: 3x3 conv as ONE big-K MXU matmul (in-VMEM im2col) + BN partial sums
# ----------------------------------------------------------------------------
def _conv3x3_stats_kernel(x_ref, w_ref, y_ref, p_ref):
    # x_ref: (TH+2, W+2, Cp_in)  bf16 halo tile (channels zero-padded to 128-multiple)
    # w_ref: (9*Cp_in, Cp_out)   bf16 weights, pinned (same block every grid step)
    # y_ref: (TH*W, Cp_out)      bf16 pre-BN conv output tile (f32 accumulation in-kernel)
    # p_ref: (2, Cp_out)         f32  per-tile [sum, sum-of-squares]
    thp2, wp2, cp_in = x_ref.shape
    th, w = thp2 - 2, wp2 - 2
    m, _ = y_ref.shape

    # Build the (m, 9*Cp_in) im2col slab in VMEM from 9 shifted Ref-window loads, then
    # issue a single K = 9*Cp_in matmul: the accumulation over taps stays inside the
    # MXU result buffer (no 9x f32 accumulator read-modify-write through VMEM/vregs)
    # and K >= 1152 keeps the 256-wide MXUs of v6e/v7x filled.
    slabs = []
    for dy in range(3):
        for dx in range(3):
            slabs.append(x_ref[dy:dy + th, dx:dx + w, :].reshape(m, cp_in))
    col = jnp.concatenate(slabs, axis=-1)                       # (m, 9*Cp_in) bf16
    acc = jnp.dot(col, w_ref[...], preferred_element_type=jnp.float32)

    y_ref[...] = acc.astype(y_ref.dtype)                        # bf16 store (halved HBM)

    # BN partial sums on the MXU (ones-row matmul) instead of a cross-sublane XLU reduce.
    ones_row = jnp.ones((1, m), jnp.float32)
    s1 = jnp.dot(ones_row, acc, preferred_element_type=jnp.float32)
    s2 = jnp.dot(ones_row, acc * acc, preferred_element_type=jnp.float32)
    p_ref[...] = jnp.concatenate([s1, s2], axis=0)


def _conv3x3_stats(x_halo, wk_flat, *, th, w, cp_in, cp_out, vmem_limit):
    n, hb = x_halo.shape[0], x_halo.shape[1]
    m = th * w
    # TODO(synk): single-buffer the pinned-weights block (pl.Buffered(1)) once its
    # interaction with the top-level grid pipeline is verified; its (double-buffered)
    # footprint is already accounted for in the tile-size budget.
    return pl.pallas_call(
        _conv3x3_stats_kernel,
        grid=(n, hb),
        in_specs=[
            pl.BlockSpec((None, None, th + 2, w + 2, cp_in),
                         lambda b, i: (b, i, 0, 0, 0)),
            pl.BlockSpec((9 * cp_in, cp_out), lambda b, i: (0, 0)),   # pinned weights
        ],
        out_specs=(
            pl.BlockSpec((None, None, m, cp_out), lambda b, i: (b, i, 0, 0)),
            pl.BlockSpec((None, None, 2, cp_out), lambda b, i: (b, i, 0, 0)),
        ),
        out_shape=(
            jax.ShapeDtypeStruct((n, hb, m, cp_out), jnp.bfloat16),
            jax.ShapeDtypeStruct((n, hb, 2, cp_out), jnp.float32),
        ),
        compiler_params=pltpu.CompilerParams(
            dimension_semantics=("parallel", "parallel"),
            vmem_limit_bytes=vmem_limit,
        ),
    )(x_halo, wk_flat)


# ----------------------------------------------------------------------------
# Kernel B (final layer only): fused BN affine + ReLU, compact cout-channel f32 output
# ----------------------------------------------------------------------------
def _bn_relu_kernel(y_ref, scale_ref, shift_ref, o_ref):
    y = y_ref[...].astype(jnp.float32)
    a = jnp.maximum(y * scale_ref[...] + shift_ref[...], 0.0)
    o_ref[...] = a[:, : o_ref.shape[-1]].astype(o_ref.dtype)


# ----------------------------------------------------------------------------
# BatchNorm statistics (training-mode, biased variance) over the FULL N*H*W row set
# ----------------------------------------------------------------------------
def _bn_scale_shift(partials, count, gamma, beta, cout, cp_out):
    s = jnp.sum(partials, axis=(0, 1))                     # tiny XLA reduce, (2, Cp_out)
    mean = s[0] / count
    var = jnp.maximum(s[1] / count - mean * mean, 0.0)
    gamma_p = _pad_last(gamma.reshape(1, cout).astype(jnp.float32), cp_out)
    beta_p = _pad_last(beta.reshape(1, cout).astype(jnp.float32), cp_out)
    scale = gamma_p * jax.lax.rsqrt(var[None, :] + BN_EPS)
    shift = beta_p - mean[None, :] * scale                 # padded channels: scale=shift=0
    return scale, shift


# ----------------------------------------------------------------------------
# DoubleConv = 2 x (Conv3x3 pad1 + BatchNorm2d(batch stats) + ReLU)
# ----------------------------------------------------------------------------
def double_conv(x_nhwc, params, vmem_limit):
    n, h, w, cin_x = x_nhwc.shape
    cout1, cin1 = params["w1"].shape[0], params["w1"].shape[1]
    cout2 = params["w2"].shape[0]
    assert cin1 <= cin_x
    # TODO(synk): support W not a multiple of 8 (the in-kernel (TH,W,C)->(TH*W,C) reshape
    # relies on a sublane-aligned layout); UNet feature maps satisfy this.
    assert w % 8 == 0, "W must be a multiple of 8"
    # TODO(synk): for cout < 128 a channels-on-sublanes layout would avoid the 128-lane
    # padding blow-up; standard UNet Up channel counts make the lane-dense layout the
    # right default.

    cp_in1 = _round_up(max(cin_x, cin1), LANE)
    cp_mid = _round_up(cout1, LANE)
    cp_out2 = _round_up(cout2, LANE)
    count = float(n * h * w)

    # ---- layer 1: conv + BN partial sums -------------------------------------------
    th1 = _choose_row_block(n, h, w, cp_in1, cp_mid, vmem_limit)
    x_halo = _halo_row_blocks(_pad_last(x_nhwc, cp_in1).astype(jnp.bfloat16), th1)
    wk1 = _weights_flat(params["w1"], cp_in1, cp_mid)
    y1, p1 = _conv3x3_stats(x_halo, wk1, th=th1, w=w,
                            cp_in=cp_in1, cp_out=cp_mid, vmem_limit=vmem_limit)
    scale1, shift1 = _bn_scale_shift(p1, count, params["g1"], params["beta1"],
                                     cout1, cp_mid)

    # ---- BN1 affine + ReLU: no standalone pass -------------------------------------
    # Fused (by XLA) into the halo restage that feeds conv2: y1 is read once, the bf16
    # halo blocks are written once.  Padded lanes stay exactly zero (scale=shift=0).
    h1 = jnp.maximum(y1.astype(jnp.float32) * scale1 + shift1, 0.0).astype(jnp.bfloat16)
    h1 = h1.reshape(n, h, w, cp_mid)

    # ---- layer 2: conv + BN partial sums -------------------------------------------
    th2 = _choose_row_block(n, h, w, cp_mid, cp_out2, vmem_limit)
    h1_halo = _halo_row_blocks(h1, th2)
    wk2 = _weights_flat(params["w2"], cp_mid, cp_out2)
    y2, p2 = _conv3x3_stats(h1_halo, wk2, th=th2, w=w,
                            cp_in=cp_mid, cp_out=cp_out2, vmem_limit=vmem_limit)
    scale2, shift2 = _bn_scale_shift(p2, count, params["g2"], params["beta2"],
                                     cout2, cp_out2)

    # ---- final fused affine + ReLU, compact cout-channel f32 output -----------------
    hb2 = h // th2
    m2 = th2 * w
    out = pl.pallas_call(
        _bn_relu_kernel,
        grid=(n, hb2),
        in_specs=[
            pl.BlockSpec((None, None, m2, cp_out2), lambda b, i: (b, i, 0, 0)),
            pl.BlockSpec((1, cp_out2), lambda b, i: (0, 0)),
            pl.BlockSpec((1, cp_out2), lambda b, i: (0, 0)),
        ],
        out_specs=pl.BlockSpec((None, None, m2, cout2), lambda b, i: (b, i, 0, 0)),
        out_shape=jax.ShapeDtypeStruct((n, hb2, m2, cout2), jnp.float32),
        compiler_params=pltpu.CompilerParams(
            dimension_semantics=("parallel", "parallel"),
            vmem_limit_bytes=vmem_limit,
        ),
    )(y2, scale2, shift2)

    return out.reshape(n, h, w, cout2)


# ----------------------------------------------------------------------------
# Glue: bilinear x2 upsample (align_corners=True) without gathers
# ----------------------------------------------------------------------------
def _interp_matrix(n_out, n_in):
    if n_in == 1:
        return jnp.ones((n_out, 1), jnp.float32)
    src = jnp.arange(n_out, dtype=jnp.float32) * ((n_in - 1) / (n_out - 1))
    i0 = jnp.clip(jnp.floor(src).astype(jnp.int32), 0, n_in - 2)
    frac = src - i0.astype(jnp.float32)
    return (jax.nn.one_hot(i0, n_in, dtype=jnp.float32) * (1.0 - frac)[:, None]
            + jax.nn.one_hot(i0 + 1, n_in, dtype=jnp.float32) * frac[:, None])


def upsample_bilinear_x2_align_corners(x):
    """x: (N, H, W, C) -> (N, 2H, 2W, C); two small dense interpolation matmuls."""
    n, h, w, c = x.shape
    wy = _interp_matrix(2 * h, h)
    wx = _interp_matrix(2 * w, w)
    x = jnp.einsum("oh,nhwc->nowc", wy, x)
    return jnp.einsum("pw,nowc->nopc", wx, x)


# ----------------------------------------------------------------------------
# Up.forward
# ----------------------------------------------------------------------------
@jax.jit
def up_forward(x1_nchw, x2_nchw, params):
    """PyTorch-equivalent Up.forward (bilinear=True). Inputs/outputs are NCHW."""
    vmem_limit = _vmem_limit_bytes()
    x1 = jnp.transpose(x1_nchw, (0, 2, 3, 1)).astype(jnp.float32)
    x2 = jnp.transpose(x2_nchw, (0, 2, 3, 1)).astype(jnp.float32)

    x1 = upsample_bilinear_x2_align_corners(x1)

    diff_y = x2.shape[1] - x1.shape[1]
    diff_x = x2.shape[2] - x1.shape[2]
    x1 = jnp.pad(x1, ((0, 0),
                      (diff_y // 2, diff_y - diff_y // 2),
                      (diff_x // 2, diff_x - diff_x // 2),
                      (0, 0)))

    x = jnp.concatenate([x2, x1], axis=-1)     # == torch.cat([x2, x1], dim=1)
    y = double_conv(x, params, vmem_limit)     # (N, H, W, Cout)
    return jnp.transpose(y, (0, 3, 1, 2))


# ----------------------------------------------------------------------------
# Parameters (PyTorch weight layout).  Conv bias omitted: cancelled by BN mean-subtraction.
# ----------------------------------------------------------------------------
def init_up_params(key, in_channels, out_channels):
    k1, k2 = jax.random.split(key, 2)
    w1 = jax.random.normal(k1, (out_channels, in_channels, 3, 3), jnp.float32) * 0.1
    w2 = jax.random.normal(k2, (out_channels, out_channels, 3, 3), jnp.float32) * 0.1
    return {
        "w1": w1, "g1": jnp.ones((out_channels,), jnp.float32),
        "beta1": jnp.zeros((out_channels,), jnp.float32),
        "w2": w2, "g2": jnp.ones((out_channels,), jnp.float32),
        "beta2": jnp.zeros((out_channels,), jnp.float32),
    }


# ----------------------------------------------------------------------------
# Pure-XLA f32 reference (loose sanity check; Pallas path uses bf16 MXU operands)
# ----------------------------------------------------------------------------
def _ref_conv_bn_relu(x, w_oihw, gamma, beta):
    w_hwio = jnp.transpose(w_oihw, (2, 3, 1, 0))
    y = jax.lax.conv_general_dilated(x, w_hwio, (1, 1), "SAME",
                                     dimension_numbers=("NHWC", "HWIO", "NHWC"))
    mean = jnp.mean(y, axis=(0, 1, 2), keepdims=True)
    var = jnp.mean((y - mean) ** 2, axis=(0, 1, 2), keepdims=True)
    return jnp.maximum((y - mean) * jax.lax.rsqrt(var + BN_EPS) * gamma + beta, 0.0)


def _ref_up_forward(x1_nchw, x2_nchw, params):
    x1 = jnp.transpose(x1_nchw, (0, 2, 3, 1)).astype(jnp.float32)
    x2 = jnp.transpose(x2_nchw, (0, 2, 3, 1)).astype(jnp.float32)
    x1 = upsample_bilinear_x2_align_corners(x1)
    dy, dx = x2.shape[1] - x1.shape[1], x2.shape[2] - x1.shape[2]
    x1 = jnp.pad(x1, ((0, 0), (dy // 2, dy - dy // 2), (dx // 2, dx - dx // 2), (0, 0)))
    x = jnp.concatenate([x2, x1], axis=-1)
    h1 = _ref_conv_bn_relu(x, params["w1"], params["g1"], params["beta1"])
    h2 = _ref_conv_bn_relu(h1, params["w2"], params["g2"], params["beta2"])
    return jnp.transpose(h2, (0, 3, 1, 2))


if __name__ == "__main__":
    # Up(in_channels=8, out_channels=4, bilinear=True)
    # x1: (N, 4, 8, 8) upsampled to 16x16; x2: (N, 4, 16, 16); concat -> 8 channels.
    key = jax.random.PRNGKey(0)
    kx1, kx2, kp = jax.random.split(key, 3)
    x1 = jax.random.normal(kx1, (2, 4, 8, 8), jnp.float32)
    x2 = jax.random.normal(kx2, (2, 4, 16, 16), jnp.float32)
    params = init_up_params(kp, in_channels=8, out_channels=4)

    out = up_forward(x1, x2, params)
    jax.block_until_ready(out)
    assert out.shape == (2, 4, 16, 16), out.shape
    assert bool(jnp.all(jnp.isfinite(out)))

    ref = _ref_up_forward(x1, x2, params)
    err = float(jnp.max(jnp.abs(out - ref)))
    assert err < 2e-1, f"max |pallas - ref| = {err}"
    print("KERNEL_OK")
</pallas_src>

<mosaic_0001>
module attributes {stable_mosaic.version = 11 : i64} {
  func.func @_conv3x3_stats_kernel(%arg0: i32, %arg1: i32, %arg2: memref<1x1x18x18x128xbf16, #tpu.memory_space<vmem>>, %arg3: memref<1152x128xbf16, #tpu.memory_space<vmem>>, %arg4: memref<1x1x256x128xbf16, #tpu.memory_space<vmem>>, %arg5: memref<1x1x2x128xf32, #tpu.memory_space<vmem>>) attributes {dimension_semantics = [#tpu.dimension_semantics<parallel>, #tpu.dimension_semantics<parallel>], iteration_bounds = array<i64: 2, 1>, scalar_prefetch = 0 : i64, scratch_operands = 0 : i64, tpu.core_type = #tpu.core_type<tc>, window_params = [{transform_indices = @transform_0, window_bounds = array<i64: 1, 1, 18, 18, 128>}, {pipeline_mode = #tpu.pipeline_mode<synchronous>, transform_indices = @transform_1, window_bounds = array<i64: 1152, 128>}, {transform_indices = @transform_2, window_bounds = array<i64: 1, 1, 256, 128>}, {transform_indices = @transform_3, window_bounds = array<i64: 1, 1, 2, 128>}]} {
    %c0 = arith.constant 0 : index
    %c0_0 = arith.constant 0 : index
    %c0_1 = arith.constant 0 : index
    %c0_2 = arith.constant 0 : index
    %c0_3 = arith.constant 0 : index
    %0 = vector.load %arg2[%c0, %c0_0, %c0_1, %c0_2, %c0_3] : memref<1x1x18x18x128xbf16, #tpu.memory_space<vmem>>, vector<1x1x16x16x128xbf16>
    %1 = vector.shape_cast %0 : vector<1x1x16x16x128xbf16> to vector<16x16x128xbf16>
    %2 = vector.shape_cast %1 : vector<16x16x128xbf16> to vector<256x128xbf16>
    %c0_4 = arith.constant 0 : index
    %c0_5 = arith.constant 0 : index
    %c0_6 = arith.constant 0 : index
    %c1 = arith.constant 1 : index
    %c0_7 = arith.constant 0 : index
    %3 = vector.load %arg2[%c0_4, %c0_5, %c0_6, %c1, %c0_7] : memref<1x1x18x18x128xbf16, #tpu.memory_space<vmem>>, vector<1x1x16x16x128xbf16>
    %4 = vector.shape_cast %3 : vector<1x1x16x16x128xbf16> to vector<16x16x128xbf16>
    %5 = vector.shape_cast %4 : vector<16x16x128xbf16> to vector<256x128xbf16>
    %c0_8 = arith.constant 0 : index
    %c0_9 = arith.constant 0 : index
    %c0_10 = arith.constant 0 : index
    %c2 = arith.constant 2 : index
    %c0_11 = arith.constant 0 : index
    %6 = vector.load %arg2[%c0_8, %c0_9, %c0_10, %c2, %c0_11] : memref<1x1x18x18x128xbf16, #tpu.memory_space<vmem>>, vector<1x1x16x16x128xbf16>
    %7 = vector.shape_cast %6 : vector<1x1x16x16x128xbf16> to vector<16x16x128xbf16>
    %8 = vector.shape_cast %7 : vector<16x16x128xbf16> to vector<256x128xbf16>
    %c0_12 = arith.constant 0 : index
    %c0_13 = arith.constant 0 : index
    %c1_14 = arith.constant 1 : index
    %c0_15 = arith.constant 0 : index
    %c0_16 = arith.constant 0 : index
    %9 = vector.load %arg2[%c0_12, %c0_13, %c1_14, %c0_15, %c0_16] : memref<1x1x18x18x128xbf16, #tpu.memory_space<vmem>>, vector<1x1x16x16x128xbf16>
    %10 = vector.shape_cast %9 : vector<1x1x16x16x128xbf16> to vector<16x16x128xbf16>
    %11 = vector.shape_cast %10 : vector<16x16x128xbf16> to vector<256x128xbf16>
    %c0_17 = arith.constant 0 : index
    %c0_18 = arith.constant 0 : index
    %c1_19 = arith.constant 1 : index
    %c1_20 = arith.constant 1 : index
    %c0_21 = arith.constant 0 : index
    %12 = vector.load %arg2[%c0_17, %c0_18, %c1_19, %c1_20, %c0_21] : memref<1x1x18x18x128xbf16, #tpu.memory_space<vmem>>, vector<1x1x16x16x128xbf16>
    %13 = vector.shape_cast %12 : vector<1x1x16x16x128xbf16> to vector<16x16x128xbf16>
    %14 = vector.shape_cast %13 : vector<16x16x128xbf16> to vector<256x128xbf16>
    %c0_22 = arith.constant 0 : index
    %c0_23 = arith.constant 0 : index
    %c1_24 = arith.constant 1 : index
    %c2_25 = arith.constant 2 : index
    %c0_26 = arith.constant 0 : index
    %15 = vector.load %arg2[%c0_22, %c0_23, %c1_24, %c2_25, %c0_26] : memref<1x1x18x18x128xbf16, #tpu.memory_space<vmem>>, vector<1x1x16x16x128xbf16>
    %16 = vector.shape_cast %15 : vector<1x1x16x16x128xbf16> to vector<16x16x128xbf16>
    %17 = vector.shape_cast %16 : vector<16x16x128xbf16> to vector<256x128xbf16>
    %c0_27 = arith.constant 0 : index
    %c0_28 = arith.constant 0 : index
    %c2_29 = arith.constant 2 : index
    %c0_30 = arith.constant 0 : index
    %c0_31 = arith.constant 0 : index
    %18 = vector.load %arg2[%c0_27, %c0_28, %c2_29, %c0_30, %c0_31] : memref<1x1x18x18x128xbf16, #tpu.memory_space<vmem>>, vector<1x1x16x16x128xbf16>
    %19 = vector.shape_cast %18 : vector<1x1x16x16x128xbf16> to vector<16x16x128xbf16>
    %20 = vector.shape_cast %19 : vector<16x16x128xbf16> to vector<256x128xbf16>
    %c0_32 = arith.constant 0 : index
    %c0_33 = arith.constant 0 : index
    %c2_34 = arith.constant 2 : index
    %c1_35 = arith.constant 1 : index
    %c0_36 = arith.constant 0 : index
    %21 = vector.load %arg2[%c0_32, %c0_33, %c2_34, %c1_35, %c0_36] : memref<1x1x18x18x128xbf16, #tpu.memory_space<vmem>>, vector<1x1x16x16x128xbf16>
    %22 = vector.shape_cast %21 : vector<1x1x16x16x128xbf16> to vector<16x16x128xbf16>
    %23 = vector.shape_cast %22 : vector<16x16x128xbf16> to vector<256x128xbf16>
    %c0_37 = arith.constant 0 : index
    %c0_38 = arith.constant 0 : index
    %c2_39 = arith.constant 2 : index
    %c2_40 = arith.constant 2 : index
    %c0_41 = arith.constant 0 : index
    %24 = vector.load %arg2[%c0_37, %c0_38, %c2_39, %c2_40, %c0_41] : memref<1x1x18x18x128xbf16, #tpu.memory_space<vmem>>, vector<1x1x16x16x128xbf16>
    %25 = vector.shape_cast %24 : vector<1x1x16x16x128xbf16> to vector<16x16x128xbf16>
    %26 = vector.shape_cast %25 : vector<16x16x128xbf16> to vector<256x128xbf16>
    %27 = tpu.concatenate %2, %5, %8, %11, %14, %17, %20, %23, %26 in 1 : vector<256x128xbf16>, vector<256x128xbf16>, vector<256x128xbf16>, vector<256x128xbf16>, vector<256x128xbf16>, vector<256x128xbf16>, vector<256x128xbf16>, vector<256x128xbf16>, vector<256x128xbf16> -> vector<256x1152xbf16>
    %c0_42 = arith.constant 0 : index
    %c0_43 = arith.constant 0 : index
    %28 = vector.load %arg3[%c0_42, %c0_43] : memref<1152x128xbf16, #tpu.memory_space<vmem>>, vector<1152x128xbf16>
    %cst = arith.constant dense<0.000000e+00> : vector<256x128xf32>
    %29 = tpu.matmul %27, %28, %cst {dimension_numbers = #tpu.dot_dimension_numbers<[1], [0], [0], [1], [0, 0, 1, 1], [], []>} : vector<256x1152xbf16>, vector<1152x128xbf16>, vector<256x128xf32> -> vector<256x128xf32>
    %30 = arith.truncf %29 : vector<256x128xf32> to vector<256x128xbf16>
    %c0_44 = arith.constant 0 : index
    %c0_45 = arith.constant 0 : index
    %c0_46 = arith.constant 0 : index
    %c0_47 = arith.constant 0 : index
    %31 = vector.load %arg4[%c0_44, %c0_45, %c0_46, %c0_47] : memref<1x1x256x128xbf16, #tpu.memory_space<vmem>>, vector<1x1x256x128xbf16>
    %32 = vector.shape_cast %31 : vector<1x1x256x128xbf16> to vector<256x128xbf16>
    %33 = vector.shape_cast %30 : vector<256x128xbf16> to vector<1x1x256x128xbf16>
    tpu.vector_store %arg4[%c0_44, %c0_45, %c0_46, %c0_47], %33 {strides = array<i32>} : memref<1x1x256x128xbf16, #tpu.memory_space<vmem>>, vector<1x1x256x128xbf16>,
    %cst_48 = arith.constant 1.000000e+00 : f32
    %34 = vector.broadcast %cst_48 : f32 to vector<1x256xf32>
    %cst_49 = arith.constant dense<0.000000e+00> : vector<1x128xf32>
    %35 = tpu.matmul %34, %29, %cst_49 {dimension_numbers = #tpu.dot_dimension_numbers<[1], [0], [0], [1], [0, 0, 1, 1], [], []>} : vector<1x256xf32>, vector<256x128xf32>, vector<1x128xf32> -> vector<1x128xf32>
    %36 = arith.mulf %29, %29 : vector<256x128xf32>
    %cst_50 = arith.constant dense<0.000000e+00> : vector<1x128xf32>
    %37 = tpu.matmul %34, %36, %cst_50 {dimension_numbers = #tpu.dot_dimension_numbers<[1], [0], [0], [1], [0, 0, 1, 1], [], []>} : vector<1x256xf32>, vector<256x128xf32>, vector<1x128xf32> -> vector<1x128xf32>
    %38 = tpu.concatenate %35, %37 in 0 : vector<1x128xf32>, vector<1x128xf32> -> vector<2x128xf32>
    %c0_51 = arith.constant 0 : index
    %c0_52 = arith.constant 0 : index
    %c0_53 = arith.constant 0 : index
    %c0_54 = arith.constant 0 : index
    %39 = vector.load %arg5[%c0_51, %c0_52, %c0_53, %c0_54] : memref<1x1x2x128xf32, #tpu.memory_space<vmem>>, vector<1x1x2x128xf32>
    %40 = vector.shape_cast %39 : vector<1x1x2x128xf32> to vector<2x128xf32>
    %41 = vector.shape_cast %38 : vector<2x128xf32> to vector<1x1x2x128xf32>
    tpu.vector_store %arg5[%c0_51, %c0_52, %c0_53, %c0_54], %41 {strides = array<i32>} : memref<1x1x2x128xf32, #tpu.memory_space<vmem>>, vector<1x1x2x128xf32>,
    return
  }
  func.func @transform_0(%arg0: i32, %arg1: i32) -> (i32, i32, i32, i32, i32) {
    %c0_i32 = arith.constant 0 : i32
    %c0_i32_0 = arith.constant 0 : i32
    %c0_i32_1 = arith.constant 0 : i32
    %c0_i32_2 = arith.constant 0 : i32
    return %arg0, %arg1, %c0_i32, %c0_i32_0, %c0_i32_1 : i32, i32, i32, i32, i32
  }
  func.func @transform_1(%arg0: i32, %arg1: i32) -> (i32, i32) {
    %c0_i32 = arith.constant 0 : i32
    %c0_i32_0 = arith.constant 0 : i32
    %c0_i32_1 = arith.constant 0 : i32
    return %c0_i32, %c0_i32_0 : i32, i32
  }
  func.func @transform_2(%arg0: i32, %arg1: i32) -> (i32, i32, i32, i32) {
    %c0_i32 = arith.constant 0 : i32
    %c0_i32_0 = arith.constant 0 : i32
    %c0_i32_1 = arith.constant 0 : i32
    return %arg0, %arg1, %c0_i32, %c0_i32_0 : i32, i32, i32, i32
  }
  func.func @transform_3(%arg0: i32, %arg1: i32) -> (i32, i32, i32, i32) {
    %c0_i32 = arith.constant 0 : i32
    %c0_i32_0 = arith.constant 0 : i32
    %c0_i32_1 = arith.constant 0 : i32
    return %arg0, %arg1, %c0_i32, %c0_i32_0 : i32, i32, i32, i32
  }
}

module attributes {stable_mosaic.version = 11 : i64} {
  func.func @_bn_relu_kernel(%arg0: i32, %arg1: i32, %arg2: memref<1x1x256x128xbf16, #tpu.memory_space<vmem>>, %arg3: memref<1x128xf32, #tpu.memory_space<vmem>>, %arg4: memref<1x128xf32, #tpu.memory_space<vmem>>, %arg5: memref<1x1x256x4xf32, #tpu.memory_space<vmem>>) attributes {dimension_semantics = [#tpu.dimension_semantics<parallel>, #tpu.dimension_semantics<parallel>], iteration_bounds = array<i64: 2, 1>, scalar_prefetch = 0 : i64, scratch_operands = 0 : i64, tpu.core_type = #tpu.core_type<tc>, window_params = [{transform_indices = @transform_0, window_bounds = array<i64: 1, 1, 256, 128>}, {pipeline_mode = #tpu.pipeline_mode<synchronous>, transform_indices = @transform_1, window_bounds = array<i64: 1, 128>}, {pipeline_mode = #tpu.pipeline_mode<synchronous>, transform_indices = @transform_2, window_bounds = array<i64: 1, 128>}, {transform_indices = @transform_3, window_bounds = array<i64: 1, 1, 256, 4>}]} {
    %c0 = arith.constant 0 : index
    %c0_0 = arith.constant 0 : index
    %c0_1 = arith.constant 0 : index
    %c0_2 = arith.constant 0 : index
    %0 = vector.load %arg2[%c0, %c0_0, %c0_1, %c0_2] : memref<1x1x256x128xbf16, #tpu.memory_space<vmem>>, vector<1x1x256x128xbf16>
    %1 = vector.shape_cast %0 : vector<1x1x256x128xbf16> to vector<256x128xbf16>
    %2 = arith.extf %1 : vector<256x128xbf16> to vector<256x128xf32>
    %c0_3 = arith.constant 0 : index
    %c0_4 = arith.constant 0 : index
    %3 = vector.load %arg3[%c0_3, %c0_4] : memref<1x128xf32, #tpu.memory_space<vmem>>, vector<1x128xf32>
    %4 = vector.broadcast %3 : vector<1x128xf32> to vector<256x128xf32>
    %5 = arith.mulf %2, %4 : vector<256x128xf32>
    %c0_5 = arith.constant 0 : index
    %c0_6 = arith.constant 0 : index
    %6 = vector.load %arg4[%c0_5, %c0_6] : memref<1x128xf32, #tpu.memory_space<vmem>>, vector<1x128xf32>
    %7 = vector.broadcast %6 : vector<1x128xf32> to vector<256x128xf32>
    %8 = arith.addf %5, %7 : vector<256x128xf32>
    %cst = arith.constant 0.000000e+00 : f32
    %9 = vector.broadcast %cst : f32 to vector<256x128xf32>
    %10 = arith.maximumf %8, %9 : vector<256x128xf32>
    %11 = vector.extract_strided_slice %10 {offsets = [0, 0], sizes = [256, 4], strides = [1, 1]} : vector<256x128xf32> to vector<256x4xf32>
    %c0_7 = arith.constant 0 : index
    %c0_8 = arith.constant 0 : index
    %c0_9 = arith.constant 0 : index
    %c0_10 = arith.constant 0 : index
    %12 = vector.load %arg5[%c0_7, %c0_8, %c0_9, %c0_10] : memref<1x1x256x4xf32, #tpu.memory_space<vmem>>, vector<1x1x256x4xf32>
    %13 = vector.shape_cast %12 : vector<1x1x256x4xf32> to vector<256x4xf32>
    %14 = vector.shape_cast %11 : vector<256x4xf32> to vector<1x1x256x4xf32>
    tpu.vector_store %arg5[%c0_7, %c0_8, %c0_9, %c0_10], %14 {strides = array<i32>} : memref<1x1x256x4xf32, #tpu.memory_space<vmem>>, vector<1x1x256x4xf32>,
    return
  }
  func.func @transform_0(%arg0: i32, %arg1: i32) -> (i32, i32, i32, i32) {
    %c0_i32 = arith.constant 0 : i32
    %c0_i32_0 = arith.constant 0 : i32
    %c0_i32_1 = arith.constant 0 : i32
    return %arg0, %arg1, %c0_i32, %c0_i32_0 : i32, i32, i32, i32
  }
  func.func @transform_1(%arg0: i32, %arg1: i32) -> (i32, i32) {
    %c0_i32 = arith.constant 0 : i32
    %c0_i32_0 = arith.constant 0 : i32
    %c0_i32_1 = arith.constant 0 : i32
    return %c0_i32, %c0_i32_0 : i32, i32
  }
  func.func @transform_2(%arg0: i32, %arg1: i32) -> (i32, i32) {
    %c0_i32 = arith.constant 0 : i32
    %c0_i32_0 = arith.constant 0 : i32
    %c0_i32_1 = arith.constant 0 : i32
    return %c0_i32, %c0_i32_0 : i32, i32
  }
  func.func @transform_3(%arg0: i32, %arg1: i32) -> (i32, i32, i32, i32) {
    %c0_i32 = arith.constant 0 : i32
    %c0_i32_0 = arith.constant 0 : i32
    %c0_i32_1 = arith.constant 0 : i32
    return %arg0, %arg1, %c0_i32, %c0_i32_0 : i32, i32, i32, i32
  }
}

</mosaic_0001>

<bundles_post_ra>
// kernel: up_forward.5
= control target key start
LH: loop header
LB: loop body
LE: loop exit
PB: predicated region body
PF: predicated region fallthrough
CT: control target
= control target key end

     0   :  { %s662_s12 = smov 0   ;;  %s664_s13 = smov 0   ;;  %s857_s0 = inlined_call_operand.vmem [shape: bf16[2,1,256,128], index: 0, kind: input, shape index: {}]   ;;  %s858_s1 = inlined_call_operand.vmem [shape: f32[1,128], index: 1, kind: input, shape index: {}]   ;;  %s859_s2 = inlined_call_operand.vmem [shape: f32[1,128], index: 2, kind: input, shape index: {}]   ;;  %s860_s3 = inlined_call_operand.vmem [shape: f32[2,1,256,4], index: 3, kind: output, shape index: {}]  }
   0x1   :  { %s666_s14 = smov 0  }
   0x2 LB: > { %s25_s15 = sadd.s32 1, %s636_s13  ;;  %p504_p0 = scmp.ge.s32.totalorder %s640_s14, 1  ;;  %s640_s14 = sphi %s666_s14, %s13_s14   ;;  %s636_s13 = sphi %s664_s13, %s862_s13   ;;  %s632_s12 = sphi %s662_s12, %s861_s12  }
   0x3   : > { %p27_p1 = scmp.ge.s32.totalorder %s25_s15, 2  ;;  %p157_p2 = scmp.lt.s32.totalorder %s640_s14, 3 }
   0x5   : > { %s864_s15 = smov (%p27_p1, %s25_s15), 0  ;;  %p158_p3 = pnand %p504_p0, %p157_p2 }
   0x6   : > { %p189_p4 = scmp.lt.s32.totalorder (!%p158_p3), %s632_s12, 1 }
   0x7   : > { %161 = sbr.rel (%p158_p3) target bundleno = 56 (0x38), region = 32 }
   0xc   : > { %s866_s12 = smov (!%p189_p4, %s632_s12), 1  ;;  %v691_v0 = vld [vmem:[%s858_s1] ss:$0 sm:$0xff]  ;;  %vm375_vm0 = vcmask 31744  }
   0xd   : > { %s511_s16 = sshll.u32 %s866_s12, 7  ;;  %v699_v5 = vld [vmem:[%s859_s2] ss:$0 sm:$0xff]  ;;  %s512_s24 = sshll.u32 %s866_s12, 8 }
   0xe   : > { %s686_s19 = scalar_lea.vmem %s857_s0, %s511_s16  ;;  %s718_s27 = scalar_lea.vmem %s860_s3, %s512_s24 }
   0xf   : > { %v514_v1 = vld [vmem:[%s686_s19] sm:$0xff]   ;;  %v577_v2 = vld [vmem:[%s686_s19 + $0x8] sm:$0xff]   ;;  %v578_v3 = vld [vmem:[%s686_s19 + $0x10] sm:$0xff]  }
  0x10   : > { %v515_v4 = vunpack.c.l.bf16 %v514_v1  ;;  %v516_v6 = vunpack.c.h.bf16 %v514_v1  ;;  %v519_v7 = vunpack.c.l.bf16 %v577_v2  ;;  %v520_v8 = vunpack.c.h.bf16 %v577_v2  ;;  %v579_v9 = vld [vmem:[%s686_s19 + $0x18] sm:$0xff]   ;;  %v580_v30 = vld [vmem:[%s686_s19 + $0x20] sm:$0xff]   ;;  %v581_v31 = vld [vmem:[%s686_s19 + $0x28] sm:$0xff]  }
  0x11   : > { %v523_v10 = vunpack.c.l.bf16 %v578_v3  ;;  %v524_v11 = vunpack.c.h.bf16 %v578_v3  ;;  %v527_v12 = vunpack.c.l.bf16 %v579_v9  ;;  %v528_v13 = vunpack.c.h.bf16 %v579_v9  ;;  %v582_v36 = vld [vmem:[%s686_s19 + $0x30] sm:$0xff]   ;;  %v583_v37 = vld [vmem:[%s686_s19 + $0x38] sm:$0xff]   ;;  %v584_v3 = vld [vmem:[%s686_s19 + $0x40] sm:$0xff]  }
  0x12   : > { %v275_v14 = vmul.f32 %v691_v0, %v515_v4  ;;  %v276_v15 = vmul.f32 %v691_v0, %v516_v6  ;;  %v277_v16 = vmul.f32 %v691_v0, %v519_v7  ;;  %v278_v17 = vmul.f32 %v691_v0, %v520_v8  ;;  %v585_v4 = vld [vmem:[%s686_s19 + $0x48] sm:$0xff]   ;;  %v586_v6 = vld [vmem:[%s686_s19 + $0x50] sm:$0xff]  }
  0x13   : > { %v279_v18 = vmul.f32 %v691_v0, %v523_v10  ;;  %v280_v19 = vmul.f32 %v691_v0, %v524_v11  ;;  %v281_v20 = vmul.f32 %v691_v0, %v527_v12  ;;  %v282_v21 = vmul.f32 %v691_v0, %v528_v13  ;;  %v587_v11 = vld [vmem:[%s686_s19 + $0x58] sm:$0xff]  }
  0x14   : > { %v311_v22 = vadd.f32 %v699_v5, %v275_v14  ;;  %v312_v23 = vadd.f32 %v699_v5, %v276_v15  ;;  %v313_v24 = vadd.f32 %v699_v5, %v277_v16  ;;  %v314_v25 = vadd.f32 %v699_v5, %v278_v17 }
  0x15   : > { %v315_v26 = vadd.f32 %v699_v5, %v279_v18  ;;  %v316_v27 = vadd.f32 %v699_v5, %v280_v19  ;;  %v317_v28 = vadd.f32 %v699_v5, %v281_v20  ;;  %v318_v29 = vadd.f32 %v699_v5, %v282_v21 }
  0x16   : > { %v343_v32 = vmax.f32 %v311_v22, 0.0  ;;  %v344_v33 = vmax.f32 %v312_v23, 0.0  ;;  %v345_v34 = vmax.f32 %v313_v24, 0.0  ;;  %v346_v35 = vmax.f32 %v314_v25, 0.0 }
  0x17   : > { %v347_v38 = vmax.f32 %v315_v26, 0.0  ;;  %v348_v39 = vmax.f32 %v316_v27, 0.0  ;;  %v349_v40 = vmax.f32 %v317_v28, 0.0  ;;  %v350_v41 = vmax.f32 %v318_v29, 0.0 }
  0x18   : > { %376 = vst.msk [vmem:[%s718_s27] sm:$0xff] %vm375_vm0, %v343_v32  ;;  %v531_v42 = vunpack.c.l.bf16 %v580_v30  ;;  %v532_v43 = vunpack.c.h.bf16 %v580_v30  ;;  %v535_v44 = vunpack.c.l.bf16 %v581_v31  ;;  %v536_v45 = vunpack.c.h.bf16 %v581_v31 }
  0x19   : > { %377 = vst.msk [vmem:[%s718_s27 + $0x8] sm:$0xff] %vm375_vm0, %v344_v33  ;;  %v539_v46 = vunpack.c.l.bf16 %v582_v36  ;;  %v540_v47 = vunpack.c.h.bf16 %v582_v36  ;;  %v543_v48 = vunpack.c.l.bf16 %v583_v37  ;;  %v544_v49 = vunpack.c.h.bf16 %v583_v37 }
  0x1a   : > { %378 = vst.msk [vmem:[%s718_s27 + $0x10] sm:$0xff] %vm375_vm0, %v345_v34  ;;  %v283_v50 = vmul.f32 %v691_v0, %v531_v42  ;;  %v284_v51 = vmul.f32 %v691_v0, %v532_v43  ;;  %v285_v52 = vmul.f32 %v691_v0, %v535_v44  ;;  %v286_v53 = vmul.f32 %v691_v0, %v536_v45  ;;  %v590_v42 = vld [vmem:[%s686_s19 + $0x70] sm:$0xff]  }
  0x1b   : > { %379 = vst.msk [vmem:[%s718_s27 + $0x18] sm:$0xff] %vm375_vm0, %v346_v35  ;;  %v287_v54 = vmul.f32 %v691_v0, %v539_v46  ;;  %v288_v55 = vmul.f32 %v691_v0, %v540_v47  ;;  %v289_v56 = vmul.f32 %v691_v0, %v543_v48  ;;  %v290_v57 = vmul.f32 %v691_v0, %v544_v49  ;;  %v591_v47 = vld [vmem:[%s686_s19 + $0x78] sm:$0xff]  }
  0x1c   : > { %380 = vst.msk [vmem:[%s718_s27 + $0x20] sm:$0xff] %vm375_vm0, %v347_v38  ;;  %v319_v58 = vadd.f32 %v699_v5, %v283_v50  ;;  %v320_v59 = vadd.f32 %v699_v5, %v284_v51  ;;  %v321_v60 = vadd.f32 %v699_v5, %v285_v52  ;;  %v322_v61 = vadd.f32 %v699_v5, %v286_v53 }
  0x1d   : > { %381 = vst.msk [vmem:[%s718_s27 + $0x28] sm:$0xff] %vm375_vm0, %v348_v39  ;;  %v323_v62 = vadd.f32 %v699_v5, %v287_v54  ;;  %v324_v63 = vadd.f32 %v699_v5, %v288_v55  ;;  %v325_v1 = vadd.f32 %v699_v5, %v289_v56  ;;  %v326_v2 = vadd.f32 %v699_v5, %v290_v57 }
  0x1e   : > { %382 = vst.msk [vmem:[%s718_s27 + $0x30] sm:$0xff] %vm375_vm0, %v349_v40  ;;  %v351_v7 = vmax.f32 %v319_v58, 0.0  ;;  %v352_v8 = vmax.f32 %v320_v59, 0.0  ;;  %v353_v9 = vmax.f32 %v321_v60, 0.0  ;;  %v354_v10 = vmax.f32 %v322_v61, 0.0  ;;  %v588_v40 = vld [vmem:[%s686_s19 + $0x60] sm:$0xff]  }
  0x1f   : > { %383 = vst.msk [vmem:[%s718_s27 + $0x38] sm:$0xff] %vm375_vm0, %v350_v41  ;;  %v355_v12 = vmax.f32 %v323_v62, 0.0  ;;  %v356_v13 = vmax.f32 %v324_v63, 0.0  ;;  %v357_v14 = vmax.f32 %v325_v1, 0.0  ;;  %v358_v15 = vmax.f32 %v326_v2, 0.0  ;;  %v589_v41 = vld [vmem:[%s686_s19 + $0x68] sm:$0xff]  }
  0x20   : > { %384 = vst.msk [vmem:[%s718_s27 + $0x40] sm:$0xff] %vm375_vm0, %v351_v7  ;;  %v547_v16 = vunpack.c.l.bf16 %v584_v3  ;;  %v548_v17 = vunpack.c.h.bf16 %v584_v3  ;;  %v551_v18 = vunpack.c.l.bf16 %v585_v4  ;;  %v552_v19 = vunpack.c.h.bf16 %v585_v4 }
  0x21   : > { %385 = vst.msk [vmem:[%s718_s27 + $0x48] sm:$0xff] %vm375_vm0, %v352_v8  ;;  %v555_v20 = vunpack.c.l.bf16 %v586_v6  ;;  %v556_v21 = vunpack.c.h.bf16 %v586_v6  ;;  %v559_v22 = vunpack.c.l.bf16 %v587_v11  ;;  %v560_v23 = vunpack.c.h.bf16 %v587_v11 }
  0x22   : > { %386 = vst.msk [vmem:[%s718_s27 + $0x50] sm:$0xff] %vm375_vm0, %v353_v9  ;;  %v291_v24 = vmul.f32 %v691_v0, %v547_v16  ;;  %v292_v25 = vmul.f32 %v691_v0, %v548_v17  ;;  %v293_v26 = vmul.f32 %v691_v0, %v551_v18  ;;  %v294_v27 = vmul.f32 %v691_v0, %v552_v19 }
  0x23   : > { %387 = vst.msk [vmem:[%s718_s27 + $0x58] sm:$0xff] %vm375_vm0, %v354_v10  ;;  %v295_v28 = vmul.f32 %v691_v0, %v555_v20  ;;  %v296_v29 = vmul.f32 %v691_v0, %v556_v21  ;;  %v297_v30 = vmul.f32 %v691_v0, %v559_v22  ;;  %v298_v31 = vmul.f32 %v691_v0, %v560_v23 }
  0x24   : > { %388 = vst.msk [vmem:[%s718_s27 + $0x60] sm:$0xff] %vm375_vm0, %v355_v12  ;;  %v327_v32 = vadd.f32 %v699_v5, %v291_v24  ;;  %v328_v33 = vadd.f32 %v699_v5, %v292_v25  ;;  %v329_v34 = vadd.f32 %v699_v5, %v293_v26  ;;  %v330_v35 = vadd.f32 %v699_v5, %v294_v27 }
  0x25   : > { %389 = vst.msk [vmem:[%s718_s27 + $0x68] sm:$0xff] %vm375_vm0, %v356_v13  ;;  %v331_v36 = vadd.f32 %v699_v5, %v295_v28  ;;  %v332_v37 = vadd.f32 %v699_v5, %v296_v29  ;;  %v333_v38 = vadd.f32 %v699_v5, %v297_v30  ;;  %v334_v39 = vadd.f32 %v699_v5, %v298_v31 }
  0x26   : > { %390 = vst.msk [vmem:[%s718_s27 + $0x70] sm:$0xff] %vm375_vm0, %v357_v14  ;;  %v359_v43 = vmax.f32 %v327_v32, 0.0  ;;  %v360_v44 = vmax.f32 %v328_v33, 0.0  ;;  %v361_v45 = vmax.f32 %v329_v34, 0.0  ;;  %v362_v46 = vmax.f32 %v330_v35, 0.0 }
  0x27   : > { %391 = vst.msk [vmem:[%s718_s27 + $0x78] sm:$0xff] %vm375_vm0, %v358_v15  ;;  %v363_v48 = vmax.f32 %v331_v36, 0.0  ;;  %v364_v49 = vmax.f32 %v332_v37, 0.0  ;;  %v365_v50 = vmax.f32 %v333_v38, 0.0  ;;  %v366_v51 = vmax.f32 %v334_v39, 0.0 }
  0x28   : > { %392 = vst.msk [vmem:[%s718_s27 + $0x80] sm:$0xff] %vm375_vm0, %v359_v43  ;;  %v563_v52 = vunpack.c.l.bf16 %v588_v40  ;;  %v564_v53 = vunpack.c.h.bf16 %v588_v40  ;;  %v567_v54 = vunpack.c.l.bf16 %v589_v41  ;;  %v568_v55 = vunpack.c.h.bf16 %v589_v41 }
  0x29   : > { %393 = vst.msk [vmem:[%s718_s27 + $0x88] sm:$0xff] %vm375_vm0, %v360_v44  ;;  %v571_v56 = vunpack.c.l.bf16 %v590_v42  ;;  %v572_v57 = vunpack.c.h.bf16 %v590_v42  ;;  %v575_v58 = vunpack.c.l.bf16 %v591_v47  ;;  %v576_v59 = vunpack.c.h.bf16 %v591_v47 }
  0x2a   : > { %394 = vst.msk [vmem:[%s718_s27 + $0x90] sm:$0xff] %vm375_vm0, %v361_v45  ;;  %v299_v60 = vmul.f32 %v691_v0, %v563_v52  ;;  %v300_v61 = vmul.f32 %v691_v0, %v564_v53  ;;  %v301_v62 = vmul.f32 %v691_v0, %v567_v54  ;;  %v302_v63 = vmul.f32 %v691_v0, %v568_v55 }
  0x2b   : > { %395 = vst.msk [vmem:[%s718_s27 + $0x98] sm:$0xff] %vm375_vm0, %v362_v46  ;;  %v303_v1 = vmul.f32 %v691_v0, %v571_v56  ;;  %v304_v2 = vmul.f32 %v691_v0, %v572_v57  ;;  %v305_v3 = vmul.f32 %v691_v0, %v575_v58  ;;  %v306_v4 = vmul.f32 %v691_v0, %v576_v59 }
  0x2c   : > { %396 = vst.msk [vmem:[%s718_s27 + $0xa0] sm:$0xff] %vm375_vm0, %v363_v48  ;;  %v335_v6 = vadd.f32 %v699_v5, %v299_v60  ;;  %v336_v7 = vadd.f32 %v699_v5, %v300_v61  ;;  %v337_v8 = vadd.f32 %v699_v5, %v301_v62  ;;  %v338_v9 = vadd.f32 %v699_v5, %v302_v63 }
  0x2d   : > { %397 = vst.msk [vmem:[%s718_s27 + $0xa8] sm:$0xff] %vm375_vm0, %v364_v49  ;;  %v339_v10 = vadd.f32 %v699_v5, %v303_v1  ;;  %v340_v0 = vadd.f32 %v699_v5, %v304_v2  ;;  %v341_v14 = vadd.f32 %v699_v5, %v305_v3  ;;  %v342_v16 = vadd.f32 %v699_v5, %v306_v4 }
  0x2e   : > { %398 = vst.msk [vmem:[%s718_s27 + $0xb0] sm:$0xff] %vm375_vm0, %v365_v50  ;;  %v367_v11 = vmax.f32 %v335_v6, 0.0  ;;  %v368_v12 = vmax.f32 %v336_v7, 0.0  ;;  %v369_v13 = vmax.f32 %v337_v8, 0.0  ;;  %v370_v15 = vmax.f32 %v338_v9, 0.0 }
  0x2f   : > { %399 = vst.msk [vmem:[%s718_s27 + $0xb8] sm:$0xff] %vm375_vm0, %v366_v51  ;;  %v371_v17 = vmax.f32 %v339_v10, 0.0  ;;  %v372_v18 = vmax.f32 %v340_v0, 0.0  ;;  %v373_v19 = vmax.f32 %v341_v14, 0.0  ;;  %v374_v20 = vmax.f32 %v342_v16, 0.0 }
  0x30   : > { %400 = vst.msk [vmem:[%s718_s27 + $0xc0] sm:$0xff] %vm375_vm0, %v367_v11 }
  0x31   : > { %401 = vst.msk [vmem:[%s718_s27 + $0xc8] sm:$0xff] %vm375_vm0, %v368_v12 }
  0x32   : > { %402 = vst.msk [vmem:[%s718_s27 + $0xd0] sm:$0xff] %vm375_vm0, %v369_v13 }
  0x33   : > { %403 = vst.msk [vmem:[%s718_s27 + $0xd8] sm:$0xff] %vm375_vm0, %v370_v15 }
  0x34   : > { %404 = vst.msk [vmem:[%s718_s27 + $0xe0] sm:$0xff] %vm375_vm0, %v371_v17 }
  0x35   : > { %405 = vst.msk [vmem:[%s718_s27 + $0xe8] sm:$0xff] %vm375_vm0, %v372_v18 }
  0x36   : > { %406 = vst.msk [vmem:[%s718_s27 + $0xf0] sm:$0xff] %vm375_vm0, %v373_v19 }
  0x37   : > { %407 = vst.msk [vmem:[%s718_s27 + $0xf8] sm:$0xff] %vm375_vm0, %v374_v20 }
  0x38 PF: > { %s13_s14 = sadd.s32 1, %s640_s14   ;;  %s861_s12 = smov %s636_s13 }
  0x39   : > { %p10_p5 = scmp.ge.s32.totalorder %s13_s14, 4   ;;  %s862_s13 = smov %s864_s15 }
  0x3b   :  { %12 = sbr.rel (!%p10_p5) target bundleno = 2 (0x2), region = 62 }

// kernel: up_forward.3
= control target key start
LH: loop header
LB: loop body
LE: loop exit
PB: predicated region body
PF: predicated region fallthrough
CT: control target
= control target key end

     0   :  { %s5376_s12 = smov 0   ;;  %s5378_s13 = smov 0   ;;  %s7224_s0 = inlined_call_operand.vmem [shape: bf16[2,1,18,18,128], index: 0, kind: input, shape index: {}]   ;;  %s7225_s1 = inlined_call_operand.vmem [shape: bf16[1152,128], index: 1, kind: input, shape index: {}]   ;;  %s7226_s2 = inlined_call_operand.vmem [shape: bf16[2,1,256,128], index: 2, kind: output, shape index: {0}]   ;;  %s7227_s3 = inlined_call_operand.vmem [shape: f32[2,1,2,128], index: 3, kind: output, shape index: {1}]  }
   0x1   :  { %s5380_s14 = smov 0  }
   0x2 LB: > { %s26_s15 = sadd.s32 1, %s5349_s13  ;;  %p4378_p0 = scmp.ge.s32.totalorder %s5353_s14, 1  ;;  %s5353_s14 = sphi %s5380_s14, %s14_s14   ;;  %s5349_s13 = sphi %s5378_s13, %s7289_s13   ;;  %s5345_s12 = sphi %s5376_s12, %s7288_s12  }
   0x3   : > { %p28_p1 = scmp.ge.s32.totalorder %s26_s15, 2  ;;  %p162_p2 = scmp.lt.s32.totalorder %s5353_s14, 3 }
   0x5   : > { %s7291_s15 = smov (%p28_p1, %s26_s15), 0  ;;  %p163_p3 = pnand %p4378_p0, %p162_p2 }
   0x7   : > { %166 = sbr.rel (%p163_p3) target bundleno = 947 (0x3b3), region = 28 }
   0xc   : > { %v5097_v0 = vld [vmem:[%s7225_s1 + $0x38] sm:$0xff]  ;;  %p201_p4 = scmp.lt.s32.totalorder %s5345_s12, 1  ;;  %v5096_v2 = vld [vmem:[%s7225_s1 + $0x30] sm:$0xff]  ;;  %v5095_v4 = vld [vmem:[%s7225_s1 + $0x28] sm:$0xff]  ;;  %vm274_vm0 = vsmask.f32 3328 }
   0xd   : > { %v5105_v1 = vld [vmem:[%s7225_s1 + $0x78] sm:$0xff]  ;;  %5257 = vmatpush.bf16.msra.mxu2 %v5097_v0  ;;  %5258 = vmatpush.bf16.msra.mxu3 %v5097_v0  ;;  %v5104_v3 = vld [vmem:[%s7225_s1 + $0x70] sm:$0xff]  ;;  %v5103_v5 = vld [vmem:[%s7225_s1 + $0x68] sm:$0xff]  ;;  %vm275_vm1 = vsmask.f32 7440  ;;  %vm725_vm3 = vcmask 1042432  }
   0xe   : > { %s7293_s12 = smov (!%p201_p4, %s5345_s12), 1  ;;  %3347 = vmatpush.bf16.msra.mxu1 %v5105_v1  ;;  %3258 = vmatpush.bf16.msra.mxu0 %v5097_v0  ;;  %v5094_v12 = vld [vmem:[%s7225_s1 + $0x20] sm:$0xff]  ;;  %v5093_v19 = vld [vmem:[%s7225_s1 + $0x18] sm:$0xff]  ;;  %v5092_v24 = vld [vmem:[%s7225_s1 + $0x10] sm:$0xff]  ;;  %vm726_vm4 = vcmask 1046532   ;;  %vm4238_vm6 = vcmask 1040384  }
   0xf   : > { %s5273_s24 = smul.u32 216, %s7293_s12  ;;  %v5102_v13 = vld [vmem:[%s7225_s1 + $0x60] sm:$0xff]  ;;  %v5101_v20 = vld [vmem:[%s7225_s1 + $0x58] sm:$0xff]  ;;  %v5100_v26 = vld [vmem:[%s7225_s1 + $0x50] sm:$0xff]  ;;  %s5041_s5 = sshll.u32 %s7293_s12, 7 }
  0x10   : > { %vm5452_vm2 = vmor %vm274_vm0, %vm275_vm1  ;;  %v5091_v34 = vld [vmem:[%s7225_s1 + $0x8] sm:$0xff]  ;;  %v5090_v42 = vld [vmem:[%s7225_s1] sm:$0xff]  ;;  %s6883_s8 = scalar_lea.vmem %s7226_s2, %s5041_s5 }
  0x11   : > { %5259 = vmatpush.bf16.msra.mxu2 %v5096_v2  ;;  %5260 = vmatpush.bf16.msra.mxu3 %v5096_v2  ;;  %s5415_s29 = scalar_lea.vmem %s7224_s0, %s5273_s24  ;;  %v5099_v37 = vld [vmem:[%s7225_s1 + $0x48] sm:$0xff]  ;;  %v5098_v47 = vld [vmem:[%s7225_s1 + $0x40] sm:$0xff]  ;;  %vm5627_vm5 = vmor %vm725_vm3, %vm726_vm4 }
  0x12   : > { %3348 = vmatpush.bf16.msra.mxu1 %v5104_v3  ;;  %3259 = vmatpush.bf16.msra.mxu0 %v5096_v2  ;;  %v226_v6 = vld [vmem:[%s5415_s29] sm:$0xf]  ;;  %v5422_v7 = vld [vmem:[%s5415_s29 + $0x4] sm:$0xf]  ;;  %v5433_v18 = vld [vmem:[%s5415_s29 + $0x8] sm:$0x1] }
  0x13   : > { %v278_v8 = vshrl.u32 %v226_v6, 16  ;;  %v281_v9 = vshll.u32 %v226_v6, 16  ;;  %v287_v10 = vshll.u32 %v5422_v7, 16  ;;  %v291_v11 = vshrl.u32 %v5422_v7, 16  ;;  %v228_v25 = vld [vmem:[%s5415_s29 + $0xc] sm:$0xf] }
  0x14   : > { %v297_v23 = vshll.u32 %v5433_v18, 16  ;;  %v5450_v30 = vld [vmem:[%s5415_s29 + $0x10] sm:$0xf]  ;;  %v302_v32 = vshrl.u32 %v228_v25, 16  ;;  %v305_v33 = vshll.u32 %v228_v25, 16  ;;  %v5047_v49 = vld [vmem:[%s5415_s29 + $0x3c] sm:$0xff] }
  0x15   : > { %5261 = vmatpush.bf16.msra.mxu2 %v5095_v4  ;;  %5262 = vmatpush.bf16.msra.mxu3 %v5095_v4  ;;  %v280_v14 = vrot.slane %v278_v8, 4  ;;  %v283_v15 = vrot.slane %v281_v9, 5  ;;  %v289_v16 = vrot.slane %v287_v10, 5  ;;  %v293_v17 = vrot.slane %v291_v11, 4  ;;  %v5475_v48 = vld [vmem:[%s5415_s29 + $0x14] sm:$0x1] }
  0x16   : > { %3349 = vmatpush.bf16.msra.mxu1 %v5103_v5  ;;  %3260 = vmatpush.bf16.msra.mxu0 %v5095_v4  ;;  %v299_v29 = vrot.slane %v297_v23, 5  ;;  %v311_v35 = vshll.u32 %v5450_v30, 16  ;;  %v315_v36 = vshrl.u32 %v5450_v30, 16  ;;  %v304_v40 = vrot.slane %v302_v32, 4  ;;  %v5052_v50 = vld [vmem:[%s5415_s29 + $0x78] sm:$0xff]  ;;  %v5042_v52 = vld [vmem:[%s5415_s29] sm:$0xff] }
  0x17   : > { %v284_v21 = vor.u32 %v283_v15, %v280_v14  ;;  %v294_v22 = vor.u32 %v293_v17, %v289_v16  ;;  %v307_v41 = vrot.slane %v305_v33, 5  ;;  %v321_v55 = vshll.u32 %v5475_v48, 16  ;;  %v230_v59 = vld [vmem:[%s5415_s29 + $0x18] sm:$0xf]  ;;  %v5483_v60 = vld [vmem:[%s5415_s29 + $0x1c] sm:$0xf] }
  0x18   : > { %v313_v45 = vrot.slane %v311_v35, 5  ;;  %v317_v46 = vrot.slane %v315_v36, 4  ;;  %v326_v63 = vshrl.u32 %v230_v59, 16  ;;  %v329_v0 = vshll.u32 %v230_v59, 16  ;;  %v5492_v10 = vld [vmem:[%s5415_s29 + $0x20] sm:$0x1] }
  0x19   : > { %5263 = vmatpush.bf16.msra.mxu2 %v5094_v12  ;;  %5264 = vmatpush.bf16.msra.mxu3 %v5094_v12  ;;  %v285_v27 = vrot.slane %v284_v21, 4  ;;  %v295_v28 = vrot.slane %v294_v22, 4  ;;  %v308_v53 = vor.u32 %v307_v41, %v304_v40  ;;  %v323_v58 = vrot.slane %v321_v55, 5  ;;  %v5048_v11 = vld [vmem:[%s5415_s29 + $0x48] sm:$0xff]  ;;  %v232_v23 = vld [vmem:[%s5415_s29 + $0x24] sm:$0xf] }
  0x1a   : > { %3350 = vmatpush.bf16.msra.mxu1 %v5102_v13  ;;  %3261 = vmatpush.bf16.msra.mxu0 %v5094_v12  ;;  %v318_v54 = vor.u32 %v317_v46, %v313_v45  ;;  %v335_v1 = vshll.u32 %v5483_v60, 16  ;;  %v339_v2 = vshrl.u32 %v5483_v60, 16  ;;  %v328_v5 = vrot.slane %v326_v63, 4  ;;  %v5053_v12 = vld [vmem:[%s5415_s29 + $0x84] sm:$0xff]  ;;  %v5043_v14 = vld [vmem:[%s5415_s29 + $0xc] sm:$0xff]  ;;  %v5044_v46 = vld [vmem:[%s5415_s29 + $0x18] sm:$0xff] }
  0x1b   : > { %v290_v38 = vsel %vm5452_vm2, %v285_v27, %v289_v16  ;;  %v300_v39 = vsel %vm5452_vm2, %v295_v28, %v299_v29  ;;  %v309_v56 = vrot.slane %v308_v53, 4  ;;  %v331_v6 = vrot.slane %v329_v0, 5  ;;  %v5506_v25 = vld [vmem:[%s5415_s29 + $0x28] sm:$0xf]  ;;  %v5110_v41 = vld [vmem:[%s7225_s1 + $0xa0] sm:$0xff]  ;;  %v5129_v53 = vld [vmem:[%s7225_s1 + $0x138] sm:$0xff] }
  0x1c   : > { %v2138_v43 = vunpack.c.l.b16 %v290_v38  ;;  %v2139_v44 = vunpack.c.l.b16 %v300_v39  ;;  %v319_v57 = vrot.slane %v318_v54, 4  ;;  %v337_v8 = vrot.slane %v335_v1, 5  ;;  %v234_v55 = vld [vmem:[%s5415_s29 + $0x30] sm:$0xf] }
  0x1d   : > { %5265 = vmatpush.bf16.msra.mxu2 %v5093_v19  ;;  %5266 = vmatpush.bf16.msra.mxu3 %v5093_v19  ;;  %v314_v61 = vsel %vm5452_vm2, %v309_v56, %v313_v45  ;;  %v341_v9 = vrot.slane %v339_v2, 4  ;;  %v332_v15 = vor.u32 %v331_v6, %v328_v5  ;;  %v345_v17 = vshll.u32 %v5492_v10, 16  ;;  %v5108_v59 = vld [vmem:[%s7225_s1 + $0x90] sm:$0xff]  ;;  %v5107_v5 = vld [vmem:[%s7225_s1 + $0x88] sm:$0xff] }
  0x1e   : > { %3351 = vmatpush.bf16.msra.mxu1 %v5101_v20  ;;  %3262 = vmatpush.bf16.msra.mxu0 %v5093_v19  ;;  %v2170_v51 = vpack.c.b16 %v2139_v44, %v2138_v43  ;;  %v324_v62 = vsel %vm5452_vm2, %v319_v57, %v323_v58  ;;  %v2140_v3 = vunpack.c.l.b16 %v314_v61  ;;  %v5113_v19 = vld [vmem:[%s7225_s1 + $0xb8] sm:$0xff]  ;;  %v353_v27 = vshll.u32 %v232_v23, 16  ;;  %v5054_v44 = vld [vmem:[%s5415_s29 + $0x90] sm:$0xff]  ;;  %v5119_v6 = vld [vmem:[%s7225_s1 + $0xe8] sm:$0xff] }
  0x1f   : > { %v2141_v4 = vunpack.c.l.b16 %v324_v62  ;;  %v342_v16 = vor.u32 %v341_v9, %v337_v8  ;;  %v333_v20 = vrot.slane %v332_v15, 4  ;;  %v347_v22 = vrot.slane %v345_v17, 5  ;;  %v5049_v43 = vld [vmem:[%s5415_s29 + $0x54] sm:$0xff]  ;;  %v5106_v17 = vld [vmem:[%s7225_s1 + $0x80] sm:$0xff] }
  0x20   : > { %v359_v32 = vshll.u32 %v5506_v25, 16  ;;  %v363_v33 = vshrl.u32 %v5506_v25, 16  ;;  %v355_v38 = vrot.slane %v353_v27, 5  ;;  %v5538_v58 = vld [vmem:[%s5415_s29 + $0x34] sm:$0xf]  ;;  %v374_v63 = vshrl.u32 %v234_v55, 16 }
  0x21   : > { %5267 = vmatpush.bf16.msra.mxu2 %v5092_v24  ;;  %5268 = vmatpush.bf16.msra.mxu3 %v5092_v24  ;;  %v2171_v13 = vpack.c.b16 %v2141_v4, %v2140_v3  ;;  %v343_v21 = vrot.slane %v342_v16, 4  ;;  %v338_v28 = vsel %vm5452_vm2, %v333_v20, %v337_v8  ;;  %v5120_v61 = vld [vmem:[%s7225_s1 + $0xf0] sm:$0xff]  ;;  %v377_v0 = vshll.u32 %v234_v55, 16  ;;  %v5127_v8 = vld [vmem:[%s7225_s1 + $0x128] sm:$0xff]  ;;  %v5565_v16 = vld [vmem:[%s5415_s29 + $0x38] sm:$0x1] }
  0x22   : > { %3352 = vmatpush.bf16.msra.mxu1 %v5100_v26  ;;  %3263 = vmatpush.bf16.msra.mxu0 %v5092_v24  ;;  %v5112_v24 = vld [vmem:[%s7225_s1 + $0xb0] sm:$0xff]  ;;  %v350_v26 = vshrl.u32 %v232_v23, 16  ;;  %v2142_v35 = vunpack.c.l.b16 %v338_v28  ;;  %v361_v39 = vrot.slane %v359_v32, 5  ;;  %v365_v40 = vrot.slane %v363_v33, 4  ;;  %v5126_v20 = vld [vmem:[%s7225_s1 + $0x120] sm:$0xff]  ;;  %v5117_v33 = vld [vmem:[%s7225_s1 + $0xd8] sm:$0xff] }
  0x23   : > { %v348_v29 = vsel %vm5452_vm2, %v343_v21, %v347_v22  ;;  %v5128_v62 = vld [vmem:[%s7225_s1 + $0x130] sm:$0xff]  ;;  %v383_v1 = vshll.u32 %v5538_v58, 16  ;;  %v387_v2 = vshrl.u32 %v5538_v58, 16  ;;  %v376_v9 = vrot.slane %v374_v63, 4  ;;  %v5050_v21 = vld [vmem:[%s5415_s29 + $0x60] sm:$0xff] }
  0x24   : > { %v2143_v36 = vunpack.c.l.b16 %v348_v29  ;;  %v5055_v22 = vld [vmem:[%s5415_s29 + $0x9c] sm:$0xff]  ;;  %v393_v28 = vshll.u32 %v5565_v16, 16 }
  0x25   : > { %5269 = vmatpush.bf16.msra.mxu2 %v5091_v34  ;;  %5270 = vmatpush.bf16.msra.mxu3 %v5091_v34  ;;  %v389_v15 = vrot.slane %v387_v2, 4  ;;  %v236_v32 = vld [vmem:[%s5415_s29 + $0x3c] sm:$0xf] }
  0x26   : > { %3353 = vmatpush.bf16.msra.mxu1 %v5099_v37  ;;  %3264 = vmatpush.bf16.msra.mxu0 %v5091_v34  ;;  %v5111_v34 = vld [vmem:[%s7225_s1 + $0xa8] sm:$0xff]  ;;  %v352_v37 = vrot.slane %v350_v26, 4  ;;  %v2172_v45 = vpack.c.b16 %v2143_v36, %v2142_v35  ;;  %v395_v36 = vrot.slane %v393_v28, 5 }
  0x27   : > { %v5045_v26 = vld [vmem:[%s5415_s29 + $0x24] sm:$0xff] }
  0x29   : > { %5271 = vmatpush.bf16.msra.mxu2 %v5090_v42  ;;  %5272 = vmatpush.bf16.msra.mxu3 %v5090_v42 }
  0x2a   : > { %3354 = vmatpush.bf16.msra.mxu1 %v5098_v47  ;;  %3265 = vmatpush.bf16.msra.mxu0 %v5090_v42  ;;  %v5521_v42 = vld [vmem:[%s5415_s29 + $0x2c] sm:$0x1]  ;;  %v356_v47 = vor.u32 %v355_v38, %v352_v37  ;;  %v5588_v37 = vld [vmem:[%s5415_s29 + $0x40] sm:$0xf]  ;;  %v5116_v38 = vld [vmem:[%s7225_s1 + $0xd0] sm:$0xff] }
  0x2c   : > { %3291 = vmatmul.bf16.vlgmr.msra.gmra.mxu2 %v5047_v49  ;;  %3316 = vmatmul.bf16.vlgmr.msra.gmra.mxu3 %v5052_v50  ;;  %v366_v49 = vor.u32 %v365_v40, %v361_v39  ;;  %v369_v50 = vshll.u32 %v5521_v42, 16  ;;  %v357_v54 = vrot.slane %v356_v47, 4  ;;  %v401_v40 = vshll.u32 %v236_v32, 16 }
  0x2d   : > { %3355 = vmatmul.bf16.vlgmr.msra.gmra.mxu1 %v2170_v51  ;;  %3266 = vmatmul.bf16.vlgmr.msra.gmra.mxu0 %v5042_v52  ;;  %v5109_v51 = vld [vmem:[%s7225_s1 + $0x98] sm:$0xff] }
  0x2e   : > { %3436 = vmatpush.bf16.msrb.mxu2 %v5113_v19  ;;  %v5121_v52 = vld [vmem:[%s7225_s1 + $0xf8] sm:$0xff]  ;;  %v367_v56 = vrot.slane %v366_v49, 4  ;;  %v371_v57 = vrot.slane %v369_v50, 5  ;;  %3614 = vmatpush.bf16.msrb.mxu0 %v5129_v53  ;;  %v362_v3 = vsel %vm5452_vm2, %v357_v54, %v361_v39  ;;  %v5118_v19 = vld [vmem:[%s7225_s1 + $0xe0] sm:$0xff]  ;;  %v398_v39 = vshrl.u32 %v236_v32, 16 }
  0x2f   : > { %3525 = vmatpush.bf16.msrb.mxu3 %v5121_v52  ;;  %v4400_v49 = vld [vmem:[%s5415_s29 + $0x10] sm:$0xf]  ;;  %v5115_v52 = vld [vmem:[%s7225_s1 + $0xc8] sm:$0xff]  ;;  %v403_v55 = vrot.slane %v401_v40, 5 }
  0x30   : > { %v372_v4 = vsel %vm5452_vm2, %v367_v56, %v371_v57  ;;  %v400_v54 = vrot.slane %v398_v39, 4  ;;  %v5123_v56 = vld [vmem:[%s7225_s1 + $0x108] sm:$0xff]  ;;  %v899_v57 = vshll.u32 %v4400_v49, 16  ;;  %v903_v63 = vshrl.u32 %v4400_v49, 16 }
  0x32   : > { %3437 = vmatpush.bf16.msrb.mxu2 %v5112_v24  ;;  %3615 = vmatpush.bf16.msrb.mxu0 %v5128_v62 }
  0x33   : > { %3526 = vmatpush.bf16.msrb.mxu3 %v5120_v61 }
  0x36   : > { %3438 = vmatpush.bf16.msrb.mxu2 %v5111_v34  ;;  %3616 = vmatpush.bf16.msrb.mxu0 %v5127_v8  ;;  %v5125_v34 = vld [vmem:[%s7225_s1 + $0x118] sm:$0xff]  ;;  %v5122_v8 = vld [vmem:[%s7225_s1 + $0x100] sm:$0xff] }
  0x37   : > { %3527 = vmatpush.bf16.msrb.mxu3 %v5119_v6  ;;  %v404_v6 = vor.u32 %v403_v55, %v400_v54 }
  0x3a   : > { %3439 = vmatpush.bf16.msrb.mxu2 %v5110_v41  ;;  %3617 = vmatpush.bf16.msrb.mxu0 %v5126_v20  ;;  %v5124_v41 = vld [vmem:[%s7225_s1 + $0x110] sm:$0xff] }
  0x3b   : > { %3528 = vmatpush.bf16.msrb.mxu3 %v5118_v19  ;;  %v730_v19 = vrot.slane %v5422_v7, 5  ;;  %v5046_v20 = vld [vmem:[%s5415_s29 + $0x30] sm:$0xff] }
  0x3c   : > { %3296 = vmatmul.bf16.gmra.mxu2 %v5048_v11  ;;  %3321 = vmatmul.bf16.gmra.mxu3 %v5053_v12  ;;  %v379_v11 = vrot.slane %v377_v0, 5  ;;  %v2144_v12 = vunpack.c.l.b16 %v362_v3  ;;  %v5611_v0 = vld [vmem:[%s5415_s29 + $0x44] sm:$0x1] }
  0x3d   : > { %3360 = vmatmul.bf16.gmra.mxu1 %v2171_v13  ;;  %3271 = vmatmul.bf16.gmra.mxu0 %v5043_v14  ;;  %v2145_v13 = vunpack.c.l.b16 %v372_v4  ;;  %v385_v14 = vrot.slane %v383_v1, 5  ;;  %v5114_v3 = vld [vmem:[%s7225_s1 + $0xc0] sm:$0xff]  ;;  %v4431_v4 = vld [vmem:[%s5415_s29 + $0x14] sm:$0x1]  ;;  %v732_v7 = vrot.slane %v730_v19, 4 }
  0x3e   : > { %3440 = vmatpush.bf16.msrb.mxu2 %v5109_v51  ;;  %v380_v23 = vor.u32 %v379_v11, %v376_v9  ;;  %3618 = vmatpush.bf16.msrb.mxu0 %v5125_v34  ;;  %v905_v9 = vrot.slane %v903_v63, 4  ;;  %v5051_v11 = vld [vmem:[%s5415_s29 + $0x6c] sm:$0xff] }
  0x3f   : > { %v2173_v24 = vpack.c.b16 %v2145_v13, %v2144_v12  ;;  %v390_v27 = vor.u32 %v389_v15, %v385_v14  ;;  %3529 = vmatpush.bf16.msrb.mxu3 %v5117_v33  ;;  %v5056_v12 = vld [vmem:[%s5415_s29 + $0xa8] sm:$0xff]  ;;  %v417_v15 = vshll.u32 %v5611_v0, 16  ;;  %v733_v33 = vrot.slane %v5433_v18, 5  ;;  %v4401_v18 = vld [vmem:[%s5415_s29 + $0x18] sm:$0xf] }
  0x40   : > { %v381_v29 = vrot.slane %v380_v23, 4  ;;  %v5633_v34 = vld [vmem:[%s5415_s29 + $0x4c] sm:$0xf] }
  0x41   : > { %v391_v35 = vrot.slane %v390_v27, 4  ;;  %v238_v27 = vld [vmem:[%s5415_s29 + $0x48] sm:$0xf]  ;;  %v734_v49 = vsel %vm5627_vm5, %v732_v7, %v733_v33 }
  0x42   : > { %3441 = vmatpush.bf16.msrb.mxu2 %v5108_v59  ;;  %3619 = vmatpush.bf16.msrb.mxu0 %v5124_v41  ;;  %v422_v39 = vshrl.u32 %v238_v27, 16  ;;  %v425_v40 = vshll.u32 %v238_v27, 16 }
  0x43   : > { %v396_v47 = vsel %vm5452_vm2, %v391_v35, %v395_v36  ;;  %3530 = vmatpush.bf16.msrb.mxu3 %v5116_v38 }
  0x44   : > { %v2147_v59 = vunpack.c.l.b16 %v396_v47 }
  0x46   : > { %3442 = vmatpush.bf16.msrb.mxu2 %v5107_v5  ;;  %v901_v5 = vrot.slane %v899_v57, 5  ;;  %3620 = vmatpush.bf16.msrb.mxu0 %v5123_v56 }
  0x47   : > { %3531 = vmatpush.bf16.msrb.mxu3 %v5115_v52  ;;  %v914_v52 = vshrl.u32 %v4401_v18, 16 }
  0x48   : > { %v906_v23 = vor.u32 %v905_v9, %v901_v5 }
  0x4a   : > { %3443 = vmatpush.bf16.msrb.mxu2 %v5106_v17  ;;  %v661_v17 = vld [vmem:[%s5415_s29] sm:$0xe]  ;;  %3621 = vmatpush.bf16.msrb.mxu0 %v5122_v8  ;;  %v907_v36 = vrot.slane %v906_v23, 4 }
  0x4b   : > { %3532 = vmatpush.bf16.msrb.mxu3 %v5114_v3  ;;  %v5652_v3 = vld [vmem:[%s5415_s29 + $0x50] sm:$0x1] }
  0x4c   : > { %3301 = vmatmul.bf16.gmra.mxu2 %v5049_v43  ;;  %3326 = vmatmul.bf16.gmra.mxu3 %v5054_v44  ;;  %v386_v43 = vsel %vm5452_vm2, %v381_v29, %v385_v14  ;;  %v407_v44 = vshll.u32 %v5588_v37, 16  ;;  %v419_v29 = vrot.slane %v417_v15, 5  ;;  %v441_v15 = vshll.u32 %v5652_v3, 16 }
  0x4d   : > { %3365 = vmatmul.bf16.gmra.mxu1 %v2172_v45  ;;  %3276 = vmatmul.bf16.gmra.mxu0 %v5044_v46  ;;  %v411_v45 = vshrl.u32 %v5588_v37, 16  ;;  %v4399_v46 = vld [vmem:[%s5415_s29 + $0xc] sm:$0xf]  ;;  %v2146_v53 = vunpack.c.l.b16 %v386_v43 }
  0x4e   : > { %v890_v50 = vshrl.u32 %v4399_v46, 16  ;;  %v893_v51 = vshll.u32 %v4399_v46, 16  ;;  %v409_v61 = vrot.slane %v407_v44, 5  ;;  %v431_v44 = vshll.u32 %v5633_v34, 16  ;;  %v4402_v46 = vld [vmem:[%s5415_s29 + $0x1c] sm:$0xf] }
  0x4f   : > { %v413_v62 = vrot.slane %v411_v45, 4  ;;  %v2174_v13 = vpack.c.b16 %v2147_v59, %v2146_v53  ;;  %v435_v45 = vshrl.u32 %v5633_v34, 16  ;;  %v917_v53 = vshll.u32 %v4401_v18, 16 }
  0x50   : > { %v892_v1 = vrot.slane %v890_v50, 4  ;;  %v895_v2 = vrot.slane %v893_v51, 5  ;;  %v923_v56 = vshll.u32 %v4402_v46, 16  ;;  %v927_v57 = vshrl.u32 %v4402_v46, 16  ;;  %v4403_v46 = vld [vmem:[%s5415_s29 + $0x24] sm:$0xf] }
  0x51   : > { %v414_v14 = vor.u32 %v413_v62, %v409_v61  ;;  %v424_v59 = vrot.slane %v422_v39, 4  ;;  %v433_v62 = vrot.slane %v431_v44, 5  ;;  %v437_v63 = vrot.slane %v435_v45, 4 }
  0x52   : > { %v919_v8 = vrot.slane %v917_v53, 5  ;;  %v925_v9 = vrot.slane %v923_v56, 5  ;;  %v443_v7 = vrot.slane %v441_v15, 5 }
  0x53   : > { %v415_v28 = vrot.slane %v414_v14, 4  ;;  %v438_v14 = vor.u32 %v437_v63, %v433_v62 }
  0x55   : > { %v420_v47 = vsel %vm5452_vm2, %v415_v28, %v419_v29  ;;  %v439_v29 = vrot.slane %v438_v14, 4 }
  0x5c   : > { %3306 = vmatmul.bf16.gmra.mxu2 %v5050_v21  ;;  %3331 = vmatmul.bf16.gmra.mxu3 %v5055_v22  ;;  %v896_v21 = vor.u32 %v895_v2, %v892_v1  ;;  %v909_v22 = vshll.u32 %v4431_v4, 16  ;;  %v2149_v1 = vunpack.c.l.b16 %v420_v47  ;;  %v2203_v2 = vunpack.c.l.b16 %v734_v49 }
  0x5d   : > { %3370 = vmatmul.bf16.gmra.mxu1 %v2173_v24  ;;  %3281 = vmatmul.bf16.gmra.mxu0 %v5045_v26  ;;  %v405_v24 = vrot.slane %v404_v6, 4  ;;  %v4383_v26 = vrot.slane %v661_v17, 9  ;;  %v916_v6 = vrot.slane %v914_v52, 4  ;;  %v5057_v17 = vld [vmem:[%s5415_s29 + $0xb4] sm:$0xff]  ;;  %v444_v49 = vsel %vm5452_vm2, %v439_v29, %v443_v7  ;;  %v5690_v29 = vld [vmem:[%s5415_s29 + $0x64] sm:$0xf] }
  0x5e   : > { %v897_v35 = vrot.slane %v896_v21, 4  ;;  %v911_v38 = vrot.slane %v909_v22, 5  ;;  %v737_v21 = vrot.slane %v5450_v30, 5  ;;  %v662_v22 = vld [vmem:[%s5415_s29 + $0xc] sm:$0xe]  ;;  %v740_v30 = vrot.slane %v5475_v48, 5 }
  0x5f   : > { %v410_v41 = vsel %vm5452_vm2, %v405_v24, %v409_v61  ;;  %v731_v43 = vsel %vm5627_vm5, %v4383_v26, %v730_v19  ;;  %v427_v61 = vrot.slane %v425_v40, 5  ;;  %v920_v24 = vor.u32 %v919_v8, %v916_v6 }
  0x60   : > { %v902_v50 = vsel %vm5452_vm2, %v897_v35, %v901_v5  ;;  %v912_v51 = vsel %vm5452_vm2, %v907_v36, %v911_v38  ;;  %v2148_v54 = vunpack.c.l.b16 %v410_v41  ;;  %v2202_v55 = vunpack.c.l.b16 %v731_v43  ;;  %v240_v36 = vld [vmem:[%s5415_s29 + $0x54] sm:$0xf]  ;;  %v5661_v38 = vld [vmem:[%s5415_s29 + $0x58] sm:$0xf] }
  0x61   : > { %v2346_v4 = vunpack.c.l.b16 %v902_v50  ;;  %v2347_v5 = vunpack.c.l.b16 %v912_v51  ;;  %v4384_v33 = vrot.slane %v662_v22, 9  ;;  %v739_v35 = vrot.slane %v737_v21, 4  ;;  %v4404_v50 = vld [vmem:[%s5415_s29 + $0x28] sm:$0xf]  ;;  %v5058_v22 = vld [vmem:[%s5415_s29 + $0xc] sm:$0xff] }
  0x62   : > { %v2175_v19 = vpack.c.b16 %v2149_v1, %v2148_v54  ;;  %v921_v39 = vrot.slane %v920_v24, 4  ;;  %v446_v43 = vshrl.u32 %v240_v36, 16  ;;  %v449_v44 = vshll.u32 %v240_v36, 16 }
  0x63   : > { %v2378_v23 = vpack.c.b16 %v2347_v5, %v2346_v4  ;;  %v455_v45 = vshll.u32 %v5661_v38, 16  ;;  %v459_v18 = vshrl.u32 %v5661_v38, 16  ;;  %v738_v48 = vsel %vm5627_vm5, %v4384_v33, %v737_v21  ;;  %v5681_v4 = vld [vmem:[%s5415_s29 + $0x5c] sm:$0x1] }
  0x64   : > { %v741_v51 = vsel %vm5627_vm5, %v739_v35, %v740_v30  ;;  %v926_v52 = vsel %vm5452_vm2, %v921_v39, %v925_v9  ;;  %v938_v54 = vshrl.u32 %v4403_v46, 16  ;;  %v947_v56 = vshll.u32 %v4404_v50, 16 }
  0x65   : > { %v461_v63 = vrot.slane %v459_v18, 4  ;;  %v2204_v1 = vunpack.c.l.b16 %v738_v48  ;;  %v2151_v6 = vunpack.c.l.b16 %v444_v49  ;;  %v2348_v8 = vunpack.c.l.b16 %v926_v52 }
  0x66   : > { %v744_v24 = vrot.slane %v5483_v60, 5  ;;  %v483_v18 = vshrl.u32 %v5690_v29, 16 }
  0x6c   : > { %3311 = vmatmul.bf16.gmra.mxu2 %v5051_v11  ;;  %3336 = vmatmul.bf16.gmra.mxu3 %v5056_v12  ;;  %v929_v11 = vrot.slane %v927_v57, 4  ;;  %v4432_v12 = vld [vmem:[%s5415_s29 + $0x20] sm:$0x1]  ;;  %v951_v57 = vshrl.u32 %v4404_v50, 16 }
  0x6d   : > { %3375 = vmatmul.bf16.gmra.mxu1 %v2174_v13  ;;  %3286 = vmatmul.bf16.gmra.mxu0 %v5046_v20  ;;  %v428_v13 = vor.u32 %v427_v61, %v424_v59  ;;  %v2234_v20 = vpack.c.b16 %v2203_v2, %v2202_v55  ;;  %v933_v27 = vshll.u32 %v4432_v12, 16  ;;  %v941_v55 = vshll.u32 %v4403_v46, 16 }
  0x6e   : > { %v930_v26 = vor.u32 %v929_v11, %v925_v9  ;;  %v448_v59 = vrot.slane %v446_v43, 4  ;;  %v451_v61 = vrot.slane %v449_v44, 5  ;;  %v2205_v2 = vunpack.c.l.b16 %v741_v51  ;;  %v4405_v51 = vld [vmem:[%s5415_s29 + $0x30] sm:$0xf] }
  0x6f   : > { %v429_v28 = vrot.slane %v428_v13, 4  ;;  %v935_v41 = vrot.slane %v933_v27, 5  ;;  %v940_v11 = vrot.slane %v938_v54, 4  ;;  %v943_v12 = vrot.slane %v941_v55, 5  ;;  %v4406_v55 = vld [vmem:[%s5415_s29 + $0x34] sm:$0xf] }
  0x70   : > { %v931_v40 = vrot.slane %v930_v26, 4  ;;  %v949_v13 = vrot.slane %v947_v56, 5  ;;  %v953_v14 = vrot.slane %v951_v57, 4  ;;  %v452_v15 = vor.u32 %v451_v61, %v448_v59 }
  0x71   : > { %v434_v47 = vsel %vm5452_vm2, %v429_v28, %v433_v62  ;;  %v457_v62 = vrot.slane %v455_v45, 5  ;;  %v2235_v21 = vpack.c.b16 %v2205_v2, %v2204_v1  ;;  %v242_v28 = vld [vmem:[%s5415_s29 + $0x60] sm:$0xf]  ;;  %v944_v7 = vor.u32 %v943_v12, %v940_v11 }
  0x72   : > { %v936_v53 = vsel %vm5452_vm2, %v931_v40, %v935_v41  ;;  %v2150_v5 = vunpack.c.l.b16 %v434_v47  ;;  %v954_v33 = vor.u32 %v953_v14, %v949_v13  ;;  %v453_v36 = vrot.slane %v452_v15, 4 }
  0x73   : > { %v2349_v9 = vunpack.c.l.b16 %v936_v53  ;;  %v746_v41 = vrot.slane %v744_v24, 4  ;;  %v747_v43 = vrot.slane %v5492_v10, 5  ;;  %v470_v44 = vshrl.u32 %v242_v28, 16 }
  0x74   : > { %v2176_v26 = vpack.c.b16 %v2151_v6, %v2150_v5  ;;  %v473_v60 = vshll.u32 %v242_v28, 16  ;;  %v479_v45 = vshll.u32 %v5690_v29, 16  ;;  %v945_v46 = vrot.slane %v944_v7, 4  ;;  %v664_v28 = vld [vmem:[%s5415_s29 + $0x24] sm:$0xe] }
  0x75   : > { %v2379_v27 = vpack.c.b16 %v2349_v9, %v2348_v8  ;;  %v955_v47 = vrot.slane %v954_v33, 4  ;;  %v458_v50 = vsel %vm5452_vm2, %v453_v36, %v457_v62  ;;  %v748_v52 = vsel %vm5627_vm5, %v746_v41, %v747_v43  ;;  %v5710_v8 = vld [vmem:[%s5415_s29 + $0x68] sm:$0x1] }
  0x76   : > { %v472_v53 = vrot.slane %v470_v44, 4  ;;  %v475_v54 = vrot.slane %v473_v60, 5  ;;  %v962_v56 = vshrl.u32 %v4405_v51, 16  ;;  %v965_v57 = vshll.u32 %v4405_v51, 16  ;;  %v244_v60 = vld [vmem:[%s5415_s29 + $0x6c] sm:$0xf] }
  0x77   : > { %v971_v59 = vshll.u32 %v4406_v55, 16  ;;  %v975_v61 = vshrl.u32 %v4406_v55, 16  ;;  %v950_v1 = vsel %vm5452_vm2, %v945_v46, %v949_v13  ;;  %v2152_v5 = vunpack.c.l.b16 %v458_v50 }
  0x78   : > { %v2207_v11 = vunpack.c.l.b16 %v748_v52  ;;  %v964_v12 = vrot.slane %v962_v56, 4  ;;  %v967_v14 = vrot.slane %v965_v57, 5  ;;  %v2350_v15 = vunpack.c.l.b16 %v950_v1  ;;  %v4407_v52 = vld [vmem:[%s5415_s29 + $0x3c] sm:$0xf]  ;;  %v4408_v57 = vld [vmem:[%s5415_s29 + $0x40] sm:$0xf] }
  0x79   : > { %v4386_v43 = vrot.slane %v664_v28, 9  ;;  %v497_v51 = vshll.u32 %v244_v60, 16 }
  0x7a   : > { %v968_v7 = vor.u32 %v967_v14, %v964_v12 }
  0x7c   : > { %3341 = vmatmul.bf16.gmra.mxu3 %v5057_v17  ;;  %3444 = vmatmul.bf16.vlgmr.msrb.gmra.mxu2 %v2234_v20  ;;  %v462_v17 = vor.u32 %v461_v63, %v457_v62  ;;  %v4433_v20 = vld [vmem:[%s5415_s29 + $0x2c] sm:$0x1]  ;;  %v481_v62 = vrot.slane %v479_v45, 5  ;;  %v485_v63 = vrot.slane %v483_v18, 4  ;;  %v5720_v45 = vld [vmem:[%s5415_s29 + $0x70] sm:$0xf] }
  0x7d   : > { %3380 = vmatmul.bf16.gmra.mxu1 %v2175_v19  ;;  %3622 = vmatmul.bf16.vlgmr.msrb.gmra.mxu0 %v2378_v23  ;;  %v465_v19 = vshll.u32 %v5681_v4, 16  ;;  %v663_v23 = vld [vmem:[%s5415_s29 + $0x18] sm:$0xe]  ;;  %v957_v35 = vshll.u32 %v4433_v20, 16  ;;  %v973_v20 = vrot.slane %v971_v59, 5  ;;  %v969_v18 = vrot.slane %v968_v7, 4 }
  0x7e   : > { %v463_v30 = vrot.slane %v462_v17, 4  ;;  %v4385_v40 = vrot.slane %v663_v23, 9  ;;  %v486_v13 = vor.u32 %v485_v63, %v481_v62  ;;  %v489_v23 = vshll.u32 %v5710_v8, 16 }
  0x7f   : > { %v467_v39 = vrot.slane %v465_v19, 5  ;;  %v959_v49 = vrot.slane %v957_v35, 5  ;;  %v4434_v19 = vld [vmem:[%s5415_s29 + $0x38] sm:$0x1]  ;;  %v974_v55 = vsel %vm5452_vm2, %v969_v18, %v973_v20  ;;  %v986_v59 = vshrl.u32 %v4407_v52, 16 }
  0x80   : > { %v745_v10 = vsel %vm5627_vm5, %v4385_v40, %v744_v24  ;;  %v751_v24 = vrot.slane %v5506_v25, 5  ;;  %v981_v35 = vshll.u32 %v4434_v19, 16  ;;  %v487_v40 = vrot.slane %v486_v13, 4 }
  0x81   : > { %v468_v48 = vsel %vm5452_vm2, %v463_v30, %v467_v39  ;;  %v960_v2 = vsel %vm5452_vm2, %v955_v47, %v959_v49  ;;  %v2206_v9 = vunpack.c.l.b16 %v745_v10  ;;  %v491_v41 = vrot.slane %v489_v23, 5  ;;  %v4435_v23 = vld [vmem:[%s5415_s29 + $0x44] sm:$0x1] }
  0x82   : > { %v2153_v6 = vunpack.c.l.b16 %v468_v48  ;;  %v2351_v17 = vunpack.c.l.b16 %v960_v2  ;;  %v753_v44 = vrot.slane %v751_v24, 4  ;;  %v754_v25 = vrot.slane %v5521_v42, 5 }
  0x83   : > { %v983_v47 = vrot.slane %v981_v35, 5  ;;  %v492_v50 = vsel %vm5452_vm2, %v487_v40, %v491_v41  ;;  %v494_v48 = vshrl.u32 %v244_v60, 16  ;;  %v503_v10 = vshll.u32 %v5720_v45, 16 }
  0x84   : > { %v2177_v36 = vpack.c.b16 %v2153_v6, %v2152_v5  ;;  %v2380_v30 = vpack.c.b16 %v2351_v17, %v2350_v15  ;;  %v507_v42 = vshrl.u32 %v5720_v45, 16  ;;  %v999_v63 = vshrl.u32 %v4408_v57, 16  ;;  %v5741_v15 = vld [vmem:[%s5415_s29 + $0x74] sm:$0x1] }
  0x85   : > { %v2155_v2 = vunpack.c.l.b16 %v492_v50  ;;  %v496_v5 = vrot.slane %v494_v48, 4  ;;  %v499_v6 = vrot.slane %v497_v51, 5  ;;  %v2352_v17 = vunpack.c.l.b16 %v974_v55  ;;  %v5757_v48 = vld [vmem:[%s5415_s29 + $0x7c] sm:$0xf] }
  0x86   : > { %v1001_v13 = vrot.slane %v999_v63, 4  ;;  %v758_v35 = vrot.slane %v5538_v58, 5  ;;  %v761_v50 = vrot.slane %v5565_v16, 5 }
  0x88   : > { %v760_v58 = vrot.slane %v758_v35, 4 }
  0x8a   : > { %v762_v63 = vsel %vm5627_vm5, %v760_v58, %v761_v50  ;;  %v765_v58 = vrot.slane %v5588_v37, 5 }
  0x8c   : > { %3449 = vmatmul.bf16.gmra.mxu2 %v2235_v21  ;;  %3533 = vmatmul.bf16.vlgmr.msrb.gmra.mxu3 %v5058_v22  ;;  %v977_v21 = vrot.slane %v975_v61, 4  ;;  %v476_v22 = vor.u32 %v475_v54, %v472_v53  ;;  %v752_v53 = vsel %vm5627_vm5, %v4386_v43, %v751_v24  ;;  %v755_v54 = vsel %vm5627_vm5, %v753_v44, %v754_v25 }
  0x8d   : > { %3385 = vmatmul.bf16.gmra.mxu1 %v2176_v26  ;;  %3627 = vmatmul.bf16.gmra.mxu0 %v2379_v27  ;;  %v2236_v26 = vpack.c.b16 %v2207_v11, %v2206_v9  ;;  %v5059_v27 = vld [vmem:[%s5415_s29 + $0x18] sm:$0xff]  ;;  %v989_v61 = vshll.u32 %v4407_v52, 16  ;;  %v5738_v9 = vrot.slane %v503_v10, 5  ;;  %v509_v11 = vrot.slane %v507_v42, 4 }
  0x8e   : > { %v978_v33 = vor.u32 %v977_v21, %v973_v20  ;;  %v477_v39 = vrot.slane %v476_v22, 4  ;;  %v2208_v12 = vunpack.c.l.b16 %v752_v53  ;;  %v2209_v14 = vunpack.c.l.b16 %v755_v54 }
  0x8f   : > { %v988_v20 = vrot.slane %v986_v59, 4  ;;  %v991_v21 = vrot.slane %v989_v61, 5  ;;  %v500_v24 = vor.u32 %v499_v6, %v496_v5  ;;  %v1005_v43 = vshll.u32 %v4435_v23, 16  ;;  %v4409_v59 = vld [vmem:[%s5415_s29 + $0x48] sm:$0xf] }
  0x90   : > { %v979_v46 = vrot.slane %v978_v33, 4  ;;  %v482_v49 = vsel %vm5452_vm2, %v477_v39, %v481_v62  ;;  %v995_v62 = vshll.u32 %v4408_v57, 16  ;;  %v2237_v7 = vpack.c.b16 %v2209_v14, %v2208_v12  ;;  %v5060_v33 = vld [vmem:[%s5415_s29 + $0x24] sm:$0xff]  ;;  %v246_v39 = vld [vmem:[%s5415_s29 + $0x78] sm:$0xf] }
  0x91   : > { %v2154_v1 = vunpack.c.l.b16 %v482_v49  ;;  %v992_v40 = vor.u32 %v991_v21, %v988_v20  ;;  %v501_v18 = vrot.slane %v500_v24, 4  ;;  %v518_v51 = vshrl.u32 %v246_v39, 16 }
  0x92   : > { %v984_v56 = vsel %vm5452_vm2, %v979_v46, %v983_v47  ;;  %v5743_v22 = vrot.slane %v995_v62, 5  ;;  %v521_v10 = vshll.u32 %v246_v39, 16  ;;  %v1007_v53 = vrot.slane %v1005_v43, 5 }
  0x93   : > { %v2353_v19 = vunpack.c.l.b16 %v984_v56  ;;  %v2178_v28 = vpack.c.b16 %v2155_v2, %v2154_v1  ;;  %v993_v42 = vrot.slane %v992_v40, 4  ;;  %v527_v56 = vshll.u32 %v5757_v48, 16  ;;  %v4410_v1 = vld [vmem:[%s5415_s29 + $0x4c] sm:$0xf] }
  0x94   : > { %v1002_v41 = vor.u32 %v1001_v13, %v5743_v22  ;;  %v531_v57 = vshrl.u32 %v5757_v48, 16  ;;  %v506_v16 = vsel %vm5452_vm2, %v501_v18, %v5738_v9  ;;  %v520_v2 = vrot.slane %v518_v51, 4  ;;  %v4436_v18 = vld [vmem:[%s5415_s29 + $0x50] sm:$0x1] }
  0x95   : > { %v523_v5 = vrot.slane %v521_v10, 5  ;;  %v998_v6 = vsel %vm5452_vm2, %v993_v42, %v5743_v22  ;;  %v1010_v14 = vshrl.u32 %v4409_v59, 16  ;;  %v1023_v20 = vshrl.u32 %v4410_v1, 16  ;;  %v5786_v22 = vld [vmem:[%s5415_s29 + $0x80] sm:$0x1] }
  0x96   : > { %v1003_v52 = vrot.slane %v1002_v41, 4  ;;  %v5783_v13 = vrot.slane %v527_v56, 5  ;;  %v533_v23 = vrot.slane %v531_v57, 4  ;;  %v2156_v24 = vunpack.c.l.b16 %v506_v16  ;;  %v248_v10 = vld [vmem:[%s5415_s29 + $0x84] sm:$0xf] }
  0x97   : > { %v1025_v40 = vrot.slane %v1023_v20, 4  ;;  %v5802_v56 = vld [vmem:[%s5415_s29 + $0x88] sm:$0xf]  ;;  %v1029_v16 = vshll.u32 %v4436_v18, 16  ;;  %v767_v37 = vrot.slane %v765_v58, 4 }
  0x9c   : > { %3454 = vmatmul.bf16.gmra.mxu2 %v2236_v26  ;;  %3538 = vmatmul.bf16.gmra.mxu3 %v5059_v27  ;;  %v510_v26 = vor.u32 %v509_v11, %v5738_v9  ;;  %v513_v27 = vshll.u32 %v5741_v15, 16  ;;  %v1008_v9 = vsel %vm5452_vm2, %v1003_v52, %v1007_v53 }
  0x9d   : > { %3390 = vmatmul.bf16.gmra.mxu1 %v2177_v36  ;;  %3632 = vmatmul.bf16.gmra.mxu0 %v2380_v30  ;;  %v665_v36 = vld [vmem:[%s5415_s29 + $0x30] sm:$0xe]  ;;  %v2381_v30 = vpack.c.b16 %v2353_v19, %v2352_v17  ;;  %v1013_v17 = vshll.u32 %v4409_v59, 16  ;;  %v1019_v19 = vshll.u32 %v4410_v1, 16 }
  0x9e   : > { %v511_v46 = vrot.slane %v510_v26, 4  ;;  %v515_v47 = vrot.slane %v513_v27, 5  ;;  %v4387_v49 = vrot.slane %v665_v36, 9  ;;  %v2211_v27 = vunpack.c.l.b16 %v762_v63 }
  0x9f   : > { %v1012_v36 = vrot.slane %v1010_v14, 4  ;;  %v5788_v39 = vrot.slane %v1019_v19, 5 }
  0xa0   : > { %v516_v61 = vsel %vm5452_vm2, %v511_v46, %v515_v47  ;;  %v759_v62 = vsel %vm5627_vm5, %v4387_v49, %v758_v35  ;;  %v2355_v35 = vunpack.c.l.b16 %v1008_v9  ;;  %v5061_v47 = vld [vmem:[%s5415_s29 + $0x30] sm:$0xff]  ;;  %v666_v49 = vld [vmem:[%s5415_s29 + $0x3c] sm:$0xe]  ;;  %v551_v9 = vshll.u32 %v5802_v56, 16 }
  0xa1   : > { %v2210_v26 = vunpack.c.l.b16 %v759_v62  ;;  %v1026_v59 = vor.u32 %v1025_v40, %v5788_v39  ;;  %v4388_v1 = vrot.slane %v666_v49, 9 }
  0xa3   : > { %v2238_v46 = vpack.c.b16 %v2211_v27, %v2210_v26  ;;  %v1027_v14 = vrot.slane %v1026_v59, 4  ;;  %v766_v26 = vsel %vm5627_vm5, %v4388_v1, %v765_v58 }
  0xaa   : > { %v3356_v44 = vpop.f32.mrf.mxu1  ;;  %v3267_v60 = vpop.f32.mrf.mxu0 }
  0xab   : > { %v5753_v25 = vadd.f32 %v3356_v44, %v3267_v60  ;;  %v534_v44 = vor.u32 %v533_v23, %v5783_v13  ;;  %v537_v60 = vshll.u32 %v5786_v22, 16 }
  0xac   : > { %3459 = vmatmul.bf16.gmra.mxu2 %v2237_v7  ;;  %3543 = vmatmul.bf16.gmra.mxu3 %v5060_v33  ;;  %v524_v7 = vor.u32 %v523_v5, %v520_v2  ;;  %v2354_v33 = vunpack.c.l.b16 %v998_v6  ;;  %v768_v2 = vrot.slane %v5611_v0, 5  ;;  %v542_v5 = vshrl.u32 %v248_v10, 16 }
  0xad   : > { %3395 = vmatmul.bf16.gmra.mxu1 %v2178_v28  ;;  %3637 = vmatmul.bf16.gmra.mxu0 %v2381_v30  ;;  %v2157_v28 = vunpack.c.l.b16 %v516_v61  ;;  %v1015_v30 = vrot.slane %v1013_v17, 5  ;;  %v535_v62 = vrot.slane %v534_v44, 4  ;;  %v539_v63 = vrot.slane %v537_v60, 5 }
  0xae   : > { %v2382_v51 = vpack.c.b16 %v2355_v35, %v2354_v33  ;;  %v525_v53 = vrot.slane %v524_v7, 4  ;;  %v545_v6 = vshll.u32 %v248_v10, 16  ;;  %v1031_v17 = vrot.slane %v1029_v16, 5  ;;  %v4412_v33 = vld [vmem:[%s5415_s29 + $0x58] sm:$0xf] }
  0xaf   : > { %v5759_v54 = vpop.f32.mrf.mxu2  ;;  %v5761_v55 = vpop.f32.mrf.mxu3  ;;  %v2179_v50 = vpack.c.b16 %v2157_v28, %v2156_v24  ;;  %v1016_v57 = vor.u32 %v1015_v30, %v1012_v36  ;;  %v540_v23 = vsel %vm5452_vm2, %v535_v62, %v539_v63  ;;  %v4411_v24 = vld [vmem:[%s5415_s29 + $0x54] sm:$0xf]  ;;  %v769_v27 = vsel %vm5627_vm5, %v767_v37, %v768_v2  ;;  %v4437_v16 = vld [vmem:[%s5415_s29 + $0x5c] sm:$0x1] }
  0xb0   : > { %7232 = vst [vmem:[#allocation2_spill] sm:$0xff] %v5761_v55  ;;  %v530_v0 = vsel %vm5452_vm2, %v525_v53, %v5783_v13  ;;  %v544_v28 = vrot.slane %v542_v5, 4  ;;  %v547_v7 = vrot.slane %v545_v6, 5  ;;  %v1034_v35 = vshrl.u32 %v4411_v24, 16 }
  0xb1   : > { %v1037_v36 = vshll.u32 %v4411_v24, 16  ;;  %v1043_v30 = vshll.u32 %v4412_v33, 16  ;;  %v1047_v40 = vshrl.u32 %v4412_v33, 16  ;;  %v5825_v60 = vrot.slane %v551_v9, 5 }
  0xb2   : > { %v3358_v11 = vpop.f32.mrf.mxu1  ;;  %v3269_v12 = vpop.f32.mrf.mxu0  ;;  %v2158_v49 = vunpack.c.l.b16 %v530_v0  ;;  %v2159_v58 = vunpack.c.l.b16 %v540_v23  ;;  %v2213_v10 = vunpack.c.l.b16 %v769_v27  ;;  %v548_v63 = vor.u32 %v547_v7, %v544_v28 }
  0xb3   : > { %v5781_v21 = vadd.f32 %v3358_v11, %v3269_v12  ;;  %v555_v11 = vshrl.u32 %v5802_v56, 16  ;;  %v1017_v12 = vrot.slane %v1016_v57, 4  ;;  %v1039_v53 = vrot.slane %v1037_v36, 5 }
  0xb4   : > { %v5838_v62 = vrot.slane %v1043_v30, 5  ;;  %v772_v6 = vrot.slane %v5633_v34, 5  ;;  %v1053_v0 = vshll.u32 %v4437_v16, 16  ;;  %v2180_v23 = vpack.c.b16 %v2159_v58, %v2158_v49  ;;  %v250_v30 = vld [vmem:[%s5415_s29 + $0x90] sm:$0xf] }
  0xb5   : > { %v557_v18 = vrot.slane %v555_v11, 4  ;;  %v5062_v11 = vld [vmem:[%s5415_s29 + $0x3c] sm:$0xff]  ;;  %v549_v28 = vrot.slane %v548_v63, 4  ;;  %v566_v49 = vshrl.u32 %v250_v30, 16  ;;  %v4414_v63 = vld [vmem:[%s5415_s29 + $0x64] sm:$0xf] }
  0xb6   : > { %v774_v34 = vrot.slane %v772_v6, 4 }
  0xb7   : > { %v5790_v41 = vpop.f32.mrf.mxu2  ;;  %v5792_v43 = vpop.f32.mrf.mxu3  ;;  %v558_v1 = vor.u32 %v557_v18, %v5825_v60 }
  0xb8   : > { %7233 = vst [vmem:[#allocation3_spill] sm:$0xff] %v5792_v43 }
  0xb9   : > { %v559_v7 = vrot.slane %v558_v1, 4 }
  0xba   : > { %v3361_v42 = vpop.f32.mrf.mxu1  ;;  %v3272_v52 = vpop.f32.mrf.mxu0 }
  0xbb   : > { %v5805_v61 = vadd.f32 %v3361_v42, %v3272_v52  ;;  %v5835_v42 = vld [vmem:[%s5415_s29 + $0x8c] sm:$0x1]  ;;  %v1036_v52 = vrot.slane %v1034_v35, 4 }
  0xbc   : > { %3464 = vmatmul.bf16.gmra.mxu2 %v2238_v46  ;;  %3548 = vmatmul.bf16.gmra.mxu3 %v5061_v47  ;;  %v1022_v46 = vsel %vm5452_vm2, %v1017_v12, %v5788_v39  ;;  %v1032_v47 = vsel %vm5452_vm2, %v1027_v14, %v1031_v17  ;;  %v1049_v39 = vrot.slane %v1047_v40, 4  ;;  %v561_v5 = vshll.u32 %v5835_v42, 16  ;;  %v667_v12 = vld [vmem:[%s5415_s29 + $0x48] sm:$0xe] }
  0xbd   : > { %3400 = vmatmul.bf16.gmra.mxu1 %v2179_v50  ;;  %3642 = vmatmul.bf16.gmra.mxu0 %v2382_v51  ;;  %v2212_v51 = vunpack.c.l.b16 %v766_v26  ;;  %v2356_v57 = vunpack.c.l.b16 %v1022_v46  ;;  %v2357_v59 = vunpack.c.l.b16 %v1032_v47  ;;  %v1040_v14 = vor.u32 %v1039_v53, %v1036_v52 }
  0xbe   : > { %v1050_v17 = vor.u32 %v1049_v39, %v5838_v62  ;;  %v563_v35 = vrot.slane %v561_v5, 5  ;;  %v4389_v36 = vrot.slane %v667_v12, 9  ;;  %v775_v40 = vrot.slane %v5652_v3, 5 }
  0xbf   : > { %v5810_v19 = vpop.f32.mrf.mxu2  ;;  %v5812_v20 = vpop.f32.mrf.mxu3  ;;  %v2239_v9 = vpack.c.b16 %v2213_v10, %v2212_v51  ;;  %v2383_v24 = vpack.c.b16 %v2357_v59, %v2356_v57  ;;  %v1055_v46 = vrot.slane %v1053_v0, 5  ;;  %v554_v47 = vsel %vm5452_vm2, %v549_v28, %v5825_v60  ;;  %v4413_v57 = vld [vmem:[%s5415_s29 + $0x60] sm:$0xf] }
  0xc0   : > { %7234 = vst [vmem:[#allocation4_spill] sm:$0xff] %v5812_v20  ;;  %v1051_v18 = vrot.slane %v1050_v17, 4  ;;  %v564_v3 = vsel %vm5452_vm2, %v559_v7, %v563_v35  ;;  %v569_v10 = vshll.u32 %v250_v30, 16  ;;  %v773_v59 = vsel %vm5627_vm5, %v4389_v36, %v772_v6  ;;  %v5884_v7 = vld [vmem:[%s5415_s29 + $0x98] sm:$0x1] }
  0xc1   : > { %v776_v60 = vsel %vm5627_vm5, %v774_v34, %v775_v40  ;;  %v1058_v1 = vshrl.u32 %v4413_v57, 16  ;;  %v1061_v5 = vshll.u32 %v4413_v57, 16  ;;  %v2161_v17 = vunpack.c.l.b16 %v564_v3  ;;  %v5063_v57 = vld [vmem:[%s5415_s29 + $0x48] sm:$0xff] }
  0xc2   : > { %v3363_v44 = vpop.f32.mrf.mxu1  ;;  %v3274_v13 = vpop.f32.mrf.mxu0  ;;  %v1056_v39 = vsel %vm5452_vm2, %v1051_v18, %v1055_v46  ;;  %v568_v0 = vrot.slane %v566_v49, 4  ;;  %v2215_v28 = vunpack.c.l.b16 %v776_v60  ;;  %v4438_v18 = vld [vmem:[%s5415_s29 + $0x68] sm:$0x1]  ;;  %v668_v60 = vld [vmem:[%s5415_s29 + $0x54] sm:$0xe] }
  0xc3   : > { %v5832_v50 = vadd.f32 %v3363_v44, %v3274_v13  ;;  %v5855_v44 = vld [vmem:[%s5415_s29 + $0x94] sm:$0xf]  ;;  %v1041_v13 = vrot.slane %v1040_v14, 4  ;;  %v2160_v14 = vunpack.c.l.b16 %v554_v47  ;;  %v2359_v36 = vunpack.c.l.b16 %v1056_v39  ;;  %v252_v39 = vld [vmem:[%s5415_s29 + $0x9c] sm:$0xf] }
  0xc4   : > { %v575_v52 = vshll.u32 %v5855_v44, 16  ;;  %v579_v53 = vshrl.u32 %v5855_v44, 16  ;;  %v1060_v34 = vrot.slane %v1058_v1, 4  ;;  %v1063_v30 = vrot.slane %v1061_v5, 5 }
  0xc5   : > { %v1046_v16 = vsel %vm5452_vm2, %v1041_v13, %v5838_v62  ;;  %v1077_v5 = vshll.u32 %v4438_v18, 16 }
  0xc6   : > { %v581_v62 = vrot.slane %v579_v53, 4  ;;  %v2358_v35 = vunpack.c.l.b16 %v1046_v16 }
  0xc7   : > { %v5841_v37 = vpop.f32.mrf.mxu2  ;;  %v5843_v2 = vpop.f32.mrf.mxu3 }
  0xc8   : > { %7235 = vst [vmem:[#allocation5_spill] sm:$0xff] %v5843_v2  ;;  %v2384_v16 = vpack.c.b16 %v2359_v36, %v2358_v35 }
  0xca   : > { %v3366_v26 = vpop.f32.mrf.mxu1  ;;  %v3277_v27 = vpop.f32.mrf.mxu0 }
  0xcb   : > { %v5850_v33 = vadd.f32 %v3366_v26, %v3277_v27  ;;  %v5881_v26 = vrot.slane %v575_v52, 5  ;;  %v2214_v27 = vunpack.c.l.b16 %v773_v59  ;;  %v2181_v52 = vpack.c.b16 %v2161_v17, %v2160_v14 }
  0xcc   : > { %3469 = vmatmul.bf16.gmra.mxu2 %v2239_v9  ;;  %3553 = vmatmul.bf16.gmra.mxu3 %v5062_v11  ;;  %v1067_v9 = vshll.u32 %v4414_v63, 16  ;;  %v1071_v11 = vshrl.u32 %v4414_v63, 16  ;;  %v779_v59 = vrot.slane %v5661_v38, 5  ;;  %v1064_v63 = vor.u32 %v1063_v30, %v1060_v34 }
  0xcd   : > { %3405 = vmatmul.bf16.gmra.mxu1 %v2180_v23  ;;  %3647 = vmatmul.bf16.gmra.mxu0 %v2383_v24  ;;  %v571_v24 = vrot.slane %v569_v10, 5  ;;  %v582_v3 = vor.u32 %v581_v62, %v5881_v26  ;;  %v585_v10 = vshll.u32 %v5884_v7, 16  ;;  %v2240_v53 = vpack.c.b16 %v2215_v28, %v2214_v27  ;;  %v5904_v27 = vld [vmem:[%s5415_s29 + $0xa0] sm:$0xf] }
  0xce   : > { %v5886_v40 = vrot.slane %v1067_v9, 5  ;;  %v1073_v13 = vrot.slane %v1071_v11, 4  ;;  %v4390_v14 = vrot.slane %v668_v60, 9  ;;  %v781_v38 = vrot.slane %v779_v59, 4 }
  0xcf   : > { %v5860_v58 = vpop.f32.mrf.mxu2  ;;  %v5862_v51 = vpop.f32.mrf.mxu3  ;;  %v572_v49 = vor.u32 %v571_v24, %v568_v0  ;;  %v583_v0 = vrot.slane %v582_v3, 4  ;;  %v587_v24 = vrot.slane %v585_v10, 5  ;;  %v782_v17 = vrot.slane %v5681_v4, 5 }
  0xd0   : > { %7236 = vst [vmem:[#allocation6_spill] sm:$0xff] %v5862_v51  ;;  %v1074_v1 = vor.u32 %v1073_v13, %v5886_v40  ;;  %v590_v62 = vshrl.u32 %v252_v39, 16  ;;  %v593_v28 = vshll.u32 %v252_v39, 16  ;;  %v1065_v35 = vrot.slane %v1064_v63, 4  ;;  %v670_v51 = vld [vmem:[%s5415_s29 + $0x6c] sm:$0xe] }
  0xd1   : > { %v1079_v34 = vrot.slane %v1077_v5, 5  ;;  %v588_v4 = vsel %vm5452_vm2, %v583_v0, %v587_v24  ;;  %v780_v3 = vsel %vm5627_vm5, %v4390_v14, %v779_v59  ;;  %v783_v10 = vsel %vm5627_vm5, %v781_v38, %v782_v17 }
  0xd2   : > { %v3368_v12 = vpop.f32.mrf.mxu1  ;;  %v3279_v6 = vpop.f32.mrf.mxu0  ;;  %v1075_v36 = vrot.slane %v1074_v1, 4  ;;  %v592_v60 = vrot.slane %v590_v62, 4  ;;  %v2216_v24 = vunpack.c.l.b16 %v780_v3  ;;  %v2217_v14 = vunpack.c.l.b16 %v783_v10  ;;  %v4439_v3 = vld [vmem:[%s5415_s29 + $0x74] sm:$0x1] }
  0xd3   : > { %v5879_v23 = vadd.f32 %v3368_v12, %v3279_v6  ;;  %v573_v6 = vrot.slane %v572_v49, 4  ;;  %v4415_v49 = vld [vmem:[%s5415_s29 + $0x6c] sm:$0xf]  ;;  %v2163_v62 = vunpack.c.l.b16 %v588_v4  ;;  %v4392_v43 = vrot.slane %v670_v51, 9 }
  0xd4   : > { %v1080_v39 = vsel %vm5452_vm2, %v1075_v36, %v1079_v34  ;;  %v1082_v1 = vshrl.u32 %v4415_v49, 16  ;;  %v1085_v5 = vshll.u32 %v4415_v49, 16  ;;  %v2241_v10 = vpack.c.b16 %v2217_v14, %v2216_v24 }
  0xd5   : > { %v578_v18 = vsel %vm5452_vm2, %v573_v6, %v5881_v26  ;;  %v1070_v26 = vsel %vm5452_vm2, %v1065_v35, %v5886_v40  ;;  %v5931_v40 = vld [vmem:[%s5415_s29 + $0xa4] sm:$0x1]  ;;  %v2361_v36 = vunpack.c.l.b16 %v1080_v39 }
  0xd6   : > { %v2162_v6 = vunpack.c.l.b16 %v578_v18  ;;  %v2360_v35 = vunpack.c.l.b16 %v1070_v26  ;;  %v1084_v34 = vrot.slane %v1082_v1, 4  ;;  %v609_v4 = vshll.u32 %v5931_v40, 16 }
  0xd7   : > { %v5889_v46 = vpop.f32.mrf.mxu2  ;;  %v5891_v47 = vpop.f32.mrf.mxu3 }
  0xd8   : > { %7237 = vst [vmem:[#allocation7_spill] sm:$0xff] %v5891_v47  ;;  %v2385_v26 = vpack.c.b16 %v2361_v36, %v2360_v35  ;;  %v611_v14 = vrot.slane %v609_v4, 5  ;;  %v4417_v4 = vld [vmem:[%s5415_s29 + $0x78] sm:$0xf] }
  0xda   : > { %v3371_v9 = vpop.f32.mrf.mxu1  ;;  %v3282_v11 = vpop.f32.mrf.mxu0 }
  0xdb   : > { %v5900_v12 = vadd.f32 %v3371_v9, %v3282_v11 }
  0xdc   : > { %3474 = vmatmul.bf16.gmra.mxu2 %v2240_v53  ;;  %3558 = vmatmul.bf16.gmra.mxu3 %v5063_v57  ;;  %v603_v53 = vshrl.u32 %v5904_v27, 16  ;;  %v4416_v57 = vld [vmem:[%s5415_s29 + $0x70] sm:$0xf] }
  0xdd   : > { %3410 = vmatmul.bf16.gmra.mxu1 %v2181_v52  ;;  %3652 = vmatmul.bf16.gmra.mxu0 %v2384_v16  ;;  %v599_v52 = vshll.u32 %v5904_v27, 16  ;;  %v595_v16 = vrot.slane %v593_v28, 5  ;;  %v1091_v9 = vshll.u32 %v4416_v57, 16  ;;  %v1095_v11 = vshrl.u32 %v4416_v57, 16 }
  0xde   : > { %v605_v17 = vrot.slane %v603_v53, 4 }
  0xdf   : > { %v5906_v30 = vpop.f32.mrf.mxu2  ;;  %v5908_v13 = vpop.f32.mrf.mxu3  ;;  %v601_v38 = vrot.slane %v599_v52, 5  ;;  %v596_v28 = vor.u32 %v595_v16, %v592_v60  ;;  %v5933_v49 = vrot.slane %v1091_v9, 5  ;;  %v1097_v18 = vrot.slane %v1095_v11, 4  ;;  %v5064_v52 = vld [vmem:[%s5415_s29 + $0x54] sm:$0xff] }
  0xe0   : > { %7238 = vst [vmem:[#allocation8_spill] sm:$0xff] %v5906_v30  ;;  %v2182_v60 = vpack.c.b16 %v2163_v62, %v2162_v6  ;;  %v786_v16 = vrot.slane %v5690_v29, 5  ;;  %v5137_v29 = vld [vmem:[%s7225_s1 + $0x178] sm:$0xff]  ;;  %v803_v30 = vrot.slane %v5786_v22, 5 }
  0xe1   : > { %7239 = vst [vmem:[#allocation9_spill] sm:$0xff] %v5908_v13  ;;  %v1087_v13 = vrot.slane %v1085_v5, 5  ;;  %v606_v53 = vor.u32 %v605_v17, %v601_v38  ;;  %v597_v1 = vrot.slane %v596_v28, 4  ;;  %v669_v5 = vld [vmem:[%s5415_s29 + $0x60] sm:$0xe]  ;;  %v1098_v11 = vor.u32 %v1097_v18, %v5933_v49  ;;  %3703 = vmatpush.bf16.msrb.mxu1 %v5137_v29 }
  0xe2   : > { %v3373_v63 = vpop.f32.mrf.mxu1  ;;  %v3284_v59 = vpop.f32.mrf.mxu0  ;;  %v254_v17 = vld [vmem:[%s5415_s29 + $0xa8] sm:$0xf]  ;;  %v4391_v6 = vrot.slane %v669_v5, 9  ;;  %v788_v62 = vrot.slane %v786_v16, 4  ;;  %v5953_v28 = vld [vmem:[%s5415_s29 + $0xac] sm:$0xf] }
  0xe3   : > { %v5928_v0 = vadd.f32 %v3373_v63, %v3284_v59  ;;  %v1088_v9 = vor.u32 %v1087_v13, %v1084_v34  ;;  %v607_v24 = vrot.slane %v606_v53, 4  ;;  %v789_v13 = vrot.slane %v5710_v8, 5 }
  0xe4   : > { %v602_v35 = vsel %vm5452_vm2, %v597_v1, %v601_v38  ;;  %v1099_v34 = vrot.slane %v1098_v11, 4  ;;  %v617_v53 = vshll.u32 %v254_v17, 16  ;;  %v5136_v38 = vld [vmem:[%s7225_s1 + $0x170] sm:$0xff] }
  0xe5   : > { %v1089_v36 = vrot.slane %v1088_v9, 4  ;;  %v612_v8 = vsel %vm5452_vm2, %v607_v24, %v611_v14  ;;  %3704 = vmatpush.bf16.msrb.mxu1 %v5136_v38  ;;  %v4418_v24 = vld [vmem:[%s5415_s29 + $0x7c] sm:$0xf]  ;;  %v1106_v14 = vshrl.u32 %v4417_v4, 16 }
  0xe6   : > { %v2165_v29 = vunpack.c.l.b16 %v612_v8  ;;  %v1119_v8 = vshrl.u32 %v4418_v24, 16 }
  0xe7   : > { %v5935_v57 = vpop.f32.mrf.mxu2  ;;  %v5937_v63 = vpop.f32.mrf.mxu3  ;;  %v1094_v9 = vsel %vm5452_vm2, %v1089_v36, %v5933_v49 }
  0xe8   : > { %7240 = vst [vmem:[#allocation10_spill] sm:$0xff] %v5935_v57 }
  0xe9   : > { %7241 = vst [vmem:[#allocation11_spill] sm:$0xff] %v5937_v63  ;;  %v1101_v63 = vshll.u32 %v4439_v3, 16 }
  0xea   : > { %v3376_v39 = vpop.f32.mrf.mxu1  ;;  %v3287_v59 = vpop.f32.mrf.mxu0 }
  0xeb   : > { %v5945_v47 = vadd.f32 %v3376_v39, %v3287_v59  ;;  %v1103_v18 = vrot.slane %v1101_v63, 5  ;;  %v2164_v63 = vunpack.c.l.b16 %v602_v35  ;;  %v787_v39 = vsel %vm5627_vm5, %v4391_v6, %v786_v16 }
  0xec   : > { %3479 = vmatmul.bf16.gmra.mxu2 %v2241_v10  ;;  %3563 = vmatmul.bf16.gmra.mxu3 %v5064_v52  ;;  %v614_v52 = vshrl.u32 %v254_v17, 16  ;;  %v790_v59 = vsel %vm5627_vm5, %v788_v62, %v789_v13  ;;  %v1109_v17 = vshll.u32 %v4417_v4, 16  ;;  %v619_v6 = vrot.slane %v617_v53, 5  ;;  %v5135_v62 = vld [vmem:[%s7225_s1 + $0x168] sm:$0xff] }
  0xed   : > { %3415 = vmatmul.bf16.gmra.mxu1 %v2182_v60  ;;  %3657 = vmatmul.bf16.gmra.mxu0 %v2385_v26  ;;  %v623_v60 = vshll.u32 %v5953_v28, 16  ;;  %v627_v26 = vshrl.u32 %v5953_v28, 16  ;;  %v1104_v11 = vsel %vm5452_vm2, %v1099_v34, %v1103_v18  ;;  %v2218_v13 = vunpack.c.l.b16 %v787_v39 }
  0xee   : > { %v616_v16 = vrot.slane %v614_v52, 4  ;;  %v2219_v49 = vunpack.c.l.b16 %v790_v59  ;;  %v2362_v18 = vunpack.c.l.b16 %v1094_v9  ;;  %v2363_v38 = vunpack.c.l.b16 %v1104_v11  ;;  %3705 = vmatpush.bf16.msrb.mxu1 %v5135_v62  ;;  %v5065_v11 = vld [vmem:[%s5415_s29 + $0x60] sm:$0xff] }
  0xef   : > { %v5957_v3 = vpop.f32.mrf.mxu2  ;;  %v5959_v10 = vpop.f32.mrf.mxu3  ;;  %v5984_v36 = vrot.slane %v623_v60, 5  ;;  %v629_v34 = vrot.slane %v627_v26, 4  ;;  %v1115_v4 = vshll.u32 %v4418_v24, 16  ;;  %v1108_v52 = vrot.slane %v1106_v14, 4  ;;  %v4440_v26 = vld [vmem:[%s5415_s29 + $0x80] sm:$0x1] }
  0xf0   : > { %7242 = vst [vmem:[#allocation12_spill] sm:$0xff] %v5957_v3  ;;  %v1111_v53 = vrot.slane %v1109_v17, 5  ;;  %v620_v39 = vor.u32 %v619_v6, %v616_v16  ;;  %v793_v60 = vrot.slane %v5720_v45, 5  ;;  %v2242_v9 = vpack.c.b16 %v2219_v49, %v2218_v13  ;;  %v5134_v14 = vld [vmem:[%s7225_s1 + $0x160] sm:$0xff]  ;;  %v6010_v13 = vld [vmem:[%s5415_s29 + $0xb8] sm:$0xf] }
  0xf1   : > { %7243 = vst [vmem:[#allocation13_spill] sm:$0xff] %v5959_v10  ;;  %v5995_v59 = vrot.slane %v1115_v4, 5  ;;  %v630_v24 = vor.u32 %v629_v34, %v5984_v36  ;;  %v1121_v17 = vrot.slane %v1119_v8, 4  ;;  %v2183_v62 = vpack.c.b16 %v2165_v29, %v2164_v63  ;;  %v256_v4 = vld [vmem:[%s5415_s29 + $0xb4] sm:$0xf] }
  0xf2   : > { %v3378_v1 = vpop.f32.mrf.mxu1  ;;  %v3289_v5 = vpop.f32.mrf.mxu0  ;;  %v2386_v6 = vpack.c.b16 %v2363_v38, %v2362_v18  ;;  %3706 = vmatpush.bf16.msrb.mxu1 %v5134_v14  ;;  %v1112_v49 = vor.u32 %v1111_v53, %v1108_v52  ;;  %v1125_v2 = vshll.u32 %v4440_v26, 16  ;;  %v621_v20 = vrot.slane %v620_v39, 4  ;;  %v5133_v18 = vld [vmem:[%s7225_s1 + $0x158] sm:$0xff] }
  0xf3   : > { %v5979_v35 = vadd.f32 %v3378_v1, %v3289_v5  ;;  %v5987_v1 = vld [vmem:[%s5415_s29 + $0xb0] sm:$0x1]  ;;  %v1122_v34 = vor.u32 %v1121_v17, %v5995_v59  ;;  %v795_v55 = vrot.slane %v793_v60, 4  ;;  %v796_v63 = vrot.slane %v5741_v15, 5 }
  0xf4   : > { %v633_v16 = vshll.u32 %v5987_v1, 16  ;;  %v631_v29 = vrot.slane %v630_v24, 4  ;;  %v638_v8 = vshrl.u32 %v256_v4, 16  ;;  %v641_v52 = vshll.u32 %v256_v4, 16 }
  0xf5   : > { %v647_v53 = vshll.u32 %v6010_v13, 16  ;;  %v651_v51 = vshrl.u32 %v6010_v13, 16  ;;  %v1113_v39 = vrot.slane %v1112_v49, 4  ;;  %v1123_v15 = vrot.slane %v1122_v34, 4 }
  0xf6   : > { %v635_v38 = vrot.slane %v633_v16, 5  ;;  %v1127_v26 = vrot.slane %v1125_v2, 5  ;;  %3707 = vmatpush.bf16.msrb.mxu1 %v5133_v18  ;;  %v626_v24 = vsel %vm5452_vm2, %v621_v20, %v5984_v36  ;;  %v794_v14 = vsel %vm5627_vm5, %v4392_v43, %v793_v60  ;;  %v4420_v16 = vld [vmem:[%s5415_s29 + $0x88] sm:$0xf]  ;;  %v5132_v2 = vld [vmem:[%s7225_s1 + $0x150] sm:$0xff] }
  0xf7   : > { %v5989_v5 = vpop.f32.mrf.mxu2  ;;  %v5991_v10 = vpop.f32.mrf.mxu3  ;;  %v797_v17 = vsel %vm5627_vm5, %v795_v55, %v796_v63  ;;  %v1139_v34 = vshll.u32 %v4420_v16, 16  ;;  %v640_v43 = vrot.slane %v638_v8, 4  ;;  %v643_v36 = vrot.slane %v641_v52, 5  ;;  %v5131_v8 = vld [vmem:[%s7225_s1 + $0x148] sm:$0xff]  ;;  %v6053_v52 = vld [vmem:[%s5415_s29 + $0xbc] sm:$0x1] }
  0xf8   : > { %7244 = vst [vmem:[#allocation14_spill] sm:$0xff] %v5989_v5  ;;  %v636_v20 = vsel %vm5452_vm2, %v631_v29, %v635_v38  ;;  %v1143_v60 = vshrl.u32 %v4420_v16, 16  ;;  %v653_v18 = vrot.slane %v651_v51, 4  ;;  %v2220_v29 = vunpack.c.l.b16 %v794_v14 }
  0xf9   : > { %7245 = vst [vmem:[#allocation15_spill] sm:$0xff] %v5991_v10  ;;  %v2221_v38 = vunpack.c.l.b16 %v797_v17  ;;  %v6055_v51 = vrot.slane %v1139_v34, 5  ;;  %v644_v14 = vor.u32 %v643_v36, %v640_v43 }
  0xfa   : > { %v6004_v10 = vpop.f32.mrf.mxu1  ;;  %v6006_v45 = vpop.f32.mrf.mxu0  ;;  %3708 = vmatpush.bf16.msrb.mxu1 %v5132_v2 }
  0xfb   : > { %v2243_v57 = vpack.c.b16 %v2221_v38, %v2220_v29  ;;  %v645_v38 = vrot.slane %v644_v14, 4  ;;  %v4422_v14 = vld [vmem:[%s5415_s29 + $0x94] sm:$0xf] }
  0xfc   : > { %3484 = vmatmul.bf16.gmra.mxu2 %v2242_v9  ;;  %3568 = vmatmul.bf16.gmra.mxu3 %v5065_v11 }
  0xfd   : > { %3420 = vmatmul.bf16.gmra.mxu1 %v2183_v62  ;;  %3662 = vmatmul.bf16.gmra.mxu0 %v2386_v6  ;;  %v4419_v62 = vld [vmem:[%s5415_s29 + $0x84] sm:$0xf] }
  0xfe   : > { %v1130_v4 = vshrl.u32 %v4419_v62, 16  ;;  %v1133_v49 = vshll.u32 %v4419_v62, 16  ;;  %v1128_v62 = vsel %vm5452_vm2, %v1123_v15, %v1127_v26  ;;  %v4441_v26 = vld [vmem:[%s5415_s29 + $0x8c] sm:$0x1]  ;;  %3709 = vmatpush.bf16.msrb.mxu1 %v5131_v8 }
  0xff   : > { %v6019_v9 = vpop.f32.mrf.mxu3  ;;  %v3445_v11 = vpop.f32.mrf.mxu2  ;;  %v2365_v15 = vunpack.c.l.b16 %v1128_v62 }
 0x100   : > { %7246 = vst [vmem:[#allocation16_spill] sm:$0xff] %v6019_v9  ;;  %v6031_v6 = vadd.f32 %v3445_v11, %v5753_v25  ;;  %v6042_v25 = vrot.slane %v647_v53, 5  ;;  %v1118_v11 = vsel %vm5452_vm2, %v1113_v39, %v5995_v59  ;;  %v1132_v53 = vrot.slane %v1130_v4, 4 }
 0x101   : > { %v1135_v16 = vrot.slane %v1133_v49, 5  ;;  %v1145_v9 = vrot.slane %v1143_v60, 4  ;;  %v2166_v59 = vunpack.c.l.b16 %v626_v24  ;;  %v2167_v39 = vunpack.c.l.b16 %v636_v20  ;;  %v5066_v60 = vld [vmem:[%s5415_s29 + $0x6c] sm:$0xff]  ;;  %v671_v24 = vld [vmem:[%s5415_s29 + $0x78] sm:$0xe]  ;;  %v5130_v20 = vld [vmem:[%s7225_s1 + $0x140] sm:$0xff] }
 0x102   : > { %v6038_v55 = vpop.f32.mrf.mxu1  ;;  %v6040_v63 = vpop.f32.mrf.mxu0  ;;  %v2364_v5 = vunpack.c.l.b16 %v1118_v11  ;;  %v654_v17 = vor.u32 %v653_v18, %v6042_v25  ;;  %v657_v4 = vshll.u32 %v6053_v52, 16  ;;  %v800_v49 = vrot.slane %v5757_v48, 5  ;;  %3710 = vmatpush.bf16.msrb.mxu1 %v5130_v20 }
 0x103   : > { %v1136_v43 = vor.u32 %v1135_v16, %v1132_v53  ;;  %v1146_v36 = vor.u32 %v1145_v9, %v6055_v51  ;;  %v1149_v18 = vshll.u32 %v4441_v26, 16  ;;  %v2184_v11 = vpack.c.b16 %v2167_v39, %v2166_v59 }
 0x104   : > { %v2387_v62 = vpack.c.b16 %v2365_v15, %v2364_v5  ;;  %v655_v48 = vrot.slane %v654_v17, 4  ;;  %v650_v39 = vsel %vm5452_vm2, %v645_v38, %v6042_v25 }
 0x105   : > { %v1137_v9 = vrot.slane %v1136_v43, 4  ;;  %v1147_v53 = vrot.slane %v1146_v36, 4  ;;  %v1151_v16 = vrot.slane %v1149_v18, 5  ;;  %v1167_v43 = vshrl.u32 %v4422_v14, 16 }
 0x107   : > { %v6059_v2 = vpop.f32.mrf.mxu3  ;;  %v3447_v3 = vpop.f32.mrf.mxu2  ;;  %v1152_v25 = vsel %vm5452_vm2, %v1147_v53, %v1151_v16 }
 0x108   : > { %7247 = vst [vmem:[#allocation17_spill] sm:$0xff] %v6059_v2  ;;  %v3448_v34 = vadd.f32 %v3447_v3, %v5781_v21  ;;  %v659_v21 = vrot.slane %v657_v4, 5  ;;  %v4393_v3 = vrot.slane %v671_v24, 9  ;;  %v802_v2 = vrot.slane %v800_v49, 4 }
 0x10a   : > { %v6070_v8 = vpop.f32.mrf.mxu1  ;;  %v6072_v29 = vpop.f32.mrf.mxu0  ;;  %v660_v15 = vsel %vm5452_vm2, %v655_v48, %v659_v21  ;;  %v801_v26 = vsel %vm5627_vm5, %v4393_v3, %v800_v49  ;;  %v804_v22 = vsel %vm5627_vm5, %v802_v2, %v803_v30  ;;  %v1163_v49 = vshll.u32 %v4422_v14, 16 }
 0x10b   : > { %v2169_v2 = vunpack.c.l.b16 %v660_v15  ;;  %v2222_v18 = vunpack.c.l.b16 %v801_v26  ;;  %v1169_v3 = vrot.slane %v1167_v43, 4  ;;  %v5067_v15 = vld [vmem:[%s5415_s29 + $0x78] sm:$0xff]  ;;  %v672_v26 = vld [vmem:[%s5415_s29 + $0x84] sm:$0xe] }
 0x10c   : > { %3489 = vmatmul.bf16.gmra.mxu2 %v2243_v57  ;;  %3573 = vmatmul.bf16.gmra.mxu3 %v5066_v60  ;;  %v4421_v57 = vld [vmem:[%s5415_s29 + $0x90] sm:$0xf]  ;;  %v1142_v60 = vsel %vm5452_vm2, %v1137_v9, %v6055_v51  ;;  %v2223_v51 = vunpack.c.l.b16 %v804_v22  ;;  %v1165_v21 = vrot.slane %v1163_v49, 5  ;;  %v4442_v9 = vld [vmem:[%s5415_s29 + $0x98] sm:$0x1]  ;;  %v807_v22 = vrot.slane %v5802_v56, 5 }
 0x10d   : > { %3425 = vmatmul.bf16.gmra.mxu1 %v2184_v11  ;;  %3667 = vmatmul.bf16.gmra.mxu0 %v2387_v62  ;;  %v1154_v24 = vshrl.u32 %v4421_v57, 16  ;;  %v1157_v20 = vshll.u32 %v4421_v57, 16  ;;  %v2366_v11 = vunpack.c.l.b16 %v1142_v60  ;;  %v2367_v62 = vunpack.c.l.b16 %v1152_v25  ;;  %v5299_v57 = vld [vmem:[%s5415_s29 + $0x10] sm:$0xf]  ;;  %v4447_v60 = vld [vmem:[%s5415_s29 + $0xc] sm:$0xe] }
 0x10e   : > { %v1339_v14 = vrot.slane %v5299_v57, 5  ;;  %v809_v56 = vrot.slane %v807_v22, 4 }
 0x10f   : > { %v3450_v5 = vpop.f32.mrf.mxu2  ;;  %v3534_v59 = vpop.f32.mrf.mxu3  ;;  %v1156_v38 = vrot.slane %v1154_v24, 4  ;;  %v1159_v48 = vrot.slane %v1157_v20, 5  ;;  %v1170_v24 = vor.u32 %v1169_v3, %v1165_v21  ;;  %v1173_v20 = vshll.u32 %v4442_v9, 16 }
 0x110   : > { %v3451_v17 = vadd.f32 %v3450_v5, %v5805_v61  ;;  %v3535_v4 = vadd.f32 %v3534_v59, %v6031_v6  ;;  %v2168_v6 = vunpack.c.l.b16 %v650_v39 }
 0x111   : > { %v1160_v25 = vor.u32 %v1159_v48, %v1156_v38  ;;  %v1171_v38 = vrot.slane %v1170_v24, 4  ;;  %v1175_v48 = vrot.slane %v1173_v20, 5 }
 0x112   : > { %v6093_v36 = vpop.f32.mrf.mxu1  ;;  %v6095_v30 = vpop.f32.mrf.mxu0  ;;  %v6098_v61 = vadd.f32 %v6006_v45, %v3535_v4  ;;  %v2185_v5 = vpack.c.b16 %v2169_v2, %v2168_v6  ;;  %v2244_v45 = vpack.c.b16 %v2223_v51, %v2222_v18  ;;  %v2388_v4 = vpack.c.b16 %v2367_v62, %v2366_v11 }
 0x113   : > { %v4394_v6 = vrot.slane %v672_v26, 9  ;;  %v810_v18 = vrot.slane %v5835_v42, 5  ;;  %v4463_v51 = vrot.slane %v4447_v60, 9  ;;  %v1341_v11 = vrot.slane %v1339_v14, 4 }
 0x114   : > { %v1161_v62 = vrot.slane %v1160_v25, 4 }
 0x115   : > { %v811_v42 = vsel %vm5627_vm5, %v809_v56, %v810_v18 }
 0x116   : > { %v1166_v26 = vsel %vm5452_vm2, %v1161_v62, %v1165_v21  ;;  %v2225_v20 = vunpack.c.l.b16 %v811_v42 }
 0x117   : > { %v3452_v53 = vpop.f32.mrf.mxu2  ;;  %v3536_v16 = vpop.f32.mrf.mxu3 }
 0x118   : > { %v6102_v59 = vadd.f32 %v3452_v53, %v5832_v50  ;;  %v3537_v39 = vadd.f32 %v3536_v16, %v3448_v34  ;;  %v5300_v34 = vld [vmem:[%s5415_s29 + $0x14] sm:$0x1]  ;;  %v4423_v53 = vld [vmem:[%s5415_s29 + $0x9c] sm:$0xf]  ;;  %v4424_v16 = vld [vmem:[%s5415_s29 + $0xa0] sm:$0xf] }
 0x119   : > { %v1342_v2 = vrot.slane %v5300_v34, 5  ;;  %v1178_v57 = vshrl.u32 %v4423_v53, 16  ;;  %v1187_v60 = vshll.u32 %v4424_v16, 16  ;;  %v1191_v25 = vshrl.u32 %v4424_v16, 16  ;;  %v673_v16 = vld [vmem:[%s5415_s29 + $0x90] sm:$0xe] }
 0x11a   : > { %v6109_v49 = vpop.f32.mrf.mxu1  ;;  %v6111_v43 = vpop.f32.mrf.mxu0  ;;  %v6114_v50 = vadd.f32 %v6040_v63, %v3537_v39  ;;  %v808_v63 = vsel %vm5627_vm5, %v4394_v6, %v807_v22  ;;  %v1176_v22 = vsel %vm5452_vm2, %v1171_v38, %v1175_v48  ;;  %v2368_v34 = vunpack.c.l.b16 %v1166_v26  ;;  %v4443_v48 = vld [vmem:[%s5415_s29 + $0xa4] sm:$0x1] }
 0x11b   : > { %v2224_v24 = vunpack.c.l.b16 %v808_v63  ;;  %v1180_v56 = vrot.slane %v1178_v57, 4  ;;  %v4448_v57 = vld [vmem:[%s5415_s29 + $0x18] sm:$0xe] }
 0x11c   : > { %3494 = vmatmul.bf16.gmra.mxu2 %v2244_v45  ;;  %3578 = vmatmul.bf16.gmra.mxu3 %v5067_v15  ;;  %v1343_v15 = vsel %vm5627_vm5, %v1341_v11, %v1342_v2  ;;  %v2369_v2 = vunpack.c.l.b16 %v1176_v22  ;;  %v1193_v11 = vrot.slane %v1191_v25, 4 }
 0x11d   : > { %3430 = vmatmul.bf16.gmra.mxu1 %v2185_v5  ;;  %3672 = vmatmul.bf16.gmra.mxu0 %v2388_v4  ;;  %v1340_v5 = vsel %vm5627_vm5, %v4463_v51, %v1339_v14  ;;  %v2411_v21 = vunpack.c.l.b16 %v1343_v15  ;;  %v6142_v51 = vrot.slane %v1187_v60, 5  ;;  %v2245_v63 = vpack.c.b16 %v2225_v20, %v2224_v24 }
 0x11e   : > { %v2410_v6 = vunpack.c.l.b16 %v1340_v5  ;;  %v2389_v42 = vpack.c.b16 %v2369_v2, %v2368_v34  ;;  %v5301_v5 = vld [vmem:[%s5415_s29 + $0x1c] sm:$0xf]  ;;  %v4395_v60 = vrot.slane %v673_v16, 9  ;;  %v4464_v20 = vrot.slane %v4448_v57, 9 }
 0x11f   : > { %v3455_v3 = vpop.f32.mrf.mxu2  ;;  %v3539_v9 = vpop.f32.mrf.mxu3  ;;  %v1346_v15 = vrot.slane %v5301_v5, 5 }
 0x120   : > { %v6123_v45 = vadd.f32 %v3455_v3, %v5850_v33  ;;  %v3540_v39 = vadd.f32 %v3539_v9, %v3451_v17  ;;  %v1181_v17 = vshll.u32 %v4423_v53, 16  ;;  %v5068_v53 = vld [vmem:[%s5415_s29 + $0x84] sm:$0xff] }
 0x122   : > { %v6135_v4 = vpop.f32.mrf.mxu1  ;;  %v6137_v33 = vpop.f32.mrf.mxu0  ;;  %v6140_v14 = vadd.f32 %v6072_v29, %v3540_v39  ;;  %v1183_v18 = vrot.slane %v1181_v17, 5  ;;  %v814_v29 = vrot.slane %v5855_v44, 5  ;;  %v2442_v39 = vpack.c.b16 %v2411_v21, %v2410_v6  ;;  %v5302_v21 = vld [vmem:[%s5415_s29 + $0x20] sm:$0x1] }
 0x123   : > { %v1194_v17 = vor.u32 %v1193_v11, %v6142_v51  ;;  %v1348_v6 = vrot.slane %v1346_v15, 4  ;;  %v1349_v34 = vrot.slane %v5302_v21, 5 }
 0x124   : > { %v1184_v44 = vor.u32 %v1183_v18, %v1180_v56  ;;  %v816_v25 = vrot.slane %v814_v29, 4 }
 0x125   : > { %v1195_v56 = vrot.slane %v1194_v17, 4 }
 0x126   : > { %v1185_v2 = vrot.slane %v1184_v44, 4 }
 0x127   : > { %v3457_v62 = vpop.f32.mrf.mxu2  ;;  %v3541_v38 = vpop.f32.mrf.mxu3 }
 0x128   : > { %v6147_v3 = vadd.f32 %v3457_v62, %v5879_v23  ;;  %v3542_v9 = vadd.f32 %v3541_v38, %v6102_v59  ;;  %v1197_v23 = vshll.u32 %v4443_v48, 16  ;;  %v817_v59 = vrot.slane %v5884_v7, 5  ;;  %v4425_v38 = vld [vmem:[%s5415_s29 + $0xa8] sm:$0xf]  ;;  %v4426_v48 = vld [vmem:[%s5415_s29 + $0xac] sm:$0xf] }
 0x129   : > { %v815_v7 = vsel %vm5627_vm5, %v4395_v60, %v814_v29  ;;  %v1205_v16 = vshll.u32 %v4425_v38, 16  ;;  %v1215_v5 = vshrl.u32 %v4426_v48, 16  ;;  %v1350_v29 = vsel %vm5627_vm5, %v1348_v6, %v1349_v34 }
 0x12a   : > { %v6153_v26 = vpop.f32.mrf.mxu1  ;;  %v6155_v22 = vpop.f32.mrf.mxu0  ;;  %v6161_v24 = vadd.f32 %v6095_v30, %v3542_v9  ;;  %v1199_v18 = vrot.slane %v1197_v23, 5  ;;  %v818_v30 = vsel %vm5627_vm5, %v816_v25, %v817_v59  ;;  %v2226_v17 = vunpack.c.l.b16 %v815_v7  ;;  %v5303_v7 = vld [vmem:[%s5415_s29 + $0x28] sm:$0xf] }
 0x12b   : > { %v1207_v60 = vrot.slane %v1205_v16, 5  ;;  %v4449_v16 = vld [vmem:[%s5415_s29 + $0x24] sm:$0xe] }
 0x12c   : > { %3499 = vmatmul.bf16.gmra.mxu2 %v2245_v63  ;;  %3583 = vmatmul.bf16.gmra.mxu3 %v5068_v53  ;;  %v1202_v53 = vshrl.u32 %v4425_v38, 16 }
 0x12d   : > { %3711 = vmatmul.bf16.vlgmr.msrb.gmra.mxu1 %v2442_v39  ;;  %3677 = vmatmul.bf16.gmra.mxu0 %v2389_v42  ;;  %v1347_v39 = vsel %vm5627_vm5, %v4464_v20, %v1346_v15  ;;  %v1211_v42 = vshll.u32 %v4426_v48, 16  ;;  %v2227_v15 = vunpack.c.l.b16 %v818_v30  ;;  %v1217_v20 = vrot.slane %v1215_v5, 4 }
 0x12e   : > { %v1204_v23 = vrot.slane %v1202_v53, 4  ;;  %v2412_v6 = vunpack.c.l.b16 %v1347_v39  ;;  %v1353_v30 = vrot.slane %v5303_v7, 5  ;;  %v5069_v53 = vld [vmem:[%s5415_s29 + $0x90] sm:$0xff]  ;;  %v4428_v7 = vld [vmem:[%s5415_s29 + $0xb8] sm:$0xf] }
 0x12f   : > { %v3460_v11 = vpop.f32.mrf.mxu2  ;;  %v3544_v62 = vpop.f32.mrf.mxu3  ;;  %v6190_v59 = vrot.slane %v1211_v42, 5 }
 0x130   : > { %v6171_v9 = vadd.f32 %v3460_v11, %v5900_v12  ;;  %v3545_v63 = vadd.f32 %v3544_v62, %v6123_v45  ;;  %v1190_v12 = vsel %vm5452_vm2, %v1185_v2, %v6142_v51  ;;  %v1200_v45 = vsel %vm5452_vm2, %v1195_v56, %v1199_v18  ;;  %v4444_v2 = vld [vmem:[%s5415_s29 + $0xb0] sm:$0x1]  ;;  %v674_v62 = vld [vmem:[%s5415_s29 + $0x9c] sm:$0xe] }
 0x131   : > { %v2413_v51 = vunpack.c.l.b16 %v1350_v29  ;;  %v2370_v21 = vunpack.c.l.b16 %v1190_v12  ;;  %v2371_v34 = vunpack.c.l.b16 %v1200_v45  ;;  %v2246_v11 = vpack.c.b16 %v2227_v15, %v2226_v17 }
 0x132   : > { %v6178_v57 = vpop.f32.mrf.mxu0  ;;  %v6186_v44 = vadd.f32 %v6111_v43, %v3545_v63  ;;  %v6188_v25 = vpop.f32.mrf.mxu1  ;;  %v821_v43 = vrot.slane %v5904_v27, 5  ;;  %v1208_v38 = vor.u32 %v1207_v60, %v1204_v23  ;;  %v1218_v39 = vor.u32 %v1217_v20, %v6190_v59  ;;  %v5304_v60 = vld [vmem:[%s5415_s29 + $0x2c] sm:$0x1] }
 0x133   : > { %v1221_v42 = vshll.u32 %v4444_v2, 16  ;;  %v2443_v5 = vpack.c.b16 %v2413_v51, %v2412_v6  ;;  %v2390_v27 = vpack.c.b16 %v2371_v34, %v2370_v21  ;;  %v4396_v12 = vrot.slane %v674_v62, 9  ;;  %v5145_v51 = vld [vmem:[%s7225_s1 + $0x1b8] sm:$0xff]  ;;  %v4427_v62 = vld [vmem:[%s5415_s29 + $0xb4] sm:$0xf] }
 0x134   : > { %v823_v45 = vrot.slane %v821_v43, 4  ;;  %v824_v17 = vrot.slane %v5931_v40, 5  ;;  %v4465_v15 = vrot.slane %v4449_v16, 9  ;;  %v1355_v23 = vrot.slane %v1353_v30, 4  ;;  %3792 = vmatpush.bf16.msra.mxu2 %v5145_v51 }
 0x135   : > { %v1219_v20 = vrot.slane %v1218_v39, 4  ;;  %v1223_v6 = vrot.slane %v1221_v42, 5  ;;  %v1226_v16 = vshrl.u32 %v4427_v62, 16  ;;  %v1229_v39 = vshll.u32 %v4427_v62, 16 }
 0x136   : > { %v825_v2 = vsel %vm5627_vm5, %v823_v45, %v824_v17  ;;  %v1235_v42 = vshll.u32 %v4428_v7, 16 }
 0x137   : > { %v3462_v56 = vpop.f32.mrf.mxu2  ;;  %v3546_v18 = vpop.f32.mrf.mxu3 }
 0x138   : > { %v6197_v48 = vadd.f32 %v3462_v56, %v5928_v0  ;;  %v3547_v63 = vadd.f32 %v3546_v18, %v6147_v3  ;;  %v1356_v0 = vrot.slane %v5304_v60, 5  ;;  %v1209_v3 = vrot.slane %v1208_v38, 4 }
 0x139   : > { %v1354_v18 = vsel %vm5627_vm5, %v4465_v15, %v1353_v30  ;;  %v5144_v30 = vld [vmem:[%s7225_s1 + $0x1b0] sm:$0xff]  ;;  %v1228_v60 = vrot.slane %v1226_v16, 4 }
 0x13a   : > { %v6203_v29 = vpop.f32.mrf.mxu0  ;;  %v6208_v56 = vadd.f32 %v6137_v33, %v3547_v63  ;;  %v6213_v40 = vpop.f32.mrf.mxu1  ;;  %v822_v33 = vsel %vm5627_vm5, %v4396_v12, %v821_v43  ;;  %v1214_v43 = vsel %vm5452_vm2, %v1209_v3, %v6190_v59  ;;  %3793 = vmatpush.bf16.msra.mxu2 %v5144_v30  ;;  %v2229_v59 = vunpack.c.l.b16 %v825_v2  ;;  %v5143_v12 = vld [vmem:[%s7225_s1 + $0x1a8] sm:$0xff]  ;;  %v4450_v16 = vld [vmem:[%s5415_s29 + $0x30] sm:$0xe] }
 0x13b   : > { %v2414_v45 = vunpack.c.l.b16 %v1354_v18  ;;  %v2372_v15 = vunpack.c.l.b16 %v1214_v43  ;;  %v6245_v3 = vrot.slane %v1235_v42, 5 }
 0x13c   : > { %3504 = vmatmul.bf16.gmra.mxu2 %v2246_v11  ;;  %3588 = vmatmul.bf16.gmra.mxu3 %v5069_v53  ;;  %v1357_v11 = vsel %vm5627_vm5, %v1355_v23, %v1356_v0  ;;  %v1224_v53 = vsel %vm5452_vm2, %v1219_v20, %v1223_v6  ;;  %v1231_v0 = vrot.slane %v1229_v39, 5 }
 0x13d   : > { %3716 = vmatmul.bf16.gmra.mxu1 %v2443_v5  ;;  %3682 = vmatmul.bf16.gmra.mxu0 %v2390_v27  ;;  %v1239_v5 = vshrl.u32 %v4428_v7, 16  ;;  %v2228_v27 = vunpack.c.l.b16 %v822_v33  ;;  %v2415_v17 = vunpack.c.l.b16 %v1357_v11  ;;  %v2373_v23 = vunpack.c.l.b16 %v1224_v53  ;;  %v5070_v11 = vld [vmem:[%s5415_s29 + $0x9c] sm:$0xff]  ;;  %v675_v7 = vld [vmem:[%s5415_s29 + $0xa8] sm:$0xe] }
 0x13e   : > { %3794 = vmatpush.bf16.msra.mxu2 %v5143_v12  ;;  %v5142_v53 = vld [vmem:[%s7225_s1 + $0x1a0] sm:$0xff]  ;;  %v1232_v39 = vor.u32 %v1231_v0, %v1228_v60  ;;  %v4466_v12 = vrot.slane %v4450_v16, 9 }
 0x13f   : > { %v3465_v21 = vpop.f32.mrf.mxu2  ;;  %v3549_v34 = vpop.f32.mrf.mxu3  ;;  %v1241_v20 = vrot.slane %v1239_v5, 4  ;;  %v2444_v62 = vpack.c.b16 %v2415_v17, %v2414_v45  ;;  %v2391_v30 = vpack.c.b16 %v2373_v23, %v2372_v15  ;;  %v5141_v17 = vld [vmem:[%s7225_s1 + $0x198] sm:$0xff] }
 0x140   : > { %v6226_v38 = vadd.f32 %v3465_v21, %v5945_v47  ;;  %v3550_v63 = vadd.f32 %v3549_v34, %v6171_v9  ;;  %v2247_v21 = vpack.c.b16 %v2229_v59, %v2228_v27  ;;  %v828_v34 = vrot.slane %v5953_v28, 5  ;;  %v5153_v15 = vld [vmem:[%s7225_s1 + $0x1f8] sm:$0xff] }
 0x141   : > { %v1242_v28 = vor.u32 %v1241_v20, %v6245_v3  ;;  %v831_v59 = vrot.slane %v5987_v1, 5  ;;  %v5306_v23 = vld [vmem:[%s5415_s29 + $0x38] sm:$0x1]  ;;  %v1233_v60 = vrot.slane %v1232_v39, 4  ;;  %3881 = vmatpush.bf16.msra.mxu3 %v5153_v15 }
 0x142   : > { %v6237_v47 = vpop.f32.mrf.mxu0  ;;  %v6240_v9 = vadd.f32 %v6155_v22, %v3550_v63  ;;  %v4445_v22 = vld [vmem:[%s5415_s29 + $0xbc] sm:$0x1]  ;;  %v6249_v33 = vpop.f32.mrf.mxu1  ;;  %v5305_v63 = vld [vmem:[%s5415_s29 + $0x34] sm:$0xf]  ;;  %3795 = vmatpush.bf16.msra.mxu2 %v5142_v53  ;;  %v830_v5 = vrot.slane %v828_v34, 4  ;;  %v1363_v1 = vrot.slane %v5306_v23, 5 }
 0x143   : > { %v1360_v43 = vrot.slane %v5305_v63, 5  ;;  %v1245_v42 = vshll.u32 %v4445_v22, 16  ;;  %v1243_v0 = vrot.slane %v1242_v28, 4  ;;  %v3382_v22 = vadd.f32 %v6004_v10, %v5759_v54  ;;  %v5140_v10 = vld [vmem:[%s7225_s1 + $0x190] sm:$0xff] }
 0x144   : > { %v832_v63 = vsel %vm5627_vm5, %v830_v5, %v831_v59  ;;  %v5160_v53 = vld [vmem:[%s7225_s1 + $0x230] sm:$0xff] }
 0x145   : > { %v1362_v45 = vrot.slane %v1360_v43, 4  ;;  %v1247_v20 = vrot.slane %v1245_v42, 5  ;;  %v1361_v54 = vsel %vm5627_vm5, %v4466_v12, %v1360_v43  ;;  %v5151_v12 = vld [vmem:[%s7225_s1 + $0x1e8] sm:$0xff]  ;;  %v2231_v15 = vunpack.c.l.b16 %v832_v63  ;;  %v5138_v63 = vld [vmem:[%s7225_s1 + $0x180] sm:$0xff] }
 0x146   : > { %3796 = vmatpush.bf16.msra.mxu2 %v5141_v17 }
 0x147   : > { %v3467_v6 = vpop.f32.mrf.mxu2  ;;  %v3551_v51 = vpop.f32.mrf.mxu3  ;;  %v1248_v43 = vsel %vm5452_vm2, %v1243_v0, %v1247_v20 }
 0x148   : > { %v6252_v2 = vadd.f32 %v3467_v6, %v5979_v35  ;;  %v3552_v18 = vadd.f32 %v3551_v51, %v6197_v48  ;;  %v4397_v48 = vrot.slane %v675_v7, 9 }
 0x14a   : > { %v6263_v35 = vpop.f32.mrf.mxu0  ;;  %v6266_v27 = vadd.f32 %v6178_v57, %v3552_v18  ;;  %v5161_v57 = vld [vmem:[%s7225_s1 + $0x238] sm:$0xff]  ;;  %v4429_v18 = vld [vmem:[%s5415_s29 + $0xc0] sm:$0xf]  ;;  %v6308_v39 = vpop.f32.mrf.mxu1  ;;  %3797 = vmatpush.bf16.msra.mxu2 %v5140_v10 }
 0x14b   : > { %3970 = vmatpush.bf16.msra.mxu0 %v5161_v57  ;;  %v1250_v16 = vshrl.u32 %v4429_v18, 16  ;;  %v2416_v57 = vunpack.c.l.b16 %v1361_v54  ;;  %v5150_v54 = vld [vmem:[%s7225_s1 + $0x1e0] sm:$0xff] }
 0x14c   : > { %3509 = vmatmul.bf16.gmra.mxu2 %v2247_v21  ;;  %3593 = vmatmul.bf16.gmra.mxu3 %v5070_v11  ;;  %v829_v21 = vsel %vm5627_vm5, %v4397_v48, %v828_v34  ;;  %v4430_v11 = vld [vmem:[%s5415_s29 + $0xc4] sm:$0xf]  ;;  %v5152_v34 = vld [vmem:[%s7225_s1 + $0x1f0] sm:$0xff]  ;;  %v1253_v48 = vshll.u32 %v4429_v18, 16 }
 0x14d   : > { %3721 = vmatmul.bf16.gmra.mxu1 %v2444_v62  ;;  %3687 = vmatmul.bf16.gmra.mxu0 %v2391_v30  ;;  %v1238_v30 = vsel %vm5452_vm2, %v1233_v60, %v6245_v3  ;;  %v1259_v5 = vshll.u32 %v4430_v11, 16  ;;  %v1263_v59 = vshrl.u32 %v4430_v11, 16  ;;  %v5139_v3 = vld [vmem:[%s7225_s1 + $0x188] sm:$0xff]  ;;  %v2230_v17 = vunpack.c.l.b16 %v829_v21  ;;  %v5158_v10 = vld [vmem:[%s7225_s1 + $0x220] sm:$0xff] }
 0x14e   : > { %3882 = vmatpush.bf16.msra.mxu3 %v5152_v34  ;;  %v2375_v60 = vunpack.c.l.b16 %v1248_v43  ;;  %3798 = vmatpush.bf16.msra.mxu2 %v5139_v3  ;;  %v1252_v0 = vrot.slane %v1250_v16, 4  ;;  %v1255_v20 = vrot.slane %v1253_v48, 5  ;;  %v5071_v11 = vld [vmem:[%s5415_s29 + $0xa8] sm:$0xff]  ;;  %v5307_v43 = vld [vmem:[%s5415_s29 + $0x40] sm:$0xf] }
 0x14f   : > { %v3470_v6 = vpop.f32.mrf.mxu2  ;;  %v3554_v51 = vpop.f32.mrf.mxu3  ;;  %3971 = vmatpush.bf16.msra.mxu0 %v5160_v53  ;;  %v676_v53 = vld [vmem:[%s5415_s29 + $0xb4] sm:$0xe]  ;;  %v4451_v48 = vld [vmem:[%s5415_s29 + $0x3c] sm:$0xe] }
 0x150   : > { %v6285_v62 = vadd.f32 %v3470_v6, %v3382_v22  ;;  %v3555_v7 = vadd.f32 %v3554_v51, %v6226_v38  ;;  %v1364_v38 = vsel %vm5627_vm5, %v1362_v45, %v1363_v1  ;;  %v3384_v45 = vadd.f32 %v6038_v55, %v5790_v41  ;;  %v4446_v41 = vld [vmem:[%s5415_s29 + $0xc8] sm:$0x1] }
 0x151   : > { %v2417_v23 = vunpack.c.l.b16 %v1364_v38  ;;  %v2374_v1 = vunpack.c.l.b16 %v1238_v30  ;;  %v6326_v22 = vrot.slane %v1259_v5, 5  ;;  %v1265_v6 = vrot.slane %v1263_v59, 4 }
 0x152   : > { %v6311_v28 = vadd.f32 %v6203_v29, %v3555_v7  ;;  %v6313_v42 = vpop.f32.mrf.mxu0  ;;  %v5159_v29 = vld [vmem:[%s7225_s1 + $0x228] sm:$0xff]  ;;  %3883 = vmatpush.bf16.msra.mxu3 %v5151_v12  ;;  %v2248_v7 = vpack.c.b16 %v2231_v15, %v2230_v17  ;;  %v835_v38 = vrot.slane %v6010_v13, 5  ;;  %3799 = vmatpush.bf16.msra.mxu2 %v5138_v63  ;;  %v1256_v5 = vor.u32 %v1255_v20, %v1252_v0  ;;  %v5149_v17 = vld [vmem:[%s7225_s1 + $0x1d8] sm:$0xff] }
 0x153   : > { %3972 = vmatpush.bf16.msra.mxu0 %v5159_v29  ;;  %v2445_v34 = vpack.c.b16 %v2417_v23, %v2416_v57  ;;  %v2392_v30 = vpack.c.b16 %v2375_v60, %v2374_v1  ;;  %v1266_v59 = vor.u32 %v1265_v6, %v6326_v22  ;;  %v1269_v3 = vshll.u32 %v4446_v41, 16  ;;  %v6354_v29 = vpop.f32.mrf.mxu1  ;;  %v5157_v15 = vld [vmem:[%s7225_s1 + $0x218] sm:$0xff]  ;;  %v5156_v41 = vld [vmem:[%s7225_s1 + $0x210] sm:$0xff] }
 0x154   : > { %v3387_v13 = vadd.f32 %v6070_v8, %v5810_v19  ;;  %v838_v57 = vrot.slane %v6053_v52, 5  ;;  %v4467_v23 = vrot.slane %v4451_v48, 9  ;;  %v5308_v8 = vld [vmem:[%s5415_s29 + $0x44] sm:$0x1]  ;;  %v1257_v60 = vrot.slane %v1256_v5, 4  ;;  %v5148_v52 = vld [vmem:[%s7225_s1 + $0x1d0] sm:$0xff] }
 0x155   : > { %v1370_v1 = vrot.slane %v5308_v8, 5  ;;  %v1267_v0 = vrot.slane %v1266_v59, 4  ;;  %v1271_v20 = vrot.slane %v1269_v3, 5  ;;  %v3389_v59 = vadd.f32 %v6093_v36, %v5841_v37  ;;  %v5154_v37 = vld [vmem:[%s7225_s1 + $0x200] sm:$0xff]  ;;  %v4452_v8 = vld [vmem:[%s5415_s29 + $0x48] sm:$0xe] }
 0x156   : > { %3884 = vmatpush.bf16.msra.mxu3 %v5150_v54 }
 0x157   : > { %v3472_v51 = vpop.f32.mrf.mxu2  ;;  %v3556_v18 = vpop.f32.mrf.mxu3  ;;  %3973 = vmatpush.bf16.msra.mxu0 %v5158_v10 }
 0x158   : > { %v6330_v55 = vadd.f32 %v3472_v51, %v3384_v45  ;;  %v3557_v21 = vadd.f32 %v3556_v18, %v6252_v2  ;;  %v1367_v2 = vrot.slane %v5307_v43, 5  ;;  %v4398_v45 = vrot.slane %v676_v53, 9 }
 0x159   : > { %v1272_v53 = vsel %vm5452_vm2, %v1267_v0, %v1271_v20  ;;  %v4480_v0 = vld [vmem:[%s5415_s29 + $0x1c] sm:$0xf] }
 0x15a   : > { %v6345_v16 = vpop.f32.mrf.mxu0  ;;  %v6350_v12 = vadd.f32 %v6237_v47, %v3557_v21  ;;  %v837_v47 = vrot.slane %v835_v38, 4  ;;  %v1369_v19 = vrot.slane %v1367_v2, 4  ;;  %3885 = vmatpush.bf16.msra.mxu3 %v5149_v17  ;;  %v836_v21 = vsel %vm5627_vm5, %v4398_v45, %v835_v38  ;;  %v5147_v38 = vld [vmem:[%s7225_s1 + $0x1c8] sm:$0xff] }
 0x15b   : > { %3974 = vmatpush.bf16.msra.mxu0 %v5157_v15  ;;  %v1368_v63 = vsel %vm5627_vm5, %v4467_v23, %v1367_v2  ;;  %v6399_v3 = vpop.f32.mrf.mxu1  ;;  %v5146_v23 = vld [vmem:[%s7225_s1 + $0x1c0] sm:$0xff]  ;;  %v1948_v20 = vrot.slane %v4480_v0, 5 }
 0x15c   : > { %3514 = vmatmul.bf16.gmra.mxu2 %v2248_v7  ;;  %3598 = vmatmul.bf16.gmra.mxu3 %v5071_v11  ;;  %v839_v7 = vsel %vm5627_vm5, %v837_v47, %v838_v57  ;;  %v2418_v2 = vunpack.c.l.b16 %v1368_v63  ;;  %v5072_v57 = vld [vmem:[%s5415_s29 + $0xb4] sm:$0xff]  ;;  %v4511_v63 = vld [vmem:[%s5415_s29 + $0x20] sm:$0x1] }
 0x15d   : > { %3726 = vmatmul.bf16.gmra.mxu1 %v2445_v34  ;;  %3692 = vmatmul.bf16.gmra.mxu0 %v2392_v30  ;;  %v1262_v34 = vsel %vm5452_vm2, %v1257_v60, %v6326_v22  ;;  %v2232_v30 = vunpack.c.l.b16 %v836_v21  ;;  %v2233_v43 = vunpack.c.l.b16 %v839_v7  ;;  %v2377_v22 = vunpack.c.l.b16 %v1272_v53  ;;  %v4479_v7 = vld [vmem:[%s5415_s29 + $0x18] sm:$0xf] }
 0x15e   : > { %3886 = vmatpush.bf16.msra.mxu3 %v5148_v52  ;;  %v2376_v5 = vunpack.c.l.b16 %v1262_v34  ;;  %v1950_v53 = vrot.slane %v1948_v20, 4 }
 0x15f   : > { %v3475_v6 = vpop.f32.mrf.mxu2  ;;  %v3559_v51 = vpop.f32.mrf.mxu3  ;;  %3975 = vmatpush.bf16.msra.mxu0 %v5156_v41  ;;  %v2249_v47 = vpack.c.b16 %v2233_v43, %v2232_v30  ;;  %v5310_v41 = vld [vmem:[%s5415_s29 + $0x50] sm:$0x1] }
 0x160   : > { %v6364_v18 = vadd.f32 %v3475_v6, %v3387_v13  ;;  %v3560_v11 = vadd.f32 %v3559_v51, %v6285_v62  ;;  %v1371_v62 = vsel %vm5627_vm5, %v1369_v19, %v1370_v1  ;;  %v2393_v19 = vpack.c.b16 %v2377_v22, %v2376_v5  ;;  %v5309_v1 = vld [vmem:[%s5415_s29 + $0x4c] sm:$0xf]  ;;  %v4527_v6 = vld [vmem:[%s5415_s29 + $0x18] sm:$0xe] }
 0x161   : > { %v2419_v48 = vunpack.c.l.b16 %v1371_v62  ;;  %v1374_v60 = vrot.slane %v5309_v1, 5  ;;  %v1377_v21 = vrot.slane %v5310_v41, 5  ;;  %v3392_v62 = vadd.f32 %v6109_v49, %v5860_v58  ;;  %v5073_v41 = vld [vmem:[%s5415_s29 + $0xc0] sm:$0xff] }
 0x162   : > { %v6380_v54 = vadd.f32 %v6263_v35, %v3560_v11  ;;  %v6384_v10 = vpop.f32.mrf.mxu0  ;;  %v5155_v35 = vld [vmem:[%s7225_s1 + $0x208] sm:$0xff]  ;;  %3887 = vmatpush.bf16.msra.mxu3 %v5147_v38  ;;  %v4468_v11 = vrot.slane %v4452_v8, 9  ;;  %v4543_v34 = vrot.slane %v4527_v6, 9  ;;  %v1951_v38 = vrot.slane %v4511_v63, 5  ;;  %v5311_v6 = vld [vmem:[%s5415_s29 + $0x58] sm:$0xf] }
 0x163   : > { %3976 = vmatpush.bf16.msra.mxu0 %v5155_v35  ;;  %v2446_v36 = vpack.c.b16 %v2419_v48, %v2418_v2  ;;  %v1376_v52 = vrot.slane %v1374_v60, 4  ;;  %v1499_v48 = vshrl.u32 %v4479_v7, 16  ;;  %v1502_v5 = vshll.u32 %v4479_v7, 16  ;;  %v4453_v7 = vld [vmem:[%s5415_s29 + $0x54] sm:$0xe] }
 0x164   : > { %v1375_v22 = vsel %vm5627_vm5, %v4468_v11, %v1374_v60  ;;  %v1508_v58 = vshll.u32 %v4480_v0, 16  ;;  %v1512_v49 = vshrl.u32 %v4480_v0, 16  ;;  %v3394_v60 = vadd.f32 %v6135_v4, %v5889_v46 }
 0x166   : > { %3888 = vmatpush.bf16.msra.mxu3 %v5146_v23  ;;  %v1501_v23 = vrot.slane %v1499_v48, 4  ;;  %v4469_v48 = vrot.slane %v4453_v7, 9 }
 0x167   : > { %v3477_v13 = vpop.f32.mrf.mxu2  ;;  %v3561_v45 = vpop.f32.mrf.mxu3  ;;  %3977 = vmatpush.bf16.msra.mxu0 %v5154_v37  ;;  %v1504_v37 = vrot.slane %v1502_v5, 5 }
 0x168   : > { %v3478_v17 = vadd.f32 %v3477_v13, %v3389_v59  ;;  %v3562_v15 = vadd.f32 %v3561_v45, %v6330_v55  ;;  %v1378_v59 = vsel %vm5627_vm5, %v1376_v52, %v1377_v21  ;;  %v1949_v45 = vsel %vm5627_vm5, %v4543_v34, %v1948_v20  ;;  %v5074_v21 = vld [vmem:[%s5415_s29 + $0x18] sm:$0xff] }
 0x169   : > { %v2618_v8 = vunpack.c.l.b16 %v1949_v45 }
 0x16a   : > { %v6412_v55 = vpop.f32.mrf.mxu0  ;;  %v6416_v51 = vadd.f32 %v6313_v42, %v3562_v15  ;;  %v6423_v42 = vpop.f32.mrf.mxu1  ;;  %v1952_v15 = vsel %vm5627_vm5, %v1950_v53, %v1951_v38  ;;  %v1518_v38 = vshll.u32 %v4511_v63, 16 }
 0x16b   : > { %v2619_v1 = vunpack.c.l.b16 %v1952_v15  ;;  %v4481_v15 = vld [vmem:[%s5415_s29 + $0x24] sm:$0xf] }
 0x16c   : > { %3519 = vmatmul.bf16.gmra.mxu2 %v2249_v47  ;;  %3603 = vmatmul.bf16.gmra.mxu3 %v5072_v57  ;;  %v2420_v47 = vunpack.c.l.b16 %v1375_v22  ;;  %v2421_v57 = vunpack.c.l.b16 %v1378_v59  ;;  %v4528_v59 = vld [vmem:[%s5415_s29 + $0x24] sm:$0xe]  ;;  %v1520_v45 = vrot.slane %v1518_v38, 5 }
 0x16d   : > { %3731 = vmatmul.bf16.gmra.mxu1 %v2446_v36  ;;  %3697 = vmatmul.bf16.gmra.mxu0 %v2393_v19  ;;  %v1510_v36 = vrot.slane %v1508_v58, 5  ;;  %v1514_v19 = vrot.slane %v1512_v49, 4 }
 0x16e   : > { %v2447_v34 = vpack.c.b16 %v2421_v57, %v2420_v47  ;;  %v4512_v47 = vld [vmem:[%s5415_s29 + $0x2c] sm:$0x1]  ;;  %v7248_v57 = vld [vmem:[#allocation8_spill] sm:$0xff] }
 0x16f   : > { %v3480_v35 = vpop.f32.mrf.mxu2  ;;  %v3564_v30 = vpop.f32.mrf.mxu3  ;;  %v1515_v53 = vor.u32 %v1514_v19, %v1510_v36 }
 0x170   : > { %v6425_v43 = vadd.f32 %v3480_v35, %v3392_v62  ;;  %v3565_v2 = vadd.f32 %v3564_v30, %v6364_v18  ;;  %v1505_v62 = vor.u32 %v1504_v37, %v1501_v23  ;;  %v2650_v35 = vpack.c.b16 %v2619_v1, %v2618_v8  ;;  %v4482_v30 = vld [vmem:[%s5415_s29 + $0x28] sm:$0xf] }
 0x171   : > { %v1955_v4 = vrot.slane %v4482_v30, 5  ;;  %v1516_v49 = vrot.slane %v1515_v53, 4  ;;  %v3397_v23 = vadd.f32 %v6153_v26, %v7248_v57  ;;  %v4544_v37 = vrot.slane %v4528_v59, 9  ;;  %v5313_v57 = vld [vmem:[%s5415_s29 + $0x64] sm:$0xf] }
 0x172   : > { %v6432_v13 = vpop.f32.mrf.mxu0  ;;  %v6439_v18 = vadd.f32 %v6345_v16, %v3565_v2  ;;  %v1381_v16 = vrot.slane %v5311_v6, 5  ;;  %v6450_v2 = vpop.f32.mrf.mxu1  ;;  %v1506_v63 = vrot.slane %v1505_v62, 4  ;;  %v1958_v8 = vrot.slane %v4512_v47, 5 }
 0x173   : > { %v1957_v19 = vrot.slane %v1955_v4, 4  ;;  %v1532_v7 = vshll.u32 %v4482_v30, 16  ;;  %v1536_v62 = vshrl.u32 %v4482_v30, 16 }
 0x174   : > { %v1383_v5 = vrot.slane %v1381_v16, 4  ;;  %v1511_v26 = vsel %vm5452_vm2, %v1506_v63, %v1510_v36 }
 0x175   : > { %v1959_v53 = vsel %vm5627_vm5, %v1957_v19, %v1958_v8  ;;  %v1538_v59 = vrot.slane %v1536_v62, 4  ;;  %v5075_v8 = vld [vmem:[%s5415_s29 + $0x24] sm:$0xff] }
 0x176   : > { %v2621_v63 = vunpack.c.l.b16 %v1959_v53 }
 0x177   : > { %v3482_v0 = vpop.f32.mrf.mxu2  ;;  %v3566_v20 = vpop.f32.mrf.mxu3 }
 0x178   : > { %v6444_v11 = vadd.f32 %v3482_v0, %v3394_v60  ;;  %v3567_v52 = vadd.f32 %v3566_v20, %v3478_v17  ;;  %v5312_v17 = vld [vmem:[%s5415_s29 + $0x5c] sm:$0x1] }
 0x179   : > { %v1384_v22 = vrot.slane %v5312_v17, 5 }
 0x17a   : > { %v6452_v46 = vpop.f32.mrf.mxu0  ;;  %v6457_v58 = vadd.f32 %v6384_v10, %v3567_v52  ;;  %v1382_v10 = vsel %vm5627_vm5, %v4469_v48, %v1381_v16  ;;  %v1523_v52 = vshrl.u32 %v4481_v15, 16  ;;  %v1956_v16 = vsel %vm5627_vm5, %v4544_v37, %v1955_v4  ;;  %v6483_v36 = vpop.f32.mrf.mxu1 }
 0x17b   : > { %v1385_v0 = vsel %vm5627_vm5, %v1383_v5, %v1384_v22  ;;  %v2422_v38 = vunpack.c.l.b16 %v1382_v10  ;;  %v2554_v48 = vunpack.c.l.b16 %v1511_v26  ;;  %v1534_v22 = vrot.slane %v1532_v7, 5  ;;  %v4484_v26 = vld [vmem:[%s5415_s29 + $0x34] sm:$0xf] }
 0x17c   : > { %3608 = vmatmul.bf16.gmra.mxu3 %v5073_v41  ;;  %3800 = vmatmul.bf16.vlgmr.msra.gmra.mxu2 %v5074_v21  ;;  %v1526_v41 = vshll.u32 %v4481_v15, 16  ;;  %v1521_v21 = vsel %vm5452_vm2, %v1516_v49, %v1520_v45  ;;  %v1525_v30 = vrot.slane %v1523_v52, 4  ;;  %v2620_v4 = vunpack.c.l.b16 %v1956_v16  ;;  %v7249_v49 = vld [vmem:[#allocation10_spill] sm:$0xff]  ;;  %v5314_v16 = vld [vmem:[%s5415_s29 + $0x68] sm:$0x1] }
 0x17d   : > { %3736 = vmatmul.bf16.gmra.mxu1 %v2447_v34  ;;  %3978 = vmatmul.bf16.vlgmr.msra.gmra.mxu0 %v2650_v35  ;;  %v2423_v35 = vunpack.c.l.b16 %v1385_v0  ;;  %v2555_v5 = vunpack.c.l.b16 %v1521_v21  ;;  %v3399_v45 = vadd.f32 %v6188_v25, %v7249_v49  ;;  %v1542_v52 = vshll.u32 %v4512_v47, 16 }
 0x17e   : > { %v1528_v17 = vrot.slane %v1526_v41, 5  ;;  %v2651_v41 = vpack.c.b16 %v2621_v63, %v2620_v4  ;;  %v1962_v21 = vrot.slane %v4484_v26, 5  ;;  %v1391_v53 = vrot.slane %v5314_v16, 5 }
 0x17f   : > { %v3485_v1 = vpop.f32.mrf.mxu2  ;;  %v3569_v60 = vpop.f32.mrf.mxu3  ;;  %v2448_v0 = vpack.c.b16 %v2423_v35, %v2422_v38  ;;  %v1544_v35 = vrot.slane %v1542_v52, 5 }
 0x180   : > { %v6467_v20 = vadd.f32 %v3485_v1, %v3397_v23  ;;  %v3570_v6 = vadd.f32 %v3569_v60, %v6425_v43  ;;  %v1388_v23 = vrot.slane %v5313_v57, 5  ;;  %v2586_v1 = vpack.c.b16 %v2555_v5, %v2554_v48  ;;  %v4454_v60 = vld [vmem:[%s5415_s29 + $0x60] sm:$0xe]  ;;  %v4483_v48 = vld [vmem:[%s5415_s29 + $0x30] sm:$0xf] }
 0x181   : > { %v1529_v10 = vor.u32 %v1528_v17, %v1525_v30  ;;  %v4470_v7 = vrot.slane %v4454_v60, 9  ;;  %v4513_v5 = vld [vmem:[%s5415_s29 + $0x38] sm:$0x1]  ;;  %v7250_v30 = vld [vmem:[#allocation12_spill] sm:$0xff]  ;;  %v1964_v63 = vrot.slane %v1962_v21, 4  ;;  %v1550_v60 = vshll.u32 %v4483_v48, 16 }
 0x182   : > { %v6474_v34 = vpop.f32.mrf.mxu0  ;;  %v6481_v43 = vadd.f32 %v6412_v55, %v3570_v6  ;;  %v1539_v6 = vor.u32 %v1538_v59, %v1534_v22  ;;  %v1390_v62 = vrot.slane %v1388_v23, 4  ;;  %v3402_v17 = vadd.f32 %v6213_v40, %v7250_v30  ;;  %v6505_v59 = vpop.f32.mrf.mxu1 }
 0x183   : > { %v1530_v38 = vrot.slane %v1529_v10, 4 }
 0x184   : > { %v1540_v47 = vrot.slane %v1539_v6, 4  ;;  %v1392_v57 = vsel %vm5627_vm5, %v1390_v62, %v1391_v53  ;;  %v1560_v6 = vshrl.u32 %v4484_v26, 16 }
 0x185   : > { %v1535_v40 = vsel %vm5452_vm2, %v1530_v38, %v1534_v22  ;;  %v2425_v62 = vunpack.c.l.b16 %v1392_v57  ;;  %v4455_v57 = vld [vmem:[%s5415_s29 + $0x6c] sm:$0xe] }
 0x186   : > { %v1545_v10 = vsel %vm5452_vm2, %v1540_v47, %v1544_v35  ;;  %v2556_v22 = vunpack.c.l.b16 %v1535_v40  ;;  %v1562_v38 = vrot.slane %v1560_v6, 4 }
 0x187   : > { %v3487_v55 = vpop.f32.mrf.mxu2  ;;  %v3571_v15 = vpop.f32.mrf.mxu3  ;;  %v2557_v16 = vunpack.c.l.b16 %v1545_v10  ;;  %v4486_v10 = vld [vmem:[%s5415_s29 + $0x40] sm:$0xf] }
 0x188   : > { %v6488_v37 = vadd.f32 %v3487_v55, %v3399_v45  ;;  %v3572_v19 = vadd.f32 %v3571_v15, %v6444_v11  ;;  %v4529_v11 = vld [vmem:[%s5415_s29 + $0x30] sm:$0xe]  ;;  %v1965_v45 = vrot.slane %v4513_v5, 5  ;;  %v1389_v15 = vsel %vm5627_vm5, %v4470_v7, %v1388_v23 }
 0x189   : > { %v4545_v4 = vrot.slane %v4529_v11, 9  ;;  %v2424_v7 = vunpack.c.l.b16 %v1389_v15  ;;  %v2587_v15 = vpack.c.b16 %v2557_v16, %v2556_v22  ;;  %v1969_v6 = vrot.slane %v4486_v10, 5  ;;  %v4485_v22 = vld [vmem:[%s5415_s29 + $0x3c] sm:$0xf]  ;;  %v4514_v16 = vld [vmem:[%s5415_s29 + $0x44] sm:$0x1] }
 0x18a   : > { %v6494_v25 = vpop.f32.mrf.mxu0  ;;  %v6499_v49 = vadd.f32 %v6432_v13, %v3572_v19 }
 0x18b   : > { %v1963_v23 = vsel %vm5627_vm5, %v4545_v4, %v1962_v21  ;;  %v7251_v21 = vld [vmem:[#allocation14_spill] sm:$0xff] }
 0x18c   : > { %3805 = vmatmul.bf16.gmra.mxu2 %v5075_v8  ;;  %3889 = vmatmul.bf16.vlgmr.msra.gmra.mxu3 %v2586_v1  ;;  %v1547_v1 = vshrl.u32 %v4483_v48, 16  ;;  %v2622_v47 = vunpack.c.l.b16 %v1963_v23  ;;  %v3404_v48 = vadd.f32 %v6249_v33, %v7251_v21  ;;  %v1566_v33 = vshll.u32 %v4513_v5, 16  ;;  %v5316_v21 = vld [vmem:[%s5415_s29 + $0x74] sm:$0x1] }
 0x18d   : > { %3741 = vmatmul.bf16.gmra.mxu1 %v2448_v0  ;;  %3983 = vmatmul.bf16.gmra.mxu0 %v2651_v41  ;;  %v1556_v0 = vshll.u32 %v4484_v26, 16  ;;  %v1966_v41 = vsel %vm5627_vm5, %v1964_v63, %v1965_v45  ;;  %v1552_v26 = vrot.slane %v1550_v60, 5  ;;  %v6530_v63 = vpop.f32.mrf.mxu1  ;;  %v4471_v23 = vrot.slane %v4455_v57, 9 }
 0x18e   : > { %v1549_v53 = vrot.slane %v1547_v1, 4  ;;  %v2623_v35 = vunpack.c.l.b16 %v1966_v41  ;;  %v2449_v1 = vpack.c.b16 %v2425_v62, %v2424_v7  ;;  %v1568_v62 = vrot.slane %v1566_v33, 5 }
 0x18f   : > { %v3490_v55 = vpop.f32.mrf.mxu2  ;;  %v3574_v13 = vpop.f32.mrf.mxu3  ;;  %v1558_v11 = vrot.slane %v1556_v0, 5  ;;  %v1571_v57 = vshrl.u32 %v4485_v22, 16  ;;  %v1584_v33 = vshrl.u32 %v4486_v10, 16 }
 0x190   : > { %v6511_v19 = vadd.f32 %v3490_v55, %v3402_v17  ;;  %v3575_v8 = vadd.f32 %v3574_v13, %v6467_v20  ;;  %v5076_v13 = vld [vmem:[%s5415_s29 + $0x30] sm:$0xff]  ;;  %v2652_v40 = vpack.c.b16 %v2623_v35, %v2622_v47  ;;  %v1971_v47 = vrot.slane %v1969_v6, 4 }
 0x191   : > { %v1563_v60 = vor.u32 %v1562_v38, %v1558_v11  ;;  %v1972_v35 = vrot.slane %v4514_v16, 5 }
 0x192   : > { %v6518_v52 = vpop.f32.mrf.mxu0  ;;  %v6525_v20 = vadd.f32 %v6452_v46, %v3575_v8  ;;  %v5315_v46 = vld [vmem:[%s5415_s29 + $0x70] sm:$0xf]  ;;  %v1553_v8 = vor.u32 %v1552_v26, %v1549_v53  ;;  %v7252_v53 = vld [vmem:[#allocation2_spill] sm:$0xff] }
 0x193   : > { %v1395_v4 = vrot.slane %v5315_v46, 5  ;;  %v1564_v5 = vrot.slane %v1563_v60, 4  ;;  %v3407_v26 = vadd.f32 %v6308_v39, %v7252_v53  ;;  %v1580_v60 = vshll.u32 %v4486_v10, 16 }
 0x194   : > { %v1554_v7 = vrot.slane %v1553_v8, 4  ;;  %v1574_v8 = vshll.u32 %v4485_v22, 16  ;;  %v1573_v10 = vrot.slane %v1571_v57, 4 }
 0x195   : > { %v1397_v41 = vrot.slane %v1395_v4, 4 }
 0x196   : > { %v1559_v39 = vsel %vm5452_vm2, %v1554_v7, %v1558_v11  ;;  %v1576_v7 = vrot.slane %v1574_v8, 5 }
 0x197   : > { %v3492_v30 = vpop.f32.mrf.mxu2  ;;  %v3576_v17 = vpop.f32.mrf.mxu3 }
 0x198   : > { %v6532_v45 = vadd.f32 %v3492_v30, %v3404_v48  ;;  %v3577_v55 = vadd.f32 %v3576_v17, %v6488_v37  ;;  %v1398_v48 = vrot.slane %v5316_v21, 5  ;;  %v4530_v37 = vld [vmem:[%s5415_s29 + $0x3c] sm:$0xe]  ;;  %v1577_v57 = vor.u32 %v1576_v7, %v1573_v10  ;;  %v4515_v10 = vld [vmem:[%s5415_s29 + $0x50] sm:$0x1] }
 0x199   : > { %v4546_v38 = vrot.slane %v4530_v37, 9  ;;  %v7254_v7 = vld [vmem:[#allocation4_spill] sm:$0xff] }
 0x19a   : > { %v6538_v0 = vpop.f32.mrf.mxu0  ;;  %v6543_v30 = vadd.f32 %v6474_v34, %v3577_v55  ;;  %v1396_v34 = vsel %vm5627_vm5, %v4471_v23, %v1395_v4  ;;  %v1399_v55 = vsel %vm5627_vm5, %v1397_v41, %v1398_v48  ;;  %v2558_v48 = vunpack.c.l.b16 %v1559_v39 }
 0x19b   : > { %v1970_v23 = vsel %vm5627_vm5, %v4546_v38, %v1969_v6  ;;  %v2426_v11 = vunpack.c.l.b16 %v1396_v34  ;;  %v2427_v21 = vunpack.c.l.b16 %v1399_v55  ;;  %v7253_v6 = vld [vmem:[#allocation3_spill] sm:$0xff]  ;;  %v5077_v34 = vld [vmem:[%s5415_s29 + $0x3c] sm:$0xff] }
 0x19c   : > { %3810 = vmatmul.bf16.gmra.mxu2 %v5076_v13  ;;  %3894 = vmatmul.bf16.gmra.mxu3 %v2587_v15  ;;  %v2624_v22 = vunpack.c.l.b16 %v1970_v23 }
 0x19d   : > { %3746 = vmatmul.bf16.gmra.mxu1 %v2449_v1  ;;  %3988 = vmatmul.bf16.gmra.mxu0 %v2652_v40  ;;  %v1569_v1 = vsel %vm5452_vm2, %v1564_v5, %v1568_v62  ;;  %v6560_v40 = vpop.f32.mrf.mxu1  ;;  %v1582_v5 = vrot.slane %v1580_v60, 5  ;;  %v1586_v62 = vrot.slane %v1584_v33, 4  ;;  %v2450_v8 = vpack.c.b16 %v2427_v21, %v2426_v11  ;;  %v4488_v33 = vld [vmem:[%s5415_s29 + $0x4c] sm:$0xf] }
 0x19e   : > { %v2559_v37 = vunpack.c.l.b16 %v1569_v1  ;;  %v1590_v1 = vshll.u32 %v4514_v16, 16  ;;  %v1976_v23 = vrot.slane %v4488_v33, 5  ;;  %v1578_v16 = vrot.slane %v1577_v57, 4 }
 0x19f   : > { %v3495_v17 = vpop.f32.mrf.mxu2  ;;  %v3579_v46 = vpop.f32.mrf.mxu3  ;;  %v1587_v39 = vor.u32 %v1586_v62, %v1582_v5  ;;  %v3412_v62 = vadd.f32 %v6399_v3, %v7254_v7 }
 0x1a0   : > { %v6553_v13 = vadd.f32 %v3495_v17, %v3407_v26  ;;  %v3580_v15 = vadd.f32 %v3579_v46, %v6511_v19  ;;  %v1973_v19 = vsel %vm5627_vm5, %v1971_v47, %v1972_v35  ;;  %v3409_v26 = vadd.f32 %v6354_v29, %v7253_v6 }
 0x1a1   : > { %v2625_v53 = vunpack.c.l.b16 %v1973_v19  ;;  %v2588_v55 = vpack.c.b16 %v2559_v37, %v2558_v48  ;;  %v1588_v11 = vrot.slane %v1587_v39, 4  ;;  %v1592_v21 = vrot.slane %v1590_v1, 5  ;;  %v4487_v37 = vld [vmem:[%s5415_s29 + $0x48] sm:$0xf] }
 0x1a2   : > { %v6562_v4 = vpop.f32.mrf.mxu0  ;;  %v6569_v41 = vadd.f32 %v6494_v25, %v3580_v15  ;;  %v5317_v25 = vld [vmem:[%s5415_s29 + $0x7c] sm:$0xf]  ;;  %v4456_v15 = vld [vmem:[%s5415_s29 + $0x78] sm:$0xe]  ;;  %v1598_v39 = vshll.u32 %v4487_v37, 16  ;;  %v1583_v3 = vsel %vm5452_vm2, %v1578_v16, %v1582_v5 }
 0x1a3   : > { %v1402_v35 = vrot.slane %v5317_v25, 5  ;;  %v2653_v60 = vpack.c.b16 %v2625_v53, %v2624_v22  ;;  %v4472_v19 = vrot.slane %v4456_v15, 9  ;;  %v1978_v53 = vrot.slane %v1976_v23, 4 }
 0x1a4   : > { %v1979_v25 = vrot.slane %v4515_v10, 5  ;;  %v1593_v1 = vsel %vm5452_vm2, %v1588_v11, %v1592_v21  ;;  %v2560_v5 = vunpack.c.l.b16 %v1583_v3 }
 0x1a5   : > { %v1404_v6 = vrot.slane %v1402_v35, 4  ;;  %v6587_v48 = vpop.f32.mrf.mxu1  ;;  %v2561_v16 = vunpack.c.l.b16 %v1593_v1 }
 0x1a7   : > { %v3497_v38 = vpop.f32.mrf.mxu2  ;;  %v3581_v47 = vpop.f32.mrf.mxu3 }
 0x1a8   : > { %v6574_v17 = vadd.f32 %v3497_v38, %v3409_v26  ;;  %v3582_v46 = vadd.f32 %v3581_v47, %v6532_v45  ;;  %v5318_v26 = vld [vmem:[%s5415_s29 + $0x80] sm:$0x1]  ;;  %v4531_v45 = vld [vmem:[%s5415_s29 + $0x48] sm:$0xe] }
 0x1a9   : > { %v1405_v38 = vrot.slane %v5318_v26, 5  ;;  %v4547_v22 = vrot.slane %v4531_v45, 9  ;;  %v1608_v26 = vshrl.u32 %v4488_v33, 16 }
 0x1aa   : > { %v6580_v29 = vpop.f32.mrf.mxu0  ;;  %v6585_v47 = vadd.f32 %v6518_v52, %v3582_v46  ;;  %v1403_v46 = vsel %vm5627_vm5, %v4472_v19, %v1402_v35  ;;  %v1980_v19 = vsel %vm5627_vm5, %v1978_v53, %v1979_v25 }
 0x1ab   : > { %v1977_v35 = vsel %vm5627_vm5, %v4547_v22, %v1976_v23  ;;  %v7256_v23 = vld [vmem:[#allocation5_spill] sm:$0xff] }
 0x1ac   : > { %3815 = vmatmul.bf16.gmra.mxu2 %v5077_v34  ;;  %3899 = vmatmul.bf16.gmra.mxu3 %v2588_v55  ;;  %v1406_v34 = vsel %vm5627_vm5, %v1404_v6, %v1405_v38  ;;  %v2428_v6 = vunpack.c.l.b16 %v1403_v46  ;;  %v2626_v7 = vunpack.c.l.b16 %v1977_v35  ;;  %v3414_v22 = vadd.f32 %v6423_v42, %v7256_v23  ;;  %v4490_v35 = vld [vmem:[%s5415_s29 + $0x58] sm:$0xf] }
 0x1ad   : > { %3751 = vmatmul.bf16.gmra.mxu1 %v2450_v8  ;;  %3993 = vmatmul.bf16.gmra.mxu0 %v2653_v60  ;;  %v1595_v8 = vshrl.u32 %v4487_v37, 16  ;;  %v1604_v60 = vshll.u32 %v4488_v33, 16  ;;  %v2429_v38 = vunpack.c.l.b16 %v1406_v34  ;;  %v1600_v33 = vrot.slane %v1598_v39, 5  ;;  %v6615_v53 = vpop.f32.mrf.mxu1  ;;  %v4457_v39 = vld [vmem:[%s5415_s29 + $0x84] sm:$0xe] }
 0x1ae   : > { %v1610_v37 = vrot.slane %v1608_v26, 4  ;;  %v1614_v42 = vshll.u32 %v4515_v10, 16  ;;  %v1983_v23 = vrot.slane %v4490_v35, 5 }
 0x1af   : > { %v3500_v15 = vpop.f32.mrf.mxu2  ;;  %v3584_v52 = vpop.f32.mrf.mxu3  ;;  %v1597_v11 = vrot.slane %v1595_v8, 4  ;;  %v1606_v21 = vrot.slane %v1604_v60, 5  ;;  %v2589_v8 = vpack.c.b16 %v2561_v16, %v2560_v5  ;;  %v2451_v1 = vpack.c.b16 %v2429_v38, %v2428_v6  ;;  %v4489_v5 = vld [vmem:[%s5415_s29 + $0x54] sm:$0xf]  ;;  %v4516_v16 = vld [vmem:[%s5415_s29 + $0x5c] sm:$0x1] }
 0x1b0   : > { %v6597_v55 = vadd.f32 %v3500_v15, %v3412_v62  ;;  %v3585_v57 = vadd.f32 %v3584_v52, %v6553_v13  ;;  %v2627_v62 = vunpack.c.l.b16 %v1980_v19  ;;  %v5319_v15 = vld [vmem:[%s5415_s29 + $0x88] sm:$0xf]  ;;  %v1616_v38 = vrot.slane %v1614_v42, 5 }
 0x1b1   : > { %v1409_v52 = vrot.slane %v5319_v15, 5  ;;  %v1601_v3 = vor.u32 %v1600_v33, %v1597_v11  ;;  %v1611_v60 = vor.u32 %v1610_v37, %v1606_v21  ;;  %v4473_v15 = vrot.slane %v4457_v39, 9  ;;  %v7258_v11 = vld [vmem:[#allocation6_spill] sm:$0xff] }
 0x1b2   : > { %v6604_v45 = vpop.f32.mrf.mxu0  ;;  %v6611_v13 = vadd.f32 %v6538_v0, %v3585_v57  ;;  %v5078_v57 = vld [vmem:[%s5415_s29 + $0x48] sm:$0xff]  ;;  %v2654_v26 = vpack.c.b16 %v2627_v62, %v2626_v7  ;;  %v3417_v33 = vadd.f32 %v6450_v2, %v7258_v11  ;;  %v1985_v7 = vrot.slane %v1983_v23, 4 }
 0x1b3   : > { %v1602_v6 = vrot.slane %v1601_v3, 4  ;;  %v1612_v10 = vrot.slane %v1611_v60, 4  ;;  %v1986_v62 = vrot.slane %v4516_v16, 5  ;;  %v1622_v60 = vshll.u32 %v4489_v5, 16 }
 0x1b4   : > { %7255 = vst [vmem:[#allocation8_spill] sm:$0xff] %v6611_v13 }
 0x1b5   : > { %v1607_v2 = vsel %vm5452_vm2, %v1602_v6, %v1606_v21  ;;  %v1617_v42 = vsel %vm5452_vm2, %v1612_v10, %v1616_v38 }
 0x1b6   : > { %v2562_v21 = vunpack.c.l.b16 %v1607_v2  ;;  %v2563_v6 = vunpack.c.l.b16 %v1617_v42 }
 0x1b7   : > { %v3502_v0 = vpop.f32.mrf.mxu2  ;;  %v3586_v25 = vpop.f32.mrf.mxu3 }
 0x1b8   : > { %v6618_v46 = vadd.f32 %v3502_v0, %v3414_v22  ;;  %v3587_v34 = vadd.f32 %v3586_v25, %v6574_v17  ;;  %v1411_v22 = vrot.slane %v1409_v52, 4  ;;  %v5320_v0 = vld [vmem:[%s5415_s29 + $0x8c] sm:$0x1]  ;;  %v4532_v17 = vld [vmem:[%s5415_s29 + $0x54] sm:$0xe] }
 0x1b9   : > { %v1412_v13 = vrot.slane %v5320_v0, 5  ;;  %v4548_v37 = vrot.slane %v4532_v17, 9  ;;  %v1632_v17 = vshrl.u32 %v4490_v35, 16 }
 0x1ba   : > { %v6624_v19 = vpop.f32.mrf.mxu0  ;;  %v6629_v25 = vadd.f32 %v6562_v4, %v3587_v34  ;;  %v1410_v4 = vsel %vm5627_vm5, %v4473_v15, %v1409_v52  ;;  %v1987_v15 = vsel %vm5627_vm5, %v1985_v7, %v1986_v62 }
 0x1bb   : > { %v1413_v34 = vsel %vm5627_vm5, %v1411_v22, %v1412_v13  ;;  %v1984_v13 = vsel %vm5627_vm5, %v4548_v37, %v1983_v23  ;;  %v2430_v22 = vunpack.c.l.b16 %v1410_v4  ;;  %v1634_v11 = vrot.slane %v1632_v17, 4  ;;  %v7260_v23 = vld [vmem:[#allocation7_spill] sm:$0xff] }
 0x1bc   : > { %7257 = vst [vmem:[#allocation10_spill] sm:$0xff] %v6629_v25  ;;  %3820 = vmatmul.bf16.gmra.mxu2 %v5078_v57  ;;  %3904 = vmatmul.bf16.gmra.mxu3 %v2589_v8  ;;  %v6639_v57 = vpop.f32.mrf.mxu1  ;;  %v3419_v37 = vadd.f32 %v6483_v36, %v7260_v23  ;;  %v1638_v17 = vshll.u32 %v4516_v16, 16 }
 0x1bd   : > { %3756 = vmatmul.bf16.gmra.mxu1 %v2451_v1  ;;  %3998 = vmatmul.bf16.gmra.mxu0 %v2654_v26  ;;  %v1619_v1 = vshrl.u32 %v4489_v5, 16  ;;  %v1628_v26 = vshll.u32 %v4490_v35, 16  ;;  %v2431_v5 = vunpack.c.l.b16 %v1413_v34  ;;  %v1624_v35 = vrot.slane %v1622_v60, 5  ;;  %v4458_v60 = vld [vmem:[%s5415_s29 + $0x90] sm:$0xe] }
 0x1bf   : > { %v3505_v39 = vpop.f32.mrf.mxu2  ;;  %v3589_v0 = vpop.f32.mrf.mxu3  ;;  %v1621_v10 = vrot.slane %v1619_v1, 4  ;;  %v1630_v38 = vrot.slane %v1628_v26, 5  ;;  %v2590_v1 = vpack.c.b16 %v2563_v6, %v2562_v21  ;;  %v2452_v42 = vpack.c.b16 %v2431_v5, %v2430_v22  ;;  %v4491_v6 = vld [vmem:[%s5415_s29 + $0x60] sm:$0xf] }
 0x1c0   : > { %v6641_v8 = vadd.f32 %v3505_v39, %v3417_v33  ;;  %v3590_v3 = vadd.f32 %v3589_v0, %v6597_v55  ;;  %v2628_v33 = vunpack.c.l.b16 %v1984_v13  ;;  %v2629_v39 = vunpack.c.l.b16 %v1987_v15  ;;  %v4492_v15 = vld [vmem:[%s5415_s29 + $0x64] sm:$0xf] }
 0x1c1   : > { %v1625_v2 = vor.u32 %v1624_v35, %v1621_v10  ;;  %v1635_v26 = vor.u32 %v1634_v11, %v1630_v38  ;;  %v1640_v5 = vrot.slane %v1638_v17, 5  ;;  %v4517_v10 = vld [vmem:[%s5415_s29 + $0x68] sm:$0x1]  ;;  %v7262_v35 = vld [vmem:[#allocation9_spill] sm:$0xff]  ;;  %v1656_v17 = vshrl.u32 %v4492_v15, 16 }
 0x1c2   : > { %v6648_v52 = vpop.f32.mrf.mxu0  ;;  %v6655_v55 = vadd.f32 %v6580_v29, %v3590_v3  ;;  %v5321_v29 = vld [vmem:[%s5415_s29 + $0x94] sm:$0xf]  ;;  %v2655_v13 = vpack.c.b16 %v2629_v39, %v2628_v33  ;;  %v3422_v11 = vadd.f32 %v6505_v59, %v7262_v35 }
 0x1c3   : > { %v1416_v0 = vrot.slane %v5321_v29, 5  ;;  %v5079_v3 = vld [vmem:[%s5415_s29 + $0x54] sm:$0xff]  ;;  %v1626_v16 = vrot.slane %v1625_v2, 4  ;;  %v1636_v22 = vrot.slane %v1635_v26, 4  ;;  %v1643_v2 = vshrl.u32 %v4491_v6, 16 }
 0x1c4   : > { %7259 = vst [vmem:[#allocation12_spill] sm:$0xff] %v6655_v55  ;;  %v6666_v36 = vpop.f32.mrf.mxu1  ;;  %v4533_v55 = vld [vmem:[%s5415_s29 + $0x60] sm:$0xe]  ;;  %v1652_v26 = vshll.u32 %v4492_v15, 16 }
 0x1c5   : > { %v1418_v29 = vrot.slane %v1416_v0, 4  ;;  %v4549_v33 = vrot.slane %v4533_v55, 9  ;;  %v1631_v59 = vsel %vm5452_vm2, %v1626_v16, %v1630_v38  ;;  %v1641_v55 = vsel %vm5452_vm2, %v1636_v22, %v1640_v5 }
 0x1c6   : > { %v2565_v16 = vunpack.c.l.b16 %v1641_v55  ;;  %v1654_v5 = vrot.slane %v1652_v26, 5 }
 0x1c7   : > { %v3507_v7 = vpop.f32.mrf.mxu2  ;;  %v3591_v62 = vpop.f32.mrf.mxu3 }
 0x1c8   : > { %v6660_v4 = vadd.f32 %v3507_v7, %v3419_v37  ;;  %v3592_v34 = vadd.f32 %v3591_v62, %v6618_v46  ;;  %v1990_v37 = vrot.slane %v4492_v15, 5  ;;  %v4474_v7 = vrot.slane %v4458_v60, 9  ;;  %v5322_v46 = vld [vmem:[%s5415_s29 + $0x98] sm:$0x1] }
 0x1c9   : > { %v1419_v62 = vrot.slane %v5322_v46, 5  ;;  %v1993_v60 = vrot.slane %v4517_v10, 5  ;;  %v1645_v15 = vrot.slane %v1643_v2, 4  ;;  %v5323_v2 = vld [vmem:[%s5415_s29 + $0xa0] sm:$0xf] }
 0x1ca   : > { %v6668_v23 = vpop.f32.mrf.mxu0  ;;  %v6673_v21 = vadd.f32 %v6604_v45, %v3592_v34  ;;  %v1992_v39 = vrot.slane %v1990_v37, 4  ;;  %v1417_v45 = vsel %vm5627_vm5, %v4474_v7, %v1416_v0  ;;  %v1991_v0 = vsel %vm5627_vm5, %v4549_v33, %v1990_v37 }
 0x1cb   : > { %v1420_v34 = vsel %vm5627_vm5, %v1418_v29, %v1419_v62  ;;  %v2564_v62 = vunpack.c.l.b16 %v1631_v59  ;;  %v2630_v37 = vunpack.c.l.b16 %v1991_v0  ;;  %v4459_v59 = vld [vmem:[%s5415_s29 + $0x9c] sm:$0xe] }
 0x1cc   : > { %7261 = vst [vmem:[#allocation14_spill] sm:$0xff] %v6673_v21  ;;  %3825 = vmatmul.bf16.gmra.mxu2 %v5079_v3  ;;  %3909 = vmatmul.bf16.gmra.mxu3 %v2590_v1  ;;  %v1994_v7 = vsel %vm5627_vm5, %v1992_v39, %v1993_v60  ;;  %v2433_v29 = vunpack.c.l.b16 %v1420_v34  ;;  %v6699_v38 = vpop.f32.mrf.mxu1  ;;  %v5080_v34 = vld [vmem:[%s5415_s29 + $0x60] sm:$0xff] }
 0x1cd   : > { %3761 = vmatmul.bf16.gmra.mxu1 %v2452_v42  ;;  %4003 = vmatmul.bf16.gmra.mxu0 %v2655_v13  ;;  %v1646_v42 = vshll.u32 %v4491_v6, 16  ;;  %v1658_v6 = vrot.slane %v1656_v17, 4  ;;  %v2631_v35 = vunpack.c.l.b16 %v1994_v7  ;;  %v1662_v17 = vshll.u32 %v4517_v10, 16  ;;  %v4494_v7 = vld [vmem:[%s5415_s29 + $0x70] sm:$0xf] }
 0x1cf   : > { %v3510_v46 = vpop.f32.mrf.mxu2  ;;  %v3594_v25 = vpop.f32.mrf.mxu3  ;;  %v1648_v22 = vrot.slane %v1646_v42, 5  ;;  %v1423_v42 = vrot.slane %v5323_v2, 5  ;;  %v1659_v26 = vor.u32 %v1658_v6, %v1654_v5  ;;  %v2656_v0 = vpack.c.b16 %v2631_v35, %v2630_v37  ;;  %v4518_v35 = vld [vmem:[%s5415_s29 + $0x74] sm:$0x1] }
 0x1d0   : > { %v6683_v3 = vadd.f32 %v3510_v46, %v3422_v11  ;;  %v3595_v1 = vadd.f32 %v3594_v25, %v6641_v8  ;;  %v2432_v8 = vunpack.c.l.b16 %v1417_v45  ;;  %v7264_v11 = vld [vmem:[#allocation11_spill] sm:$0xff]  ;;  %v1664_v37 = vrot.slane %v1662_v17, 5 }
 0x1d1   : > { %v1649_v55 = vor.u32 %v1648_v22, %v1645_v15  ;;  %v4493_v15 = vld [vmem:[%s5415_s29 + $0x6c] sm:$0xf]  ;;  %v1425_v10 = vrot.slane %v1423_v42, 4  ;;  %v1660_v6 = vrot.slane %v1659_v26, 4  ;;  %v2000_v2 = vrot.slane %v4518_v35, 5 }
 0x1d2   : > { %v6690_v13 = vpop.f32.mrf.mxu0  ;;  %v6697_v25 = vadd.f32 %v6624_v19, %v3595_v1  ;;  %v3424_v19 = vadd.f32 %v6530_v63, %v7264_v11  ;;  %v2453_v60 = vpack.c.b16 %v2433_v29, %v2432_v8  ;;  %v2591_v1 = vpack.c.b16 %v2565_v16, %v2564_v62  ;;  %v4534_v8 = vld [vmem:[%s5415_s29 + $0x6c] sm:$0xe] }
 0x1d3   : > { %v1997_v11 = vrot.slane %v4494_v7, 5  ;;  %v4475_v16 = vrot.slane %v4459_v59, 9  ;;  %v1650_v22 = vrot.slane %v1649_v55, 4  ;;  %v1676_v59 = vshll.u32 %v4494_v7, 16 }
 0x1d4   : > { %7263 = vst [vmem:[#allocation2_spill] sm:$0xff] %v6697_v25 }
 0x1d5   : > { %v1424_v26 = vsel %vm5627_vm5, %v4475_v16, %v1423_v42  ;;  %v1655_v17 = vsel %vm5452_vm2, %v1650_v22, %v1654_v5  ;;  %v6743_v5 = vrot.slane %v1676_v59, 5 }
 0x1d7   : > { %v3512_v33 = vpop.f32.mrf.mxu2  ;;  %v3596_v39 = vpop.f32.mrf.mxu3 }
 0x1d8   : > { %v6703_v46 = vadd.f32 %v3512_v33, %v3424_v19  ;;  %v3597_v45 = vadd.f32 %v3596_v39, %v6660_v4  ;;  %v7266_v4 = vld [vmem:[#allocation13_spill] sm:$0xff]  ;;  %v6720_v19 = vpop.f32.mrf.mxu1  ;;  %v5324_v33 = vld [vmem:[%s5415_s29 + $0xa4] sm:$0x1] }
 0x1d9   : > { %v3427_v62 = vadd.f32 %v6560_v40, %v7266_v4  ;;  %v1426_v39 = vrot.slane %v5324_v33, 5  ;;  %v1680_v4 = vshrl.u32 %v4494_v7, 16 }
 0x1da   : > { %v6710_v63 = vpop.f32.mrf.mxu0  ;;  %v6714_v29 = vadd.f32 %v6648_v52, %v3597_v45  ;;  %v4550_v52 = vrot.slane %v4534_v8, 9  ;;  %v1999_v45 = vrot.slane %v1997_v11, 4 }
 0x1db   : > { %v1427_v8 = vsel %vm5627_vm5, %v1425_v10, %v1426_v39  ;;  %v1682_v16 = vrot.slane %v1680_v4, 4  ;;  %v2434_v10 = vunpack.c.l.b16 %v1424_v26  ;;  %v7268_v39 = vld [vmem:[#allocation15_spill] sm:$0xff] }
 0x1dc   : > { %7265 = vst [vmem:[#allocation3_spill] sm:$0xff] %v6714_v29  ;;  %3830 = vmatmul.bf16.gmra.mxu2 %v5080_v34  ;;  %3914 = vmatmul.bf16.gmra.mxu3 %v2591_v1  ;;  %v1667_v34 = vshrl.u32 %v4493_v15, 16  ;;  %v1670_v1 = vshll.u32 %v4493_v15, 16  ;;  %v1998_v7 = vsel %vm5627_vm5, %v4550_v52, %v1997_v11  ;;  %v2566_v15 = vunpack.c.l.b16 %v1655_v17 }
 0x1dd   : > { %3766 = vmatmul.bf16.gmra.mxu1 %v2453_v60  ;;  %4008 = vmatmul.bf16.gmra.mxu0 %v2656_v0  ;;  %v1665_v0 = vsel %vm5452_vm2, %v1660_v6, %v1664_v37  ;;  %v2435_v6 = vunpack.c.l.b16 %v1427_v8  ;;  %v2632_v37 = vunpack.c.l.b16 %v1998_v7  ;;  %v3429_v52 = vadd.f32 %v6587_v48, %v7268_v39  ;;  %v5325_v8 = vld [vmem:[%s5415_s29 + $0xac] sm:$0xf] }
 0x1de   : > { %v1669_v42 = vrot.slane %v1667_v34, 4  ;;  %v2567_v22 = vunpack.c.l.b16 %v1665_v0  ;;  %v1686_v34 = vshll.u32 %v4518_v35, 16  ;;  %v4460_v0 = vld [vmem:[%s5415_s29 + $0xa8] sm:$0xe]  ;;  %v1430_v48 = vrot.slane %v5325_v8, 5 }
 0x1df   : > { %v3515_v29 = vpop.f32.mrf.mxu2  ;;  %v3599_v40 = vpop.f32.mrf.mxu3  ;;  %v2454_v17 = vpack.c.b16 %v2435_v6, %v2434_v10  ;;  %v5326_v10 = vld [vmem:[%s5415_s29 + $0xb0] sm:$0x1] }
 0x1e0   : > { %v6723_v60 = vadd.f32 %v3515_v29, %v3427_v62  ;;  %v3600_v55 = vadd.f32 %v3599_v40, %v6683_v3  ;;  %v2001_v3 = vsel %vm5627_vm5, %v1999_v45, %v2000_v2  ;;  %v1672_v62 = vrot.slane %v1670_v1, 5  ;;  %v6748_v1 = vpop.f32.mrf.mxu1 }
 0x1e1   : > { %v2633_v11 = vunpack.c.l.b16 %v2001_v3  ;;  %v1683_v40 = vor.u32 %v1682_v16, %v6743_v5  ;;  %v2592_v26 = vpack.c.b16 %v2567_v22, %v2566_v15  ;;  %v4496_v3 = vld [vmem:[%s5415_s29 + $0x7c] sm:$0xf]  ;;  %v1688_v39 = vrot.slane %v1686_v34, 5 }
 0x1e2   : > { %v6734_v33 = vpop.f32.mrf.mxu0  ;;  %v6741_v29 = vadd.f32 %v6668_v23, %v3600_v55  ;;  %v1673_v2 = vor.u32 %v1672_v62, %v1669_v42  ;;  %v5081_v55 = vld [vmem:[%s5415_s29 + $0x6c] sm:$0xff]  ;;  %v2004_v35 = vrot.slane %v4496_v3, 5  ;;  %v4476_v15 = vrot.slane %v4460_v0, 9 }
 0x1e3   : > { %v2657_v7 = vpack.c.b16 %v2633_v11, %v2632_v37  ;;  %v1684_v16 = vrot.slane %v1683_v40, 4  ;;  %v1432_v22 = vrot.slane %v1430_v48, 4  ;;  %v1433_v6 = vrot.slane %v5326_v10, 5  ;;  %v4495_v37 = vld [vmem:[%s5415_s29 + $0x78] sm:$0xf] }
 0x1e4   : > { %7267 = vst [vmem:[#allocation4_spill] sm:$0xff] %v6741_v29  ;;  %v1674_v62 = vrot.slane %v1673_v2, 4  ;;  %v4519_v11 = vld [vmem:[%s5415_s29 + $0x80] sm:$0x1]  ;;  %v2006_v40 = vrot.slane %v2004_v35, 4  ;;  %v1694_v0 = vshll.u32 %v4495_v37, 16 }
 0x1e5   : > { %v2007_v34 = vrot.slane %v4519_v11, 5  ;;  %v1704_v10 = vshrl.u32 %v4496_v3, 16 }
 0x1e7   : > { %v3517_v23 = vpop.f32.mrf.mxu2  ;;  %v3601_v45 = vpop.f32.mrf.mxu3 }
 0x1e8   : > { %v6750_v59 = vadd.f32 %v3517_v23, %v3429_v52  ;;  %v3602_v4 = vadd.f32 %v3601_v45, %v6703_v46  ;;  %v4535_v52 = vld [vmem:[%s5415_s29 + $0x78] sm:$0xe]  ;;  %v7270_v23 = vld [vmem:[#allocation16_spill] sm:$0xff] }
 0x1e9   : > { %v3432_v45 = vadd.f32 %v6615_v53, %v7270_v23  ;;  %v4551_v2 = vrot.slane %v4535_v52, 9  ;;  %v1431_v53 = vsel %vm5627_vm5, %v4476_v15, %v1430_v48  ;;  %v1700_v52 = vshll.u32 %v4496_v3, 16  ;;  %v6780_v23 = vpop.f32.mrf.mxu1 }
 0x1ea   : > { %v6757_v42 = vpop.f32.mrf.mxu0  ;;  %v6761_v46 = vadd.f32 %v6690_v13, %v3602_v4  ;;  %v1679_v13 = vsel %vm5452_vm2, %v1674_v62, %v6743_v5  ;;  %v1689_v4 = vsel %vm5452_vm2, %v1684_v16, %v1688_v39  ;;  %v2436_v39 = vunpack.c.l.b16 %v1431_v53  ;;  %v4461_v53 = vld [vmem:[%s5415_s29 + $0xb4] sm:$0xe] }
 0x1eb   : > { %v2005_v62 = vsel %vm5627_vm5, %v4551_v2, %v2004_v35  ;;  %v2568_v16 = vunpack.c.l.b16 %v1679_v13  ;;  %v2569_v48 = vunpack.c.l.b16 %v1689_v4  ;;  %v7272_v35 = vld [vmem:[#allocation17_spill] sm:$0xff] }
 0x1ec   : > { %7269 = vst [vmem:[#allocation5_spill] sm:$0xff] %v6761_v46  ;;  %3835 = vmatmul.bf16.gmra.mxu2 %v5081_v55  ;;  %3919 = vmatmul.bf16.gmra.mxu3 %v2592_v26  ;;  %v3434_v2 = vadd.f32 %v6639_v57, %v7272_v35 }
 0x1ed   : > { %3771 = vmatmul.bf16.gmra.mxu1 %v2454_v17  ;;  %4013 = vmatmul.bf16.gmra.mxu0 %v2657_v7  ;;  %v1691_v17 = vshrl.u32 %v4495_v37, 16  ;;  %v1434_v7 = vsel %vm5627_vm5, %v1432_v22, %v1433_v6  ;;  %v1696_v22 = vrot.slane %v1694_v0, 5  ;;  %v1702_v6 = vrot.slane %v1700_v52, 5 }
 0x1ee   : > { %v2437_v3 = vunpack.c.l.b16 %v1434_v7  ;;  %v1706_v37 = vrot.slane %v1704_v10, 4  ;;  %v5327_v7 = vld [vmem:[%s5415_s29 + $0xb8] sm:$0xf] }
 0x1ef   : > { %v3520_v8 = vpop.f32.mrf.mxu2  ;;  %v3604_v29 = vpop.f32.mrf.mxu3  ;;  %v1693_v15 = vrot.slane %v1691_v17, 4  ;;  %v1437_v17 = vrot.slane %v5327_v7, 5 }
 0x1f0   : > { %v6773_v55 = vadd.f32 %v3520_v8, %v3432_v45  ;;  %v3605_v26 = vadd.f32 %v3604_v29, %v6723_v60  ;;  %v2008_v60 = vsel %vm5627_vm5, %v2006_v40, %v2007_v34  ;;  %v2634_v45 = vunpack.c.l.b16 %v2005_v62 }
 0x1f1   : > { %v2635_v8 = vunpack.c.l.b16 %v2008_v60  ;;  %v2593_v34 = vpack.c.b16 %v2569_v48, %v2568_v16  ;;  %v1697_v0 = vor.u32 %v1696_v22, %v1693_v15  ;;  %v2455_v52 = vpack.c.b16 %v2437_v3, %v2436_v39  ;;  %v4536_v48 = vld [vmem:[%s5415_s29 + $0x84] sm:$0xe]  ;;  %v6804_v35 = vpop.f32.mrf.mxu1  ;;  %v5328_v39 = vld [vmem:[%s5415_s29 + $0xbc] sm:$0x1] }
 0x1f2   : > { %v6782_v5 = vpop.f32.mrf.mxu0  ;;  %v6789_v29 = vadd.f32 %v6710_v63, %v3605_v26  ;;  %v5082_v26 = vld [vmem:[%s5415_s29 + $0x78] sm:$0xff]  ;;  %v1707_v10 = vor.u32 %v1706_v37, %v1702_v6  ;;  %v1710_v62 = vshll.u32 %v4519_v11, 16  ;;  %v4477_v16 = vrot.slane %v4461_v53, 9 }
 0x1f3   : > { %v2658_v60 = vpack.c.b16 %v2635_v8, %v2634_v45  ;;  %v1439_v15 = vrot.slane %v1437_v17, 4  ;;  %v1440_v3 = vrot.slane %v5328_v39, 5  ;;  %v1698_v11 = vrot.slane %v1697_v0, 4  ;;  %v4497_v45 = vld [vmem:[%s5415_s29 + $0x84] sm:$0xf] }
 0x1f4   : > { %7271 = vst [vmem:[#allocation6_spill] sm:$0xff] %v6789_v29  ;;  %v4498_v29 = vld [vmem:[%s5415_s29 + $0x88] sm:$0xf]  ;;  %v1708_v22 = vrot.slane %v1707_v10, 4  ;;  %v1712_v37 = vrot.slane %v1710_v62, 5  ;;  %v1715_v7 = vshrl.u32 %v4497_v45, 16 }
 0x1f5   : > { %v2011_v57 = vrot.slane %v4498_v29, 5  ;;  %v4520_v8 = vld [vmem:[%s5415_s29 + $0x8c] sm:$0x1]  ;;  %v1718_v0 = vshll.u32 %v4497_v45, 16  ;;  %v1724_v62 = vshll.u32 %v4498_v29, 16 }
 0x1f6   : > { %v1713_v10 = vsel %vm5452_vm2, %v1708_v22, %v1712_v37 }
 0x1f7   : > { %v3522_v40 = vpop.f32.mrf.mxu2  ;;  %v3606_v63 = vpop.f32.mrf.mxu3  ;;  %v1726_v22 = vrot.slane %v1724_v62, 5  ;;  %v1734_v62 = vshll.u32 %v4520_v8, 16 }
 0x1f8   : > { %v3523_v13 = vadd.f32 %v3522_v40, %v3434_v2  ;;  %v3607_v4 = vadd.f32 %v3606_v63, %v6750_v59  ;;  %v4552_v2 = vrot.slane %v4536_v48, 9  ;;  %v2013_v40 = vrot.slane %v2011_v57, 4 }
 0x1f9   : > { %v2014_v63 = vrot.slane %v4520_v8, 5 }
 0x1fa   : > { %v6798_v46 = vpop.f32.mrf.mxu0  ;;  %v6802_v59 = vadd.f32 %v6734_v33, %v3607_v4  ;;  %v1438_v4 = vsel %vm5627_vm5, %v4477_v16, %v1437_v17  ;;  %v2012_v17 = vsel %vm5627_vm5, %v4552_v2, %v2011_v57  ;;  %v6829_v2 = vpop.f32.mrf.mxu1 }
 0x1fb   : > { %v2636_v45 = vunpack.c.l.b16 %v2012_v17  ;;  %v4500_v17 = vld [vmem:[%s5415_s29 + $0x94] sm:$0xf] }
 0x1fc   : > { %7273 = vst [vmem:[#allocation7_spill] sm:$0xff] %v6802_v59  ;;  %3840 = vmatmul.bf16.gmra.mxu2 %v5082_v26  ;;  %3924 = vmatmul.bf16.gmra.mxu3 %v2593_v34  ;;  %v1441_v26 = vsel %vm5627_vm5, %v1439_v15, %v1440_v3  ;;  %v2438_v15 = vunpack.c.l.b16 %v1438_v4  ;;  %v2571_v3 = vunpack.c.l.b16 %v1713_v10 }
 0x1fd   : > { %3776 = vmatmul.bf16.gmra.mxu1 %v2455_v52  ;;  %4018 = vmatmul.bf16.gmra.mxu0 %v2658_v60  ;;  %v1703_v52 = vsel %vm5452_vm2, %v1698_v11, %v1702_v6  ;;  %v1728_v60 = vshrl.u32 %v4498_v29, 16  ;;  %v2439_v6 = vunpack.c.l.b16 %v1441_v26  ;;  %v1717_v11 = vrot.slane %v1715_v7, 4  ;;  %v5329_v26 = vld [vmem:[%s5415_s29 + $0xc4] sm:$0xf] }
 0x1fe   : > { %v2570_v39 = vunpack.c.l.b16 %v1703_v52  ;;  %v1720_v29 = vrot.slane %v1718_v0, 5  ;;  %v1444_v52 = vrot.slane %v5329_v26, 5  ;;  %v5330_v26 = vld [vmem:[%s5415_s29 + $0xc8] sm:$0x1] }
 0x1ff   : > { %v3609_v53 = vpop.f32.mrf.mxu3  ;;  %v6809_v33 = vpop.f32.mrf.mxu2  ;;  %v1730_v37 = vrot.slane %v1728_v60, 4  ;;  %v2456_v7 = vpack.c.b16 %v2439_v6, %v2438_v15  ;;  %v1736_v6 = vrot.slane %v1734_v62, 5  ;;  %v1748_v62 = vshll.u32 %v4500_v17, 16 }
 0x200   : > { %v3610_v34 = vadd.f32 %v3609_v53, %v6773_v55  ;;  %v2015_v55 = vsel %vm5627_vm5, %v2013_v40, %v2014_v63  ;;  %v2594_v4 = vpack.c.b16 %v2571_v3, %v2570_v39  ;;  %v1721_v10 = vor.u32 %v1720_v29, %v1717_v11  ;;  %v4537_v39 = vld [vmem:[%s5415_s29 + $0x90] sm:$0xe] }
 0x201   : > { %v2637_v57 = vunpack.c.l.b16 %v2015_v55  ;;  %v1731_v0 = vor.u32 %v1730_v37, %v1726_v22  ;;  %v1446_v3 = vrot.slane %v1444_v52, 4  ;;  %v1447_v11 = vrot.slane %v5330_v26, 5  ;;  %v4499_v29 = vld [vmem:[%s5415_s29 + $0x90] sm:$0xf]  ;;  %v4521_v37 = vld [vmem:[%s5415_s29 + $0x98] sm:$0x1] }
 0x202   : > { %v6820_v48 = vpop.f32.mrf.mxu0  ;;  %v6827_v16 = vadd.f32 %v6757_v42, %v3610_v34  ;;  %v5083_v42 = vld [vmem:[%s5415_s29 + $0x84] sm:$0xff]  ;;  %v4462_v34 = vld [vmem:[%s5415_s29 + $0xc0] sm:$0xe]  ;;  %v1722_v15 = vrot.slane %v1721_v10, 4  ;;  %v2021_v59 = vrot.slane %v4521_v37, 5  ;;  %v1739_v10 = vshrl.u32 %v4499_v29, 16 }
 0x203   : > { %v2659_v60 = vpack.c.b16 %v2637_v57, %v2636_v45  ;;  %v1732_v8 = vrot.slane %v1731_v0, 4  ;;  %v4553_v45 = vrot.slane %v4537_v39, 9  ;;  %v3713_v39 = vadd.f32 %v6666_v36, %v6098_v61 }
 0x204   : > { %7274 = vst [vmem:[#allocation9_spill] sm:$0xff] %v6827_v16  ;;  %v2018_v16 = vrot.slane %v4500_v17, 5  ;;  %v1741_v61 = vrot.slane %v1739_v10, 4 }
 0x205   : > { %v1737_v0 = vsel %vm5452_vm2, %v1732_v8, %v1736_v6  ;;  %v1750_v6 = vrot.slane %v1748_v62, 5 }
 0x206   : > { %v2020_v57 = vrot.slane %v2018_v16, 4  ;;  %v2573_v8 = vunpack.c.l.b16 %v1737_v0  ;;  %v1758_v0 = vshll.u32 %v4521_v37, 16 }
 0x207   : > { %v3611_v40 = vpop.f32.mrf.mxu3  ;;  %v3803_v63 = vpop.f32.mrf.mxu2 }
 0x208   : > { %v3612_v53 = vadd.f32 %v3611_v40, %v3523_v13  ;;  %v4478_v40 = vrot.slane %v4462_v34, 9  ;;  %v1727_v34 = vsel %vm5452_vm2, %v1722_v15, %v1726_v22  ;;  %v3715_v22 = vadd.f32 %v6699_v38, %v6114_v50  ;;  %v5084_v38 = vld [vmem:[%s5415_s29 + $0x90] sm:$0xff] }
 0x209   : > { %v2572_v15 = vunpack.c.l.b16 %v1727_v34 }
 0x20a   : > { %v6835_v55 = vpop.f32.mrf.mxu0  ;;  %v6838_v13 = vadd.f32 %v6782_v5, %v3612_v53  ;;  %v1445_v53 = vsel %vm5627_vm5, %v4478_v40, %v1444_v52  ;;  %v2019_v52 = vsel %vm5627_vm5, %v4553_v45, %v2018_v16  ;;  %v2022_v40 = vsel %vm5627_vm5, %v2020_v57, %v2021_v59 }
 0x20b   : > { %v2638_v16 = vunpack.c.l.b16 %v2019_v52  ;;  %v2639_v45 = vunpack.c.l.b16 %v2022_v40  ;;  %v4501_v52 = vld [vmem:[%s5415_s29 + $0x9c] sm:$0xf]  ;;  %v4522_v40 = vld [vmem:[%s5415_s29 + $0xa4] sm:$0x1] }
 0x20c   : > { %7275 = vst [vmem:[#allocation11_spill] sm:$0xff] %v6838_v13  ;;  %3845 = vmatmul.bf16.gmra.mxu2 %v5083_v42  ;;  %3929 = vmatmul.bf16.gmra.mxu3 %v2594_v4  ;;  %v6848_v42 = vpop.f32.mrf.mxu1  ;;  %v1448_v4 = vsel %vm5627_vm5, %v1446_v3, %v1447_v11  ;;  %v2440_v3 = vunpack.c.l.b16 %v1445_v53  ;;  %v3804_v13 = vadd.f32 %v3803_v63, %v3715_v22 }
 0x20d   : > { %3781 = vmatmul.bf16.gmra.mxu1 %v2456_v7  ;;  %4023 = vmatmul.bf16.gmra.mxu0 %v2659_v60  ;;  %v1742_v7 = vshll.u32 %v4499_v29, 16  ;;  %v1752_v60 = vshrl.u32 %v4500_v17, 16  ;;  %v2441_v11 = vunpack.c.l.b16 %v1448_v4  ;;  %v3802_v17 = vadd.f32 %v6809_v33, %v3713_v39 }
 0x20e   : > { %v2595_v53 = vpack.c.b16 %v2573_v8, %v2572_v15  ;;  %v2660_v10 = vpack.c.b16 %v2639_v45, %v2638_v16 }
 0x20f   : > { %v6844_v25 = vpop.f32.mrf.mxu2  ;;  %v3890_v5 = vpop.f32.mrf.mxu3  ;;  %v1744_v36 = vrot.slane %v1742_v7, 5  ;;  %v1754_v29 = vrot.slane %v1752_v60, 4  ;;  %v2457_v34 = vpack.c.b16 %v2441_v11, %v2440_v3  ;;  %v4502_v7 = vld [vmem:[%s5415_s29 + $0xa0] sm:$0xf]  ;;  %v2028_v11 = vrot.slane %v4522_v40, 5 }
 0x210   : > { %v3891_v59 = vadd.f32 %v3890_v5, %v3802_v17  ;;  %v1772_v16 = vshll.u32 %v4502_v7, 16  ;;  %v1776_v45 = vshrl.u32 %v4502_v7, 16 }
 0x211   : > { %v1745_v4 = vor.u32 %v1744_v36, %v1741_v61  ;;  %v1755_v33 = vor.u32 %v1754_v29, %v1750_v6  ;;  %v1763_v61 = vshrl.u32 %v4501_v52, 16  ;;  %v1766_v36 = vshll.u32 %v4501_v52, 16 }
 0x212   : > { %v6858_v26 = vpop.f32.mrf.mxu0  ;;  %v6873_v63 = vadd.f32 %v6798_v46, %v3891_v59  ;;  %v3718_v59 = vadd.f32 %v6720_v19, %v6140_v14  ;;  %v1774_v19 = vrot.slane %v1772_v16, 5 }
 0x213   : > { %v1746_v46 = vrot.slane %v1745_v4, 4  ;;  %v1756_v39 = vrot.slane %v1755_v33, 4  ;;  %v1768_v14 = vrot.slane %v1766_v36, 5 }
 0x214   : > { %v6870_v62 = vpop.f32.mrf.mxu1  ;;  %v3807_v33 = vadd.f32 %v6844_v25, %v3718_v59  ;;  %v1782_v25 = vshll.u32 %v4522_v40, 16 }
 0x215   : > { %v1751_v8 = vsel %vm5452_vm2, %v1746_v46, %v1750_v6  ;;  %v3720_v6 = vadd.f32 %v6748_v1, %v6161_v24  ;;  %v5085_v1 = vld [vmem:[%s5415_s29 + $0x9c] sm:$0xff] }
 0x216   : > { %v2574_v4 = vunpack.c.l.b16 %v1751_v8  ;;  %v4504_v8 = vld [vmem:[%s5415_s29 + $0xac] sm:$0xf]  ;;  %v1784_v59 = vrot.slane %v1782_v25, 5 }
 0x217   : > { %v3808_v57 = vpop.f32.mrf.mxu2  ;;  %v3892_v21 = vpop.f32.mrf.mxu3  ;;  %v2032_v36 = vrot.slane %v4504_v8, 5 }
 0x218   : > { %v3893_v50 = vadd.f32 %v3892_v21, %v3804_v13  ;;  %v2025_v21 = vrot.slane %v4502_v7, 5  ;;  %v4538_v13 = vld [vmem:[%s5415_s29 + $0x9c] sm:$0xe]  ;;  %v1778_v7 = vrot.slane %v1776_v45, 4 }
 0x219   : > { %v4554_v22 = vrot.slane %v4538_v13, 9 }
 0x21a   : > { %v6876_v5 = vadd.f32 %v6820_v48, %v3893_v50  ;;  %v6878_v60 = vpop.f32.mrf.mxu0  ;;  %v1760_v48 = vrot.slane %v1758_v0, 5  ;;  %v2027_v3 = vrot.slane %v2025_v21, 4 }
 0x21c   : > { %v5165_v37 = vpack.c.bf16 %v6876_v5, %v6873_v63  ;;  %3850 = vmatmul.bf16.gmra.mxu2 %v5084_v38  ;;  %3934 = vmatmul.bf16.gmra.mxu3 %v2595_v53  ;;  %v1761_v29 = vsel %vm5452_vm2, %v1756_v39, %v1760_v48  ;;  %v2026_v38 = vsel %vm5627_vm5, %v4554_v22, %v2025_v21 }
 0x21d   : > { %3786 = vmatmul.bf16.gmra.mxu1 %v2457_v34  ;;  %4028 = vmatmul.bf16.gmra.mxu0 %v2660_v10  ;;  %v2029_v53 = vsel %vm5627_vm5, %v2027_v3, %v2028_v11  ;;  %v6907_v34 = vpop.f32.mrf.mxu1  ;;  %v2575_v0 = vunpack.c.l.b16 %v1761_v29  ;;  %v1765_v10 = vrot.slane %v1763_v61, 4  ;;  %v2640_v13 = vunpack.c.l.b16 %v2026_v38  ;;  %v4539_v29 = vld [vmem:[%s5415_s29 + $0xa8] sm:$0xe] }
 0x21e   : > { %5166 = vst [vmem:[%s6883_s8] sm:$0xff] %v5165_v37   ;;  %v2641_v21 = vunpack.c.l.b16 %v2029_v53  ;;  %v3809_v37 = vadd.f32 %v3808_v57, %v3720_v6  ;;  %v1779_v3 = vor.u32 %v1778_v7, %v1774_v19  ;;  %v4503_v38 = vld [vmem:[%s5415_s29 + $0xa8] sm:$0xf]  ;;  %v4523_v53 = vld [vmem:[%s5415_s29 + $0xb0] sm:$0x1]  ;;  %v2034_v6 = vrot.slane %v2032_v36, 4 }
 0x21f   : > { %v6891_v15 = vpop.f32.mrf.mxu2  ;;  %v3895_v17 = vpop.f32.mrf.mxu3  ;;  %v2596_v52 = vpack.c.b16 %v2575_v0, %v2574_v4  ;;  %v1769_v22 = vor.u32 %v1768_v14, %v1765_v10  ;;  %v2035_v4 = vrot.slane %v4523_v53, 5  ;;  %v1787_v14 = vshrl.u32 %v4503_v38, 16 }
 0x220   : > { %v3896_v46 = vadd.f32 %v3895_v17, %v3807_v33  ;;  %v2661_v11 = vpack.c.b16 %v2641_v21, %v2640_v13  ;;  %v1780_v45 = vrot.slane %v1779_v3, 4  ;;  %v1790_v7 = vshll.u32 %v4503_v38, 16 }
 0x221   : > { %v1770_v40 = vrot.slane %v1769_v22, 4  ;;  %v1796_v21 = vshll.u32 %v4504_v8, 16  ;;  %v1789_v25 = vrot.slane %v1787_v14, 4 }
 0x222   : > { %v6899_v50 = vpop.f32.mrf.mxu0  ;;  %v6913_v61 = vadd.f32 %v6835_v55, %v3896_v46  ;;  %v1785_v13 = vsel %vm5452_vm2, %v1780_v45, %v1784_v59  ;;  %v3723_v46 = vadd.f32 %v6780_v23, %v6186_v44 }
 0x223   : > { %v1775_v10 = vsel %vm5452_vm2, %v1770_v40, %v1774_v19  ;;  %v3725_v19 = vadd.f32 %v6804_v35, %v6208_v56  ;;  %v2577_v3 = vunpack.c.l.b16 %v1785_v13  ;;  %v5086_v35 = vld [vmem:[%s5415_s29 + $0xa8] sm:$0xff]  ;;  %v4540_v13 = vld [vmem:[%s5415_s29 + $0xb4] sm:$0xe] }
 0x224   : > { %v3812_v22 = vadd.f32 %v6891_v15, %v3723_v46 }
 0x225   : > { %v6925_v55 = vpop.f32.mrf.mxu1 }
 0x227   : > { %v3813_v39 = vpop.f32.mrf.mxu2  ;;  %v3897_v48 = vpop.f32.mrf.mxu3 }
 0x228   : > { %v3898_v24 = vadd.f32 %v3897_v48, %v3809_v37  ;;  %v1800_v37 = vshrl.u32 %v4504_v8, 16  ;;  %v1798_v8 = vrot.slane %v1796_v21, 5 }
 0x22a   : > { %v6916_v57 = vadd.f32 %v6858_v26, %v3898_v24  ;;  %v6918_v17 = vpop.f32.mrf.mxu0  ;;  %v4555_v26 = vrot.slane %v4539_v29, 9  ;;  %v1802_v44 = vrot.slane %v1800_v37, 4 }
 0x22c   : > { %v5170_v16 = vpack.c.bf16 %v6916_v57, %v6913_v61  ;;  %3855 = vmatmul.bf16.gmra.mxu2 %v5085_v1  ;;  %3939 = vmatmul.bf16.gmra.mxu3 %v2596_v52  ;;  %v2033_v24 = vsel %vm5627_vm5, %v4555_v26, %v2032_v36  ;;  %v2036_v1 = vsel %vm5627_vm5, %v2034_v6, %v2035_v4  ;;  %v2576_v52 = vunpack.c.l.b16 %v1775_v10  ;;  %v4506_v10 = vld [vmem:[%s5415_s29 + $0xb8] sm:$0xf] }
 0x22d   : > { %4033 = vmatmul.bf16.gmra.mxu0 %v2661_v11  ;;  %v1792_v11 = vrot.slane %v1790_v7, 5  ;;  %v2642_v23 = vunpack.c.l.b16 %v2033_v24  ;;  %v2643_v29 = vunpack.c.l.b16 %v2036_v1  ;;  %v6945_v59 = vpop.f32.mrf.mxu1  ;;  %v1803_v15 = vor.u32 %v1802_v44, %v1798_v8  ;;  %v4505_v24 = vld [vmem:[%s5415_s29 + $0xb4] sm:$0xf]  ;;  %v4524_v1 = vld [vmem:[%s5415_s29 + $0xbc] sm:$0x1] }
 0x22e   : > { %5242 = vst [vmem:[%s6883_s8 + $0x8] sm:$0xff] %v5170_v16   ;;  %v3814_v16 = vadd.f32 %v3813_v39, %v3725_v19  ;;  %v2597_v38 = vpack.c.b16 %v2577_v3, %v2576_v52  ;;  %v1806_v6 = vshll.u32 %v4523_v53, 16  ;;  %v2039_v7 = vrot.slane %v4506_v10, 5 }
 0x22f   : > { %v6928_v33 = vpop.f32.mrf.mxu2  ;;  %v3900_v0 = vpop.f32.mrf.mxu3  ;;  %v1793_v26 = vor.u32 %v1792_v11, %v1789_v25  ;;  %v2662_v4 = vpack.c.b16 %v2643_v29, %v2642_v23  ;;  %v1804_v37 = vrot.slane %v1803_v15, 4  ;;  %v1811_v25 = vshrl.u32 %v4505_v24, 16 }
 0x230   : > { %v3901_v36 = vadd.f32 %v3900_v0, %v3812_v22  ;;  %v1808_v46 = vrot.slane %v1806_v6, 5  ;;  %v2041_v19 = vrot.slane %v2039_v7, 4  ;;  %v1814_v11 = vshll.u32 %v4505_v24, 16  ;;  %v5087_v24 = vld [vmem:[%s5415_s29 + $0xb4] sm:$0xff] }
 0x231   : > { %v1794_v53 = vrot.slane %v1793_v26, 4  ;;  %v1820_v23 = vshll.u32 %v4506_v10, 16  ;;  %v1824_v29 = vshrl.u32 %v4506_v10, 16  ;;  %v1813_v6 = vrot.slane %v1811_v25, 4 }
 0x232   : > { %v6936_v48 = vpop.f32.mrf.mxu0  ;;  %v6950_v14 = vadd.f32 %v6878_v60, %v3901_v36  ;;  %v4556_v60 = vrot.slane %v4540_v13, 9  ;;  %v1809_v44 = vsel %vm5452_vm2, %v1804_v37, %v1808_v46 }
 0x233   : > { %v1799_v3 = vsel %vm5452_vm2, %v1794_v53, %v1798_v8  ;;  %v2579_v15 = vunpack.c.l.b16 %v1809_v44 }
 0x235   : > { %v6971_v36 = vpop.f32.mrf.mxu1 }
 0x237   : > { %v3818_v40 = vpop.f32.mrf.mxu2  ;;  %v3902_v45 = vpop.f32.mrf.mxu3 }
 0x238   : > { %v3903_v56 = vadd.f32 %v3902_v45, %v3814_v16  ;;  %v3728_v16 = vadd.f32 %v6829_v2, %v6240_v9  ;;  %v1816_v9 = vrot.slane %v1814_v11, 5  ;;  %v1822_v2 = vrot.slane %v1820_v23, 5  ;;  %v4541_v11 = vld [vmem:[%s5415_s29 + $0xc0] sm:$0xe] }
 0x23a   : > { %v6953_v39 = vadd.f32 %v6899_v50, %v3903_v56  ;;  %v6955_v0 = vpop.f32.mrf.mxu0  ;;  %v2042_v50 = vrot.slane %v4524_v1, 5  ;;  %v2040_v56 = vsel %vm5627_vm5, %v4556_v60, %v2039_v7  ;;  %v3817_v26 = vadd.f32 %v6928_v33, %v3728_v16 }
 0x23b   : > { %v2644_v10 = vunpack.c.l.b16 %v2040_v56  ;;  %v4525_v56 = vld [vmem:[%s5415_s29 + $0xc8] sm:$0x1] }
 0x23c   : > { %v5175_v21 = vpack.c.bf16 %v6953_v39, %v6950_v14  ;;  %3860 = vmatmul.bf16.gmra.mxu2 %v5086_v35  ;;  %3944 = vmatmul.bf16.gmra.mxu3 %v2597_v38  ;;  %v2043_v8 = vsel %vm5627_vm5, %v2041_v19, %v2042_v50  ;;  %v3730_v35 = vadd.f32 %v6848_v42, %v6266_v27  ;;  %v2578_v38 = vunpack.c.l.b16 %v1799_v3  ;;  %v4508_v50 = vld [vmem:[%s5415_s29 + $0xc4] sm:$0xf] }
 0x23d   : > { %4038 = vmatmul.bf16.gmra.mxu0 %v2662_v4  ;;  %v1826_v4 = vrot.slane %v1824_v29, 4  ;;  %v2645_v13 = vunpack.c.l.b16 %v2043_v8  ;;  %v1817_v27 = vor.u32 %v1816_v9, %v1813_v6  ;;  %v1830_v19 = vshll.u32 %v4524_v1, 16  ;;  %v6993_v44 = vpop.f32.mrf.mxu1 }
 0x23e   : > { %5243 = vst [vmem:[%s6883_s8 + $0x10] sm:$0xff] %v5175_v21   ;;  %v3819_v21 = vadd.f32 %v3818_v40, %v3730_v35  ;;  %v2598_v60 = vpack.c.b16 %v2579_v15, %v2578_v38  ;;  %v2046_v25 = vrot.slane %v4508_v50, 5  ;;  %v2049_v35 = vrot.slane %v4525_v56, 5 }
 0x23f   : > { %v6963_v52 = vpop.f32.mrf.mxu2  ;;  %v3905_v22 = vpop.f32.mrf.mxu3  ;;  %v1827_v42 = vor.u32 %v1826_v4, %v1822_v2  ;;  %v2663_v33 = vpack.c.b16 %v2645_v13, %v2644_v10  ;;  %v1818_v23 = vrot.slane %v1817_v27, 4  ;;  %v1832_v16 = vrot.slane %v1830_v19, 5 }
 0x240   : > { %v3906_v7 = vadd.f32 %v3905_v22, %v3817_v26  ;;  %v2048_v8 = vrot.slane %v2046_v25, 4  ;;  %v1844_v10 = vshll.u32 %v4508_v50, 16  ;;  %v1848_v13 = vshrl.u32 %v4508_v50, 16 }
 0x241   : > { %v1828_v29 = vrot.slane %v1827_v42, 4  ;;  %v1823_v15 = vsel %vm5452_vm2, %v1818_v23, %v1822_v2  ;;  %v3735_v2 = vadd.f32 %v6907_v34, %v6350_v12  ;;  %v5088_v34 = vld [vmem:[%s5415_s29 + $0xc0] sm:$0xff] }
 0x242   : > { %v6973_v45 = vpop.f32.mrf.mxu0  ;;  %v6985_v3 = vadd.f32 %v6918_v17, %v3906_v7  ;;  %v4507_v17 = vld [vmem:[%s5415_s29 + $0xc0] sm:$0xf] }
 0x243   : > { %v1835_v6 = vshrl.u32 %v4507_v17, 16  ;;  %v1838_v9 = vshll.u32 %v4507_v17, 16  ;;  %v1833_v4 = vsel %vm5452_vm2, %v1828_v29, %v1832_v16 }
 0x244   : > { %v2581_v27 = vunpack.c.l.b16 %v1833_v4 }
 0x245   : > { %v1837_v42 = vrot.slane %v1835_v6, 4  ;;  %v1840_v19 = vrot.slane %v1838_v9, 5  ;;  %v4542_v9 = vld [vmem:[%s5415_s29 + $0xcc] sm:$0xe] }
 0x247   : > { %v3823_v53 = vpop.f32.mrf.mxu2  ;;  %v3907_v37 = vpop.f32.mrf.mxu3  ;;  %v1841_v17 = vor.u32 %v1840_v19, %v1837_v42 }
 0x248   : > { %v3908_v46 = vadd.f32 %v3907_v37, %v3819_v21  ;;  %v3733_v21 = vadd.f32 %v6870_v62, %v6311_v28  ;;  %v1850_v28 = vrot.slane %v1848_v13, 4 }
 0x24a   : > { %v6988_v40 = vadd.f32 %v6936_v48, %v3908_v46  ;;  %v6990_v22 = vpop.f32.mrf.mxu0  ;;  %v4557_v48 = vrot.slane %v4541_v11, 9  ;;  %v2050_v46 = vsel %vm5627_vm5, %v2048_v8, %v2049_v35  ;;  %v7017_v11 = vpop.f32.mrf.mxu1  ;;  %v4510_v35 = vld [vmem:[%s5415_s29 + $0xd0] sm:$0xf] }
 0x24b   : > { %v2647_v50 = vunpack.c.l.b16 %v2050_v46  ;;  %v2053_v6 = vrot.slane %v4510_v35, 5 }
 0x24c   : > { %v5180_v1 = vpack.c.bf16 %v6988_v40, %v6985_v3  ;;  %3865 = vmatmul.bf16.gmra.mxu2 %v5087_v24  ;;  %3949 = vmatmul.bf16.gmra.mxu3 %v2598_v60  ;;  %v2047_v37 = vsel %vm5627_vm5, %v4557_v48, %v2046_v25  ;;  %v2580_v24 = vunpack.c.l.b16 %v1823_v15  ;;  %v3822_v60 = vadd.f32 %v6963_v52, %v3733_v21  ;;  %v4509_v21 = vld [vmem:[%s5415_s29 + $0xcc] sm:$0xf] }
 0x24d   : > { %4043 = vmatmul.bf16.gmra.mxu0 %v2663_v33  ;;  %v1846_v33 = vrot.slane %v1844_v10, 5  ;;  %v2646_v62 = vunpack.c.l.b16 %v2047_v37  ;;  %v3824_v25 = vadd.f32 %v3823_v53, %v3735_v2  ;;  %v1854_v48 = vshll.u32 %v4525_v56, 16  ;;  %v4526_v37 = vld [vmem:[%s5415_s29 + $0xd4] sm:$0x1] }
 0x24e   : > { %5244 = vst [vmem:[%s6883_s8 + $0x18] sm:$0xff] %v5180_v1   ;;  %v2599_v16 = vpack.c.b16 %v2581_v27, %v2580_v24  ;;  %v1842_v56 = vrot.slane %v1841_v17, 4  ;;  %v2055_v46 = vrot.slane %v2053_v6, 4  ;;  %v1859_v42 = vshrl.u32 %v4509_v21, 16 }
 0x24f   : > { %v7000_v38 = vpop.f32.mrf.mxu2  ;;  %v3910_v26 = vpop.f32.mrf.mxu3  ;;  %v1851_v52 = vor.u32 %v1850_v28, %v1846_v33  ;;  %v2664_v8 = vpack.c.b16 %v2647_v50, %v2646_v62  ;;  %v1856_v13 = vrot.slane %v1854_v48, 5  ;;  %v1862_v19 = vshll.u32 %v4509_v21, 16 }
 0x250   : > { %v3911_v1 = vadd.f32 %v3910_v26, %v3822_v60  ;;  %v1847_v27 = vsel %vm5452_vm2, %v1842_v56, %v1846_v33  ;;  %v1868_v62 = vshll.u32 %v4510_v35, 16  ;;  %v1872_v50 = vshrl.u32 %v4510_v35, 16 }
 0x251   : > { %v1852_v10 = vrot.slane %v1851_v52, 4  ;;  %v3740_v33 = vadd.f32 %v6945_v59, %v6416_v51  ;;  %v1861_v52 = vrot.slane %v1859_v42, 4  ;;  %v1864_v48 = vrot.slane %v1862_v19, 5 }
 0x252   : > { %v7008_v7 = vpop.f32.mrf.mxu0  ;;  %v7022_v15 = vadd.f32 %v6955_v0, %v3911_v1  ;;  %v4558_v0 = vrot.slane %v4542_v9, 9  ;;  %v7035_v60 = vpop.f32.mrf.mxu1  ;;  %v1874_v35 = vrot.slane %v1872_v50, 4  ;;  %v1878_v59 = vshll.u32 %v4526_v37, 16 }
 0x253   : > { %v1857_v28 = vsel %vm5452_vm2, %v1852_v10, %v1856_v13  ;;  %v5089_v10 = vld [vmem:[%s5415_s29 + $0xcc] sm:$0xff]  ;;  %v1865_v21 = vor.u32 %v1864_v48, %v1861_v52  ;;  %s4382_s29 = sshll.u32 %s7293_s12, 1 }
 0x254   : > { %v2583_v17 = vunpack.c.l.b16 %v1857_v28  ;;  %v1880_v19 = vrot.slane %v1878_v59, 5  ;;  %s225_s11 = scalar_lea.vmem %s7227_s3, %s4382_s29 }
 0x257   : > { %v3828_v23 = vpop.f32.mrf.mxu2  ;;  %v3912_v29 = vpop.f32.mrf.mxu3 }
 0x258   : > { %v3913_v12 = vadd.f32 %v3912_v29, %v3824_v25  ;;  %v3738_v25 = vadd.f32 %v6925_v55, %v6380_v54  ;;  %v2054_v29 = vsel %vm5627_vm5, %v4558_v0, %v2053_v6  ;;  %v3829_v9 = vadd.f32 %v3828_v23, %v3740_v33 }
 0x259   : > { %v2648_v54 = vunpack.c.l.b16 %v2054_v29 }
 0x25a   : > { %v7025_v53 = vadd.f32 %v6973_v45, %v3913_v12  ;;  %v7027_v26 = vpop.f32.mrf.mxu0  ;;  %v2056_v45 = vrot.slane %v4526_v37, 5 }
 0x25c   : > { %v5185_v4 = vpack.c.bf16 %v7025_v53, %v7022_v15  ;;  %3870 = vmatmul.bf16.gmra.mxu2 %v5088_v34  ;;  %3954 = vmatmul.bf16.gmra.mxu3 %v2599_v16  ;;  %v2057_v12 = vsel %vm5627_vm5, %v2055_v46, %v2056_v45  ;;  %v2582_v34 = vunpack.c.l.b16 %v1847_v27  ;;  %v3827_v16 = vadd.f32 %v7000_v38, %v3738_v25  ;;  %v3752_v38 = vpop.f32.mrf.mxu1 }
 0x25d   : > { %4048 = vmatmul.bf16.gmra.mxu0 %v2664_v8  ;;  %v1870_v8 = vrot.slane %v1868_v62, 5  ;;  %v2649_v55 = vunpack.c.l.b16 %v2057_v12  ;;  %v3743_v62 = vadd.f32 %v6971_v36, %v6439_v18  ;;  %v3745_v25 = vadd.f32 %v6993_v44, %v6457_v58 }
 0x25e   : > { %5245 = vst [vmem:[%s6883_s8 + $0x20] sm:$0xff] %v5185_v4   ;;  %v2600_v13 = vpack.c.b16 %v2583_v17, %v2582_v34 }
 0x25f   : > { %v3831_v2 = vpop.f32.mrf.mxu2  ;;  %v3915_v24 = vpop.f32.mrf.mxu3  ;;  %v1875_v51 = vor.u32 %v1874_v35, %v1870_v8  ;;  %v2665_v0 = vpack.c.b16 %v2649_v55, %v2648_v54  ;;  %v3748_v55 = vadd.f32 %v7017_v11, %v6481_v43 }
 0x260   : > { %v3916_v4 = vadd.f32 %v3915_v24, %v3827_v16  ;;  %v1866_v24 = vrot.slane %v1865_v21, 4  ;;  %v3832_v12 = vadd.f32 %v3831_v2, %v3743_v62 }
 0x261   : > { %v1876_v42 = vrot.slane %v1875_v51, 4 }
 0x262   : > { %v4011_v1 = vpop.f32.mrf.mxu0  ;;  %v7052_v46 = vadd.f32 %v6990_v22, %v3916_v4  ;;  %v1871_v22 = vsel %vm5452_vm2, %v1866_v24, %v1870_v8 }
 0x263   : > { %v2584_v33 = vunpack.c.l.b16 %v1871_v22 }
 0x264   : > { %v3754_v29 = vpop.f32.mrf.mxu1 }
 0x265   : > { %v3755_v24 = vadd.f32 %v3754_v29, %v6543_v30 }
 0x267   : > { %v3833_v6 = vpop.f32.mrf.mxu2  ;;  %v3917_v56 = vpop.f32.mrf.mxu3 }
 0x268   : > { %v3918_v32 = vadd.f32 %v3917_v56, %v3829_v9  ;;  %v3834_v16 = vadd.f32 %v3833_v6, %v3745_v25 }
 0x26a   : > { %v7055_v45 = vadd.f32 %v7008_v7, %v3918_v32  ;;  %v4014_v27 = vpop.f32.mrf.mxu0  ;;  %v1881_v7 = vsel %vm5452_vm2, %v1876_v42, %v1880_v19 }
 0x26b   : > { %v2585_v34 = vunpack.c.l.b16 %v1881_v7 }
 0x26c   : > { %v5190_v23 = vpack.c.bf16 %v7055_v45, %v7052_v46  ;;  %3875 = vmatmul.bf16.gmra.mxu2 %v5089_v10  ;;  %3959 = vmatmul.bf16.gmra.mxu3 %v2600_v13  ;;  %v3757_v36 = vpop.f32.mrf.mxu1 }
 0x26d   : > { %4053 = vmatmul.bf16.gmra.mxu0 %v2665_v0  ;;  %v2601_v35 = vpack.c.b16 %v2585_v34, %v2584_v33  ;;  %v3758_v29 = vadd.f32 %v3757_v36, %v6569_v41 }
 0x26e   : > { %5246 = vst [vmem:[%s6883_s8 + $0x28] sm:$0xff] %v5190_v23  }
 0x26f   : > { %v3836_v37 = vpop.f32.mrf.mxu2  ;;  %v3920_v28 = vpop.f32.mrf.mxu3 }
 0x270   : > { %v3921_v17 = vadd.f32 %v3920_v28, %v3832_v12  ;;  %v3837_v4 = vadd.f32 %v3836_v37, %v3748_v55 }
 0x272   : > { %v4016_v50 = vpop.f32.mrf.mxu0  ;;  %v7069_v31 = vadd.f32 %v7027_v26, %v3921_v17  ;;  %v3750_v26 = vadd.f32 %v7035_v60, %v6499_v49  ;;  %v3753_v49 = vadd.f32 %v3752_v38, %v6525_v20 }
 0x274   : > { %v3759_v10 = vpop.f32.mrf.mxu1 }
 0x275   : > { %v3760_v12 = vadd.f32 %v3759_v10, %v6585_v47 }
 0x277   : > { %v3838_v52 = vpop.f32.mrf.mxu2  ;;  %v3922_v48 = vpop.f32.mrf.mxu3 }
 0x278   : > { %v3923_v8 = vadd.f32 %v3922_v48, %v3834_v16 }
 0x27a   : > { %v7071_v54 = vadd.f32 %v4011_v1, %v3923_v8  ;;  %v4019_v18 = vpop.f32.mrf.mxu0  ;;  %v3839_v1 = vadd.f32 %v3838_v52, %v3750_v26  ;;  %v4175_v26 = vmul.f32 %v7069_v31, %v7069_v31 }
 0x27c   : > { %v5195_v58 = vpack.c.bf16 %v7071_v54, %v7069_v31  ;;  %3964 = vmatmul.bf16.gmra.mxu3 %v2601_v35  ;;  %v3762_v11 = vpop.f32.mrf.mxu1 }
 0x27e   : > { %5247 = vst [vmem:[%s6883_s8 + $0x30] sm:$0xff] %v5195_v58  }
 0x27f   : > { %v3841_v44 = vpop.f32.mrf.mxu2  ;;  %v3925_v2 = vpop.f32.mrf.mxu3 }
 0x280   : > { %v3926_v6 = vadd.f32 %v3925_v2, %v3837_v4  ;;  %v3842_v42 = vadd.f32 %v3841_v44, %v3753_v49  ;;  %v4176_v44 = vmul.f32 %v7071_v54, %v7071_v54 }
 0x282   : > { %v4021_v9 = vpop.f32.mrf.mxu0  ;;  %v4015_v21 = vadd.f32 %v4014_v27, %v3926_v6  ;;  %v7276_v6 = vld [vmem:[#allocation8_spill] sm:$0xff] }
 0x284   : > { %v3764_v7 = vpop.f32.mrf.mxu1  ;;  %v4177_v47 = vmul.f32 %v4015_v21, %v4015_v21 }
 0x287   : > { %v3843_v56 = vpop.f32.mrf.mxu2  ;;  %v3927_v32 = vpop.f32.mrf.mxu3 }
 0x288   : > { %v3928_v13 = vadd.f32 %v3927_v32, %v3839_v1  ;;  %v3844_v27 = vadd.f32 %v3843_v56, %v3755_v24  ;;  %v4174_v1 = vmul.f32 %v7055_v45, %v7055_v45  ;;  %v3763_v56 = vadd.f32 %v3762_v11, %v7276_v6 }
 0x289   : > { %v4173_v32 = vmul.f32 %v7052_v46, %v7052_v46 }
 0x28a   : > { %v4017_v51 = vadd.f32 %v4016_v50, %v3928_v13  ;;  %v4024_v59 = vpop.f32.mrf.mxu0 }
 0x28c   : > { %v5200_v0 = vpack.c.bf16 %v4017_v51, %v4015_v21  ;;  %4123 = vmatpush.msra.mxu1 %v4017_v51  ;;  %v3767_v16 = vpop.f32.mrf.mxu1  ;;  %v4178_v41 = vmul.f32 %v4017_v51, %v4017_v51 }
 0x28e   : > { %5248 = vst [vmem:[%s6883_s8 + $0x38] sm:$0xff] %v5200_v0   ;;  %4124 = vmatpush.msra.mxu1 %v4015_v21  ;;  %v4172_v21 = vmul.f32 %v7025_v53, %v7025_v53 }
 0x28f   : > { %v3846_v23 = vpop.f32.mrf.mxu2  ;;  %v3930_v43 = vpop.f32.mrf.mxu3 }
 0x290   : > { %4125 = vmatpush.msra.mxu1 %v7071_v54  ;;  %v3931_v19 = vadd.f32 %v3930_v43, %v3842_v42  ;;  %v3847_v33 = vadd.f32 %v3846_v23, %v3758_v29  ;;  %v7277_v54 = vld [vmem:[#allocation10_spill] sm:$0xff] }
 0x291   : > { %v3765_v10 = vadd.f32 %v3764_v7, %v7277_v54 }
 0x292   : > { %4126 = vmatpush.msra.mxu1 %v7069_v31  ;;  %v4026_v60 = vpop.f32.mrf.mxu0  ;;  %v7088_v20 = vadd.f32 %v4019_v18, %v3931_v19  ;;  %v4166_v19 = vmul.f32 %v6916_v57, %v6916_v57 }
 0x294   : > { %4127 = vmatpush.msra.mxu1 %v7055_v45  ;;  %v3769_v4 = vpop.f32.mrf.mxu1  ;;  %v4171_v45 = vmul.f32 %v7022_v15, %v7022_v15 }
 0x296   : > { %4128 = vmatpush.msra.mxu1 %v7052_v46  ;;  %v4170_v46 = vmul.f32 %v6988_v40, %v6988_v40 }
 0x297   : > { %v3848_v37 = vpop.f32.mrf.mxu2  ;;  %v3932_v28 = vpop.f32.mrf.mxu3 }
 0x298   : > { %v3933_v22 = vadd.f32 %v3932_v28, %v3844_v27  ;;  %4129 = vmatpush.msra.mxu1 %v7025_v53  ;;  %v3849_v17 = vadd.f32 %v3848_v37, %v3760_v12  ;;  %v4167_v27 = vmul.f32 %v6950_v14, %v6950_v14  ;;  %v7278_v37 = vld [vmem:[#allocation12_spill] sm:$0xff]  ;;  %v4165_v28 = vmul.f32 %v6913_v61, %v6913_v61 }
 0x299   : > { %v4163_v12 = vmul.f32 %v6873_v63, %v6873_v63 }
 0x29a   : > { %v7090_v38 = vadd.f32 %v4021_v9, %v3933_v22  ;;  %4130 = vmatpush.msra.mxu1 %v7022_v15  ;;  %v4029_v30 = vpop.f32.mrf.mxu0  ;;  %v4168_v15 = vmul.f32 %v6953_v39, %v6953_v39 }
 0x29c   : > { %v5205_v62 = vpack.c.bf16 %v7090_v38, %v7088_v20  ;;  %4131 = vmatpush.msra.mxu1 %v6988_v40  ;;  %v3772_v53 = vpop.f32.mrf.mxu1 }
 0x29e   : > { %5249 = vst [vmem:[%s6883_s8 + $0x40] sm:$0xff] %v5205_v62   ;;  %4132 = vmatpush.msra.mxu1 %v6985_v3 }
 0x29f   : > { %v3851_v50 = vpop.f32.mrf.mxu2  ;;  %v3935_v25 = vpop.f32.mrf.mxu3 }
 0x2a0   : > { %4133 = vmatpush.msra.mxu1 %v6953_v39  ;;  %v3936_v52 = vadd.f32 %v3935_v25, %v3847_v33  ;;  %v3852_v13 = vadd.f32 %v3851_v50, %v3763_v56 }
 0x2a2   : > { %4134 = vmatpush.msra.mxu1 %v6950_v14  ;;  %v4031_v34 = vpop.f32.mrf.mxu0  ;;  %v7105_v18 = vadd.f32 %v4024_v59, %v3936_v52  ;;  %v4164_v14 = vmul.f32 %v6876_v5, %v6876_v5 }
 0x2a4   : > { %4135 = vmatpush.msra.mxu1 %v6916_v57  ;;  %v3774_v62 = vpop.f32.mrf.mxu1 }
 0x2a6   : > { %4136 = vmatpush.msra.mxu1 %v6913_v61 }
 0x2a7   : > { %v3853_v48 = vpop.f32.mrf.mxu2  ;;  %v3937_v8 = vpop.f32.mrf.mxu3 }
 0x2a8   : > { %v3938_v35 = vadd.f32 %v3937_v8, %v3849_v17  ;;  %4137 = vmatpush.msra.mxu1 %v6876_v5  ;;  %v3854_v51 = vadd.f32 %v3853_v48, %v3765_v10  ;;  %v7280_v8 = vld [vmem:[#allocation2_spill] sm:$0xff]  ;;  %v7282_v10 = vld [vmem:[#allocation4_spill] sm:$0xff] }
 0x2aa   : > { %v7107_v58 = vadd.f32 %v4026_v60, %v3938_v35  ;;  %4138 = vmatpush.msra.mxu1 %v6873_v63  ;;  %v4034_v2 = vpop.f32.mrf.mxu0  ;;  %v4169_v60 = vmul.f32 %v6985_v3, %v6985_v3  ;;  %v3768_v3 = vadd.f32 %v3767_v16, %v7278_v37  ;;  %v3773_v35 = vadd.f32 %v3772_v53, %v7280_v8  ;;  %v7284_v37 = vld [vmem:[#allocation6_spill] sm:$0xff] }
 0x2ac   : > { %4195 = vmatpush.msrb.mxu1 %v4178_v41  ;;  %v5210_v36 = vpack.c.bf16 %v7107_v58, %v7105_v18  ;;  %v3777_v5 = vpop.f32.mrf.mxu1  ;;  %v7281_v41 = vld [vmem:[#allocation3_spill] sm:$0xff] }
 0x2ae   : > { %4196 = vmatpush.msrb.mxu1 %v4177_v47  ;;  %5250 = vst [vmem:[%s6883_s8 + $0x48] sm:$0xff] %v5210_v36   ;;  %v3775_v47 = vadd.f32 %v3774_v62, %v7281_v41 }
 0x2af   : > { %v3856_v55 = vpop.f32.mrf.mxu2  ;;  %v3940_v9 = vpop.f32.mrf.mxu3 }
 0x2b0   : > { %4197 = vmatpush.msrb.mxu1 %v4176_v44  ;;  %v3941_v31 = vadd.f32 %v3940_v9, %v3852_v13  ;;  %v3857_v7 = vadd.f32 %v3856_v55, %v3768_v3  ;;  %v3778_v13 = vadd.f32 %v3777_v5, %v7282_v10 }
 0x2b2   : > { %4198 = vmatpush.msrb.mxu1 %v4175_v26  ;;  %v4036_v43 = vpop.f32.mrf.mxu0  ;;  %v7129_v49 = vadd.f32 %v4029_v30, %v3941_v31  ;;  %v7279_v30 = vld [vmem:[#allocation14_spill] sm:$0xff] }
 0x2b3   : > { %v3770_v39 = vadd.f32 %v3769_v4, %v7279_v30 }
 0x2b4   : > { %4199 = vmatpush.msrb.mxu1 %v4174_v1  ;;  %v3779_v26 = vpop.f32.mrf.mxu1 }
 0x2b6   : > { %4200 = vmatpush.msrb.mxu1 %v4173_v32 }
 0x2b7   : > { %v3858_v59 = vpop.f32.mrf.mxu2  ;;  %v3942_v0 = vpop.f32.mrf.mxu3 }
 0x2b8   : > { %4201 = vmatpush.msrb.mxu1 %v4172_v21  ;;  %v3943_v23 = vadd.f32 %v3942_v0, %v3854_v51  ;;  %v3859_v50 = vadd.f32 %v3858_v59, %v3770_v39  ;;  %v7283_v51 = vld [vmem:[#allocation5_spill] sm:$0xff] }
 0x2b9   : > { %v3780_v31 = vadd.f32 %v3779_v26, %v7283_v51 }
 0x2ba   : > { %4202 = vmatpush.msrb.mxu1 %v4171_v45  ;;  %v7131_v11 = vadd.f32 %v4031_v34, %v3943_v23  ;;  %v4039_v22 = vpop.f32.mrf.mxu0 }
 0x2bc   : > { %4203 = vmatpush.msrb.mxu1 %v4170_v46  ;;  %v5215_v24 = vpack.c.bf16 %v7131_v11, %v7129_v49  ;;  %v3782_v21 = vpop.f32.mrf.mxu1 }
 0x2bd   : > { %v3783_v3 = vadd.f32 %v3782_v21, %v7284_v37 }
 0x2be   : > { %4204 = vmatpush.msrb.mxu1 %v4169_v60  ;;  %5251 = vst [vmem:[%s6883_s8 + $0x50] sm:$0xff] %v5215_v24  }
 0x2bf   : > { %v3861_v42 = vpop.f32.mrf.mxu2  ;;  %v3945_v40 = vpop.f32.mrf.mxu3 }
 0x2c0   : > { %4205 = vmatpush.msrb.mxu1 %v4168_v15  ;;  %v3946_v25 = vadd.f32 %v3945_v40, %v3857_v7  ;;  %v3862_v63 = vadd.f32 %v3861_v42, %v3773_v35  ;;  %v7287_v35 = vld [vmem:[#allocation11_spill] sm:$0xff] }
 0x2c2   : > { %4206 = vmatpush.msrb.mxu1 %v4167_v27  ;;  %v7152_v61 = vadd.f32 %v4034_v2, %v3946_v25  ;;  %v4041_v17 = vpop.f32.mrf.mxu0 }
 0x2c4   : > { %4207 = vmatpush.msrb.mxu1 %v4166_v19  ;;  %v3784_v42 = vpop.f32.mrf.mxu1  ;;  %v5355_v19 = vmov 1.0  }
 0x2c5   : > { %4139 = vmatmul.f32.vlgmr.msra.gmra.mxu1 %v5355_v19 }
 0x2c6   : > { %4208 = vmatpush.msrb.mxu1 %v4165_v28  ;;  %v7285_v28 = vld [vmem:[#allocation7_spill] sm:$0xff] }
 0x2c7   : > { %v3863_v29 = vpop.f32.mrf.mxu2  ;;  %v3947_v57 = vpop.f32.mrf.mxu3 }
 0x2c8   : > { %4209 = vmatpush.msrb.mxu1 %v4164_v14  ;;  %v3948_v33 = vadd.f32 %v3947_v57, %v3859_v50  ;;  %v3864_v36 = vadd.f32 %v3863_v29, %v3775_v47 }
 0x2ca   : > { %4210 = vmatpush.msrb.mxu1 %v4163_v12  ;;  %v7154_v34 = vadd.f32 %v4036_v43, %v3948_v33  ;;  %v4044_v55 = vpop.f32.mrf.mxu0 }
 0x2cc   : > { %v5220_v16 = vpack.c.bf16 %v7154_v34, %v7152_v61  ;;  %v3787_v14 = vpop.f32.mrf.mxu1 }
 0x2cd   : > { %4211 = vmatmul.f32.vlgmr.msrb.gmra.mxu1 %v5355_v19 }
 0x2ce   : > { %5252 = vst [vmem:[%s6883_s8 + $0x58] sm:$0xff] %v5220_v16  }
 0x2cf   : > { %v3950_v52 = vpop.f32.mrf.mxu3  ;;  %v3866_v48 = vpop.f32.mrf.mxu2 }
 0x2d0   : > { %v3951_v44 = vadd.f32 %v3950_v52, %v3862_v63  ;;  %v3867_v59 = vadd.f32 %v3866_v48, %v3778_v13  ;;  %v7286_v52 = vld [vmem:[#allocation9_spill] sm:$0xff] }
 0x2d1   : > { %v3788_v48 = vadd.f32 %v3787_v14, %v7286_v52 }
 0x2d2   : > { %v7161_v4 = vadd.f32 %v4039_v22, %v3951_v44  ;;  %v4046_v54 = vpop.f32.mrf.mxu0  ;;  %v3785_v22 = vadd.f32 %v3784_v42, %v7285_v28 }
 0x2d4   : > { %v3789_v5 = vpop.f32.mrf.mxu1 }
 0x2d5   : > { %v3790_v41 = vadd.f32 %v3789_v5, %v7287_v35 }
 0x2d7   : > { %v3952_v2 = vpop.f32.mrf.mxu3  ;;  %v3868_v6 = vpop.f32.mrf.mxu2 }
 0x2d8   : > { %v3953_v9 = vadd.f32 %v3952_v2, %v3864_v36  ;;  %v3869_v45 = vadd.f32 %v3868_v6, %v3780_v31  ;;  %v4187_v31 = vmul.f32 %v7161_v4, %v7161_v4 }
 0x2da   : > { %v7163_v1 = vadd.f32 %v4041_v17, %v3953_v9  ;;  %v4049_v24 = vpop.f32.mrf.mxu0 }
 0x2dc   : > { %v5225_v56 = vpack.c.bf16 %v7163_v1, %v7161_v4  ;;  %v4188_v51 = vmul.f32 %v7163_v1, %v7163_v1 }
 0x2de   : > { %5253 = vst [vmem:[%s6883_s8 + $0x60] sm:$0xff] %v5225_v56  }
 0x2df   : > { %v3955_v32 = vpop.f32.mrf.mxu3  ;;  %v3871_v0 = vpop.f32.mrf.mxu2 }
 0x2e0   : > { %v3956_v23 = vadd.f32 %v3955_v32, %v3867_v59  ;;  %v3872_v30 = vadd.f32 %v3871_v0, %v3783_v3  ;;  %v4186_v59 = vmul.f32 %v7154_v34, %v7154_v34  ;;  %v4185_v0 = vmul.f32 %v7152_v61, %v7152_v61 }
 0x2e2   : > { %v4045_v53 = vadd.f32 %v4044_v55, %v3956_v23  ;;  %v4051_v39 = vpop.f32.mrf.mxu0 }
 0x2e4   : > { %v4189_v21 = vmul.f32 %v4045_v53, %v4045_v53 }
 0x2e7   : > { %v3957_v46 = vpop.f32.mrf.mxu3  ;;  %v3873_v40 = vpop.f32.mrf.mxu2 }
 0x2e8   : > { %v3958_v43 = vadd.f32 %v3957_v46, %v3869_v45  ;;  %v3874_v7 = vadd.f32 %v3873_v40, %v3785_v22 }
 0x2ea   : > { %v4047_v60 = vadd.f32 %v4046_v54, %v3958_v43  ;;  %v4054_v16 = vpop.f32.mrf.mxu0 }
 0x2ec   : > { %v5230_v15 = vpack.c.bf16 %v4047_v60, %v4045_v53  ;;  %v4190_v13 = vmul.f32 %v4047_v60, %v4047_v60 }
 0x2ee   : > { %5254 = vst [vmem:[%s6883_s8 + $0x68] sm:$0xff] %v5230_v15  }
 0x2ef   : > { %v3960_v27 = vpop.f32.mrf.mxu3  ;;  %v3876_v29 = vpop.f32.mrf.mxu2 }
 0x2f0   : > { %v3961_v62 = vadd.f32 %v3960_v27, %v3872_v30  ;;  %v3877_v47 = vadd.f32 %v3876_v29, %v3788_v48 }
 0x2f2   : > { %v4050_v57 = vadd.f32 %v4049_v24, %v3961_v62  ;;  %v4056_v55 = vpop.f32.mrf.mxu0 }
 0x2f4   : > { %v4191_v10 = vmul.f32 %v4050_v57, %v4050_v57 }
 0x2f7   : > { %v3962_v50 = vpop.f32.mrf.mxu3  ;;  %v3878_v8 = vpop.f32.mrf.mxu2 }
 0x2f8   : > { %v3963_v25 = vadd.f32 %v3962_v50, %v3874_v7  ;;  %v3879_v63 = vadd.f32 %v3878_v8, %v3790_v41 }
 0x2fa   : > { %v4052_v12 = vadd.f32 %v4051_v39, %v3963_v25 }
 0x2fc   : > { %v5235_v33 = vpack.c.bf16 %v4052_v12, %v4050_v57  ;;  %v4192_v54 = vmul.f32 %v4052_v12, %v4052_v12 }
 0x2fe   : > { %5255 = vst [vmem:[%s6883_s8 + $0x70] sm:$0xff] %v5235_v33  }
 0x2ff   : > { %v3965_v17 = vpop.f32.mrf.mxu3 }
 0x300   : > { %v3966_v36 = vadd.f32 %v3965_v17, %v3877_v47 }
 0x302   : > { %v4055_v9 = vadd.f32 %v4054_v16, %v3966_v36 }
 0x304   : > { %v4193_v32 = vmul.f32 %v4055_v9, %v4055_v9 }
 0x307   : > { %v3967_v44 = vpop.f32.mrf.mxu3 }
 0x308   : > { %v3968_v2 = vadd.f32 %v3967_v44, %v3879_v63 }
 0x30a   : > { %v4057_v26 = vadd.f32 %v4056_v55, %v3968_v2 }
 0x30c   : > { %v5240_v6 = vpack.c.bf16 %v4057_v26, %v4055_v9  ;;  %v4194_v56 = vmul.f32 %v4057_v26, %v4057_v26  ;;  %4143 = vmatpush.msrb.mxu2 %v4057_v26 }
 0x30e   : > { %5256 = vst [vmem:[%s6883_s8 + $0x78] sm:$0xff] %v5240_v6   ;;  %4144 = vmatpush.msrb.mxu2 %v4055_v9  ;;  %4215 = vmatpush.msra.mxu1 %v4194_v56 }
 0x310   : > { %4145 = vmatpush.msrb.mxu2 %v4052_v12  ;;  %4216 = vmatpush.msra.mxu1 %v4193_v32 }
 0x312   : > { %4146 = vmatpush.msrb.mxu2 %v4050_v57  ;;  %4217 = vmatpush.msra.mxu1 %v4192_v54 }
 0x314   : > { %4147 = vmatpush.msrb.mxu2 %v4047_v60  ;;  %4218 = vmatpush.msra.mxu1 %v4191_v10 }
 0x316   : > { %4148 = vmatpush.msrb.mxu2 %v4045_v53  ;;  %4219 = vmatpush.msra.mxu1 %v4190_v13 }
 0x318   : > { %4149 = vmatpush.msrb.mxu2 %v7163_v1  ;;  %4220 = vmatpush.msra.mxu1 %v4189_v21  ;;  %v4184_v1 = vmul.f32 %v7131_v11, %v7131_v11 }
 0x31a   : > { %4150 = vmatpush.msrb.mxu2 %v7161_v4  ;;  %4221 = vmatpush.msra.mxu1 %v4188_v51  ;;  %v4183_v4 = vmul.f32 %v7129_v49, %v7129_v49 }
 0x31c   : > { %4151 = vmatpush.msrb.mxu2 %v7154_v34  ;;  %4222 = vmatpush.msra.mxu1 %v4187_v31  ;;  %v4182_v34 = vmul.f32 %v7107_v58, %v7107_v58 }
 0x31e   : > { %4152 = vmatpush.msrb.mxu2 %v7152_v61  ;;  %4223 = vmatpush.msra.mxu1 %v4186_v59  ;;  %v4181_v61 = vmul.f32 %v7105_v18, %v7105_v18 }
 0x320   : > { %4153 = vmatpush.msrb.mxu2 %v7131_v11  ;;  %4224 = vmatpush.msra.mxu1 %v4185_v0  ;;  %v4180_v11 = vmul.f32 %v7090_v38, %v7090_v38 }
 0x322   : > { %4154 = vmatpush.msrb.mxu2 %v7129_v49  ;;  %4225 = vmatpush.msra.mxu1 %v4184_v1  ;;  %v4179_v49 = vmul.f32 %v7088_v20, %v7088_v20 }
 0x324   : > { %4155 = vmatpush.msrb.mxu2 %v7107_v58  ;;  %4226 = vmatpush.msra.mxu1 %v4183_v4 }
 0x326   : > { %4156 = vmatpush.msrb.mxu2 %v7105_v18  ;;  %4227 = vmatpush.msra.mxu1 %v4182_v34 }
 0x328   : > { %4157 = vmatpush.msrb.mxu2 %v7090_v38  ;;  %4228 = vmatpush.msra.mxu1 %v4181_v61 }
 0x32a   : > { %4158 = vmatpush.msrb.mxu2 %v7088_v20  ;;  %4229 = vmatpush.msra.mxu1 %v4180_v11 }
 0x32b   : > { %4159 = vmatmul.f32.vlgmr.msrb.gmra.mxu2 %v5355_v19 }
 0x32c   : > { %4230 = vmatpush.msra.mxu1 %v4179_v49 }
 0x32d   : > { %4231 = vmatmul.f32.vlgmr.msra.gmra.mxu1 %v5355_v19 }
 0x342   : > { %v4140_v58 = vpop.f32.mrf.mxu1 }
 0x34a   : > { %v4212_v45 = vpop.f32.mrf.mxu1 }
 0x3aa   : > { %v4232_v18 = vpop.f32.mrf.mxu1 }
 0x3ab   : > { %v4233_v23 = vadd.f32 %v4232_v18, %v4212_v45 }
 0x3ad   : > { %v4236_v43 = vrot.slane %v4233_v23, 7 }
 0x3ae   : > { %v4160_v46 = vpop.f32.mrf.mxu2 }
 0x3af   : > { %v4161_v38 = vadd.f32 %v4160_v46, %v4140_v58 }
 0x3b1   : > { %v4239_v53 = vsel %vm4238_vm6, %v4161_v38, %v4236_v43 }
 0x3b2   : > { %4240 = vst [vmem:[%s225_s11] sm:$0x3] %v4239_v53 }
 0x3b3 PF: > { %s14_s14 = sadd.s32 1, %s5353_s14   ;;  %s7288_s12 = smov %s5349_s13 }
 0x3b4   : > { %p11_p5 = scmp.ge.s32.totalorder %s14_s14, 4   ;;  %s7289_s13 = smov %s7291_s15 }
 0x3b6   :  { %13 = sbr.rel (!%p11_p5) target bundleno = 2 (0x2), region = 72 }

</bundles_post_ra>
